<compile_context>
chip_gen: v5e
topology: v5e:2x2
jax: 0.10.0
libtpu: 0.0.40
codegen_flags: <defaults>
</compile_context>

<pallas_src>
import functools

import numpy as np

import jax
import jax.numpy as jnp
from jax import lax
from jax.experimental import pallas as pl
from jax.experimental.pallas import tpu as pltpu

_CLAMP = 1e-7


def _round_up(a, b):
    return (a + b - 1) // b * b


def _cdiv(a, b):
    return (a + b - 1) // b


# ----------------------------------------------------------------------------
# Pallas kernel: per-tile STFT magnitudes + per-lane partial loss sums
# ----------------------------------------------------------------------------
def _mrstft_tile_kernel(cnt_ref, code_ref, xf_ref, yf_ref, basis_ref, out_ref,
                        *, n_half, chunk, nchunks):
    """One grid step processes `tm = chunk*nchunks` packed signal rows.

    cnt_ref   : (tm, 1)   int32   number of valid frame slots in each row
    code_ref  : (8, n_half) int32 frame-slot index per output column (pad cols
                                  carry a huge code so they are never valid)
    xf_ref    : (tm, k_pad)       preds rows (overlap-packed raw samples)
    yf_ref    : (tm, k_pad)       target rows
    basis_ref : (k_pad, 2*n_half) banded window-fused rDFT basis
                                  (cols [0:n_half] real, [n_half:] imag),
                                  input_scale already folded in
    out_ref   : (1, 8, n_half) f32 per-lane partial sums for this tile:
                  row 0: sum Xsq      row 1: sum Ysq
                  row 2: sum sqrt(Xsq*Ysq)
                  row 3: sum |log Ysq - log Xsq|
                  rows 4..7: zero
    """
    basis = basis_ref[...]
    code = code_ref[0:1, :]                               # (1, n_half) int32

    def chunk_sums(row0):
        x = xf_ref[pl.ds(row0, chunk), :]
        y = yf_ref[pl.ds(row0, chunk), :]
        # One MXU matmul per sub-step: basis stays resident across both signals.
        lhs = jnp.concatenate([x, y], axis=0)             # (2*chunk, k_pad)
        o = jnp.dot(lhs, basis, preferred_element_type=jnp.float32)
        xr = o[:chunk, :n_half]
        xi = o[:chunk, n_half:]
        yr = o[chunk:, :n_half]
        yi = o[chunk:, n_half:]

        cnt = cnt_ref[pl.ds(row0, chunk), :]              # (chunk, 1)
        valid = code < cnt                                # (chunk, n_half)

        # Invalid slots are forced to the clamp value for BOTH signals, so they
        # add 0 to the diff / log sums and exactly 1e-7 each to sum(Ysq)
        # (corrected analytically host-side).
        x_sq = jnp.where(valid, jnp.maximum(xr * xr + xi * xi, _CLAMP), _CLAMP)
        y_sq = jnp.where(valid, jnp.maximum(yr * yr + yi * yi, _CLAMP), _CLAMP)

        s_x = jnp.sum(x_sq, axis=0, keepdims=True)                    # (1, n_half)
        s_y = jnp.sum(y_sq, axis=0, keepdims=True)
        # sum(Ymag-Xmag)^2 = s_y + s_x - 2*s_xy  (one sqrt per element)
        s_xy = jnp.sum(jnp.sqrt(x_sq * y_sq), axis=0, keepdims=True)
        # |log Ymag - log Xmag| = 0.5*|log Ysq - log Xsq| (0.5 applied host-side)
        s_log = jnp.sum(jnp.abs(jnp.log(y_sq) - jnp.log(x_sq)),
                        axis=0, keepdims=True)

        sub = jax.lax.broadcasted_iota(jnp.int32, (8, n_half), 0)
        return (jnp.where(sub == 0, s_x, 0.0)
                + jnp.where(sub == 1, s_y, 0.0)
                + jnp.where(sub == 2, s_xy, 0.0)
                + jnp.where(sub == 3, s_log, 0.0))

    if nchunks == 1:
        acc = chunk_sums(0)
    else:
        def body(c, acc):
            row0 = pl.multiple_of(c * chunk, chunk)
            return acc + chunk_sums(row0)
        acc = lax.fori_loop(0, nchunks, body,
                            jnp.zeros((8, n_half), jnp.float32))

    out_ref[...] = acc[None]


# ----------------------------------------------------------------------------
# Host-side helpers: basis construction, overlap-row packing
# ----------------------------------------------------------------------------
def _banded_basis(n_fft, win_length, hop, f_row, k_pad, n_half, input_scale):
    """Banded, window-fused, scale-fused rDFT basis as a compile-time constant.

    Shape (k_pad, 2*n_half): columns [0:n_half] real, [n_half:2*n_half] imag.
    Frame slot m occupies rows [m*hop : m*hop + n_fft] and columns
    [m*n_bins : (m+1)*n_bins] of each half.
    """
    n_bins = n_fft // 2 + 1
    n = np.arange(win_length, dtype=np.float64)
    win = 0.5 - 0.5 * np.cos(2.0 * np.pi * n / win_length)   # torch.hann_window
    win_full = np.zeros((n_fft,), np.float64)
    lpad = (n_fft - win_length) // 2
    win_full[lpad:lpad + win_length] = win

    t = np.arange(n_fft, dtype=np.float64)[:, None]
    k = np.arange(n_bins, dtype=np.float64)[None, :]
    ang = 2.0 * np.pi * t * k / n_fft
    cos_m = (np.cos(ang) * win_full[:, None] * input_scale).astype(np.float32)
    sin_m = (-np.sin(ang) * win_full[:, None] * input_scale).astype(np.float32)

    real = np.zeros((k_pad, n_half), np.float32)
    imag = np.zeros((k_pad, n_half), np.float32)
    for m in range(f_row):
        real[m * hop:m * hop + n_fft, m * n_bins:(m + 1) * n_bins] = cos_m
        imag[m * hop:m * hop + n_fft, m * n_bins:(m + 1) * n_bins] = sin_m
    return np.concatenate([real, imag], axis=1)


def _pack_rows(sig, n_fft, k_pad, stride, num_rows, rows_pad):
    """(BN, T) -> (rows_pad, k_pad) overlap-packed rows via reshape+slice+concat.

    Row s of a signal covers reflect-padded samples [s*stride, s*stride+k_pad);
    consecutive rows overlap by (k_pad - stride) = (n_fft - hop) samples.
    No gather is used (XLA emits copies only).
    """
    bn, _ = sig.shape
    pad = n_fft // 2
    xp = jnp.pad(sig, ((0, 0), (pad, pad)), mode="reflect")
    total = (num_rows + 1) * stride
    tp = xp.shape[1]
    if total >= tp:
        xp = jnp.pad(xp, ((0, 0), (0, total - tp)))
    else:
        xp = xp[:, :total]                        # unused tail, safe to drop
    chunks = xp.reshape(bn, num_rows + 1, stride)
    head = k_pad - stride
    if head > 0:
        rows = jnp.concatenate(
            [chunks[:, :num_rows, :], chunks[:, 1:, :head]], axis=2)
    else:
        rows = chunks[:, :num_rows, :]
    rows = rows.reshape(bn * num_rows, k_pad)
    if rows_pad > bn * num_rows:
        rows = jnp.pad(rows, ((0, rows_pad - bn * num_rows), (0, 0)))
    return rows


# ----------------------------------------------------------------------------
# Per-resolution driver
# ----------------------------------------------------------------------------
def _stft_resolution_sums(xs, ys, n_fft, hop, win_length, *,
                          input_scale, tm_max, mxu_dtype):
    """Returns (sum(Ymag-Xmag)^2, sum Ymag^2, sum|logY-logX|, true elem count)."""
    bn, t_len = xs.shape
    n_bins = n_fft // 2 + 1
    n_frames = 1 + t_len // hop

    # Overlap-row geometry: k_pad >= 2*n_fft - hop guarantees row overlap
    # (n_fft - hop) <= stride and fills the 256-deep v6e/v7x MXU.
    k_pad = max(256, _round_up(2 * n_fft - hop, 128))
    f_row = (k_pad - n_fft) // hop + 1
    stride = f_row * hop
    assert k_pad >= n_fft and (k_pad - stride) <= stride
    num_rows = _cdiv(n_frames, f_row)
    n_half = _round_up(f_row * n_bins, 128)

    rows_total = bn * num_rows
    num_tiles = _cdiv(rows_total, tm_max)
    if num_tiles > 1 and num_tiles % 2 == 1:
        num_tiles += 1                     # even tile count: v7x 2-TC balance
    tm = _round_up(_cdiv(rows_total, num_tiles), 16)
    if tm > 512:                           # chunk the f32 temporaries (v7x VMEM)
        tm = _round_up(tm, 512)
        chunk = 512
    else:
        chunk = tm
    nchunks = tm // chunk
    rows_pad = num_tiles * tm

    basis = jnp.asarray(
        _banded_basis(n_fft, win_length, hop, f_row, k_pad, n_half, input_scale),
        dtype=mxu_dtype)

    xf = _pack_rows(xs, n_fft, k_pad, stride, num_rows, rows_pad)
    yf = _pack_rows(ys, n_fft, k_pad, stride, num_rows, rows_pad)

    # Per-row number of valid frame slots (0 for padding rows).
    g = jnp.arange(rows_pad, dtype=jnp.int32)
    sig_idx = g // num_rows
    row_in_sig = g - sig_idx * num_rows
    cnt = jnp.clip(n_frames - row_in_sig * f_row, 0, f_row)
    cnt = jnp.where(sig_idx < bn, cnt, 0).astype(jnp.int32)[:, None]

    # Per-column frame-slot code; pad columns get a huge code (never valid).
    col = np.arange(n_half)
    code = np.where(col < f_row * n_bins, col // n_bins, 2 ** 30).astype(np.int32)
    code = jnp.asarray(np.broadcast_to(code, (8, n_half)))

    kernel = functools.partial(_mrstft_tile_kernel, n_half=n_half,
                               chunk=chunk, nchunks=nchunks)

    partials = pl.pallas_call(
        kernel,
        out_shape=jax.ShapeDtypeStruct((num_tiles, 8, n_half), jnp.float32),
        grid_spec=pltpu.PrefetchScalarGridSpec(
            num_scalar_prefetch=0,
            grid=(num_tiles,),
            in_specs=[
                pl.BlockSpec((tm, 1), lambda i: (i, 0)),
                pl.BlockSpec((8, n_half), lambda i: (0, 0)),
                pl.BlockSpec((tm, k_pad), lambda i: (i, 0)),
                pl.BlockSpec((tm, k_pad), lambda i: (i, 0)),
                pl.BlockSpec((k_pad, 2 * n_half), lambda i: (0, 0)),
            ],
            out_specs=pl.BlockSpec((1, 8, n_half), lambda i: (i, 0, 0)),
        ),
        compiler_params=pltpu.CompilerParams(
            dimension_semantics=("parallel",)),
    )(cnt, code, xf, yf, basis)

    sums = jnp.sum(partials, axis=(0, 2))              # (8,)
    s_x, s_y, s_xy, s_log = sums[0], sums[1], sums[2], sums[3]

    # Analytic correction: invalid slots contribute exactly 1e-7 to sum(Ysq)
    # and 0 to the diff / log sums.
    valid_count = bn * n_frames * n_bins
    pad_count = rows_pad * n_half - valid_count
    sum_diff_sq = s_x + s_y - 2.0 * s_xy
    sum_y_sq = s_y - float(np.float32(_CLAMP)) * pad_count
    sum_log_l1 = 0.5 * s_log
    return sum_diff_sq, sum_y_sq, sum_log_l1, valid_count


# ----------------------------------------------------------------------------
# Public entry point
# ----------------------------------------------------------------------------
def mrstft_loss(
    preds,
    target,
    *,
    input_scale=5.0,
    weight=1.0,
    fft_sizes=(64, 128, 32),
    hop_sizes=(16, 32, 8),
    win_lengths=(32, 64, 16),
    tm_max=2048,
    mxu_dtype=jnp.bfloat16,
):
    # NOTE: input_scale is NOT applied here; it is folded into the (linear)
    # STFT basis, saving two full-array elementwise passes.
    if preds.ndim == 4:
        # rearrange 'b t x c -> b (c x) t'
        b, t, x, c = preds.shape
        preds = jnp.transpose(preds, (0, 3, 2, 1)).reshape(b, c * x, t)
        target = jnp.transpose(target, (0, 3, 2, 1)).reshape(b, c * x, t)
    elif preds.ndim == 2:
        preds = preds[:, None, :]
        target = target[:, None, :]
    else:
        assert preds.ndim == 3, preds.shape

    B, C, T = preds.shape
    xs = preds.reshape(B * C, T).astype(mxu_dtype)
    ys = target.reshape(B * C, T).astype(mxu_dtype)

    sc_loss = 0.0
    mag_loss = 0.0
    for n_fft, hop, wl in zip(fft_sizes, hop_sizes, win_lengths):
        if T <= n_fft // 2:
            raise ValueError(
                f"signal length {T} too short for reflect padding with n_fft={n_fft}")
        d2, ysq, lsum, cnt = _stft_resolution_sums(
            xs, ys, n_fft, hop, wl,
            input_scale=input_scale, tm_max=tm_max, mxu_dtype=mxu_dtype)
        sc_loss = sc_loss + jnp.sqrt(jnp.maximum(d2, 0.0)) / jnp.sqrt(ysq)
        mag_loss = mag_loss + lsum / cnt

    n_res = float(len(fft_sizes))
    # MultiResolutionSTFTLoss: sum of the two resolution-averaged terms, * weight.
    return weight * (sc_loss / n_res + mag_loss / n_res)


# ----------------------------------------------------------------------------
if __name__ == "__main__":
    key = jax.random.PRNGKey(0)
    k1, k2 = jax.random.split(key)
    # 3-D input branch of MRSTFT.forward: (batch, channels, time)
    preds = jax.random.normal(k1, (2, 2, 256), dtype=jnp.float32)
    target = jax.random.normal(k2, (2, 2, 256), dtype=jnp.float32)

    fn = jax.jit(lambda p, t: mrstft_loss(
        p, t,
        input_scale=5.0, weight=1.0,
        fft_sizes=(64, 128, 32), hop_sizes=(16, 32, 8), win_lengths=(32, 64, 16),
    ))
    loss = jax.block_until_ready(fn(preds, target))
    assert loss.shape == () and bool(jnp.isfinite(loss))
    print("KERNEL_OK")
</pallas_src>

<mosaic_0001>
module attributes {stable_mosaic.version = 11 : i64} {
  func.func @_mrstft_tile_kernel(%arg0: i32, %arg1: memref<16x1xi32, #tpu.memory_space<vmem>>, %arg2: memref<8x512xi32, #tpu.memory_space<vmem>>, %arg3: memref<16x256xbf16, #tpu.memory_space<vmem>>, %arg4: memref<16x256xbf16, #tpu.memory_space<vmem>>, %arg5: memref<256x1024xbf16, #tpu.memory_space<vmem>>, %arg6: memref<1x8x512xf32, #tpu.memory_space<vmem>>) attributes {dimension_semantics = [#tpu.dimension_semantics<parallel>], iteration_bounds = array<i64: 1>, scalar_prefetch = 0 : i64, scratch_operands = 0 : i64, tpu.core_type = #tpu.core_type<tc>, window_params = [{transform_indices = @transform_0, window_bounds = array<i64: 16, 1>}, {pipeline_mode = #tpu.pipeline_mode<synchronous>, transform_indices = @transform_1, window_bounds = array<i64: 8, 512>}, {transform_indices = @transform_2, window_bounds = array<i64: 16, 256>}, {transform_indices = @transform_3, window_bounds = array<i64: 16, 256>}, {pipeline_mode = #tpu.pipeline_mode<synchronous>, transform_indices = @transform_4, window_bounds = array<i64: 256, 1024>}, {transform_indices = @transform_5, window_bounds = array<i64: 1, 8, 512>}]} {
    %c0 = arith.constant 0 : index
    %c0_0 = arith.constant 0 : index
    %0 = vector.load %arg5[%c0, %c0_0] : memref<256x1024xbf16, #tpu.memory_space<vmem>>, vector<256x1024xbf16>
    %c0_1 = arith.constant 0 : index
    %c0_2 = arith.constant 0 : index
    %1 = vector.load %arg2[%c0_1, %c0_2] : memref<8x512xi32, #tpu.memory_space<vmem>>, vector<1x512xi32>
    %c0_3 = arith.constant 0 : index
    %c0_4 = arith.constant 0 : index
    %2 = vector.load %arg3[%c0_3, %c0_4] : memref<16x256xbf16, #tpu.memory_space<vmem>>, vector<16x256xbf16>
    %c0_5 = arith.constant 0 : index
    %c0_6 = arith.constant 0 : index
    %3 = vector.load %arg4[%c0_5, %c0_6] : memref<16x256xbf16, #tpu.memory_space<vmem>>, vector<16x256xbf16>
    %4 = tpu.concatenate %2, %3 in 0 : vector<16x256xbf16>, vector<16x256xbf16> -> vector<32x256xbf16>
    %cst = arith.constant dense<0.000000e+00> : vector<32x1024xf32>
    %5 = tpu.matmul %4, %0, %cst {dimension_numbers = #tpu.dot_dimension_numbers<[1], [0], [0], [1], [0, 0, 1, 1], [], []>} : vector<32x256xbf16>, vector<256x1024xbf16>, vector<32x1024xf32> -> vector<32x1024xf32>
    %6 = vector.extract_strided_slice %5 {offsets = [0, 0], sizes = [16, 512], strides = [1, 1]} : vector<32x1024xf32> to vector<16x512xf32>
    %7 = vector.extract_strided_slice %5 {offsets = [0, 512], sizes = [16, 512], strides = [1, 1]} : vector<32x1024xf32> to vector<16x512xf32>
    %8 = vector.extract_strided_slice %5 {offsets = [16, 0], sizes = [16, 512], strides = [1, 1]} : vector<32x1024xf32> to vector<16x512xf32>
    %9 = vector.extract_strided_slice %5 {offsets = [16, 512], sizes = [16, 512], strides = [1, 1]} : vector<32x1024xf32> to vector<16x512xf32>
    %c0_7 = arith.constant 0 : index
    %c0_8 = arith.constant 0 : index
    %10 = vector.load %arg1[%c0_7, %c0_8] : memref<16x1xi32, #tpu.memory_space<vmem>>, vector<16x1xi32>
    %11 = vector.broadcast %1 : vector<1x512xi32> to vector<16x512xi32>
    %12 = vector.broadcast %10 : vector<16x1xi32> to vector<16x512xi32>
    %13 = arith.cmpi slt, %11, %12 : vector<16x512xi32>
    %14 = arith.mulf %6, %6 : vector<16x512xf32>
    %15 = arith.mulf %7, %7 : vector<16x512xf32>
    %16 = arith.addf %14, %15 : vector<16x512xf32>
    %cst_9 = arith.constant 1.000000e-07 : f32
    %17 = vector.broadcast %cst_9 : f32 to vector<16x512xf32>
    %18 = arith.maximumf %16, %17 : vector<16x512xf32>
    %cst_10 = arith.constant 1.000000e-07 : f32
    %19 = vector.broadcast %cst_10 : f32 to vector<16x512xf32>
    %20 = arith.select %13, %18, %19 : vector<16x512xi1>, vector<16x512xf32>
    %21 = arith.mulf %8, %8 : vector<16x512xf32>
    %22 = arith.mulf %9, %9 : vector<16x512xf32>
    %23 = arith.addf %21, %22 : vector<16x512xf32>
    %cst_11 = arith.constant 1.000000e-07 : f32
    %24 = vector.broadcast %cst_11 : f32 to vector<16x512xf32>
    %25 = arith.maximumf %23, %24 : vector<16x512xf32>
    %cst_12 = arith.constant 1.000000e-07 : f32
    %26 = vector.broadcast %cst_12 : f32 to vector<16x512xf32>
    %27 = arith.select %13, %25, %26 : vector<16x512xi1>, vector<16x512xf32>
    %cst_13 = arith.constant dense<0.000000e+00> : vector<512xf32>
    %28 = vector.multi_reduction <add>, %20, %cst_13 [0] : vector<16x512xf32> to vector<512xf32>
    %29 = vector.shape_cast %28 : vector<512xf32> to vector<1x512xf32>
    %cst_14 = arith.constant dense<0.000000e+00> : vector<512xf32>
    %30 = vector.multi_reduction <add>, %27, %cst_14 [0] : vector<16x512xf32> to vector<512xf32>
    %31 = vector.shape_cast %30 : vector<512xf32> to vector<1x512xf32>
    %32 = arith.mulf %20, %27 : vector<16x512xf32>
    %33 = math.sqrt %32 : vector<16x512xf32>
    %cst_15 = arith.constant dense<0.000000e+00> : vector<512xf32>
    %34 = vector.multi_reduction <add>, %33, %cst_15 [0] : vector<16x512xf32> to vector<512xf32>
    %35 = vector.shape_cast %34 : vector<512xf32> to vector<1x512xf32>
    %36 = math.log %27 : vector<16x512xf32>
    %37 = math.log %20 : vector<16x512xf32>
    %38 = arith.subf %36, %37 : vector<16x512xf32>
    %39 = math.absf %38 : vector<16x512xf32>
    %cst_16 = arith.constant dense<0.000000e+00> : vector<512xf32>
    %40 = vector.multi_reduction <add>, %39, %cst_16 [0] : vector<16x512xf32> to vector<512xf32>
    %41 = vector.shape_cast %40 : vector<512xf32> to vector<1x512xf32>
    %42 = tpu.iota {dimensions = array<i32: 0>} : vector<8x512xi32>
    %c0_i32 = arith.constant 0 : i32
    %43 = vector.broadcast %c0_i32 : i32 to vector<8x512xi32>
    %44 = arith.cmpi eq, %42, %43 : vector<8x512xi32>
    %cst_17 = arith.constant 0.000000e+00 : f32
    %45 = vector.shape_cast %29 : vector<1x512xf32> to vector<1x512xf32>
    %46 = vector.broadcast %45 : vector<1x512xf32> to vector<8x512xf32>
    %47 = vector.broadcast %cst_17 : f32 to vector<8x512xf32>
    %48 = arith.select %44, %46, %47 : vector<8x512xi1>, vector<8x512xf32>
    %c1_i32 = arith.constant 1 : i32
    %49 = vector.broadcast %c1_i32 : i32 to vector<8x512xi32>
    %50 = arith.cmpi eq, %42, %49 : vector<8x512xi32>
    %cst_18 = arith.constant 0.000000e+00 : f32
    %51 = vector.shape_cast %31 : vector<1x512xf32> to vector<1x512xf32>
    %52 = vector.broadcast %51 : vector<1x512xf32> to vector<8x512xf32>
    %53 = vector.broadcast %cst_18 : f32 to vector<8x512xf32>
    %54 = arith.select %50, %52, %53 : vector<8x512xi1>, vector<8x512xf32>
    %55 = arith.addf %48, %54 : vector<8x512xf32>
    %c2_i32 = arith.constant 2 : i32
    %56 = vector.broadcast %c2_i32 : i32 to vector<8x512xi32>
    %57 = arith.cmpi eq, %42, %56 : vector<8x512xi32>
    %cst_19 = arith.constant 0.000000e+00 : f32
    %58 = vector.shape_cast %35 : vector<1x512xf32> to vector<1x512xf32>
    %59 = vector.broadcast %58 : vector<1x512xf32> to vector<8x512xf32>
    %60 = vector.broadcast %cst_19 : f32 to vector<8x512xf32>
    %61 = arith.select %57, %59, %60 : vector<8x512xi1>, vector<8x512xf32>
    %62 = arith.addf %55, %61 : vector<8x512xf32>
    %c3_i32 = arith.constant 3 : i32
    %63 = vector.broadcast %c3_i32 : i32 to vector<8x512xi32>
    %64 = arith.cmpi eq, %42, %63 : vector<8x512xi32>
    %cst_20 = arith.constant 0.000000e+00 : f32
    %65 = vector.shape_cast %41 : vector<1x512xf32> to vector<1x512xf32>
    %66 = vector.broadcast %65 : vector<1x512xf32> to vector<8x512xf32>
    %67 = vector.broadcast %cst_20 : f32 to vector<8x512xf32>
    %68 = arith.select %64, %66, %67 : vector<8x512xi1>, vector<8x512xf32>
    %69 = arith.addf %62, %68 : vector<8x512xf32>
    %70 = vector.shape_cast %69 : vector<8x512xf32> to vector<1x8x512xf32>
    %c0_21 = arith.constant 0 : index
    %c0_22 = arith.constant 0 : index
    %c0_23 = arith.constant 0 : index
    %71 = vector.load %arg6[%c0_21, %c0_22, %c0_23] : memref<1x8x512xf32, #tpu.memory_space<vmem>>, vector<1x8x512xf32>
    tpu.vector_store %arg6[%c0_21, %c0_22, %c0_23], %70 {strides = array<i32>} : memref<1x8x512xf32, #tpu.memory_space<vmem>>, vector<1x8x512xf32>,
    return
  }
  func.func @transform_0(%arg0: i32) -> (i32, i32) {
    %c0_i32 = arith.constant 0 : i32
    %c0_i32_0 = arith.constant 0 : i32
    return %arg0, %c0_i32 : i32, i32
  }
  func.func @transform_1(%arg0: i32) -> (i32, i32) {
    %c0_i32 = arith.constant 0 : i32
    %c0_i32_0 = arith.constant 0 : i32
    %c0_i32_1 = arith.constant 0 : i32
    return %c0_i32, %c0_i32_0 : i32, i32
  }
  func.func @transform_2(%arg0: i32) -> (i32, i32) {
    %c0_i32 = arith.constant 0 : i32
    %c0_i32_0 = arith.constant 0 : i32
    return %arg0, %c0_i32 : i32, i32
  }
  func.func @transform_3(%arg0: i32) -> (i32, i32) {
    %c0_i32 = arith.constant 0 : i32
    %c0_i32_0 = arith.constant 0 : i32
    return %arg0, %c0_i32 : i32, i32
  }
  func.func @transform_4(%arg0: i32) -> (i32, i32) {
    %c0_i32 = arith.constant 0 : i32
    %c0_i32_0 = arith.constant 0 : i32
    %c0_i32_1 = arith.constant 0 : i32
    return %c0_i32, %c0_i32_0 : i32, i32
  }
  func.func @transform_5(%arg0: i32) -> (i32, i32, i32) {
    %c0_i32 = arith.constant 0 : i32
    %c0_i32_0 = arith.constant 0 : i32
    %c0_i32_1 = arith.constant 0 : i32
    return %arg0, %c0_i32, %c0_i32_0 : i32, i32, i32
  }
}

module attributes {stable_mosaic.version = 11 : i64} {
  func.func @_mrstft_tile_kernel(%arg0: i32, %arg1: memref<16x1xi32, #tpu.memory_space<vmem>>, %arg2: memref<8x384xi32, #tpu.memory_space<vmem>>, %arg3: memref<16x256xbf16, #tpu.memory_space<vmem>>, %arg4: memref<16x256xbf16, #tpu.memory_space<vmem>>, %arg5: memref<256x768xbf16, #tpu.memory_space<vmem>>, %arg6: memref<1x8x384xf32, #tpu.memory_space<vmem>>) attributes {dimension_semantics = [#tpu.dimension_semantics<parallel>], iteration_bounds = array<i64: 1>, scalar_prefetch = 0 : i64, scratch_operands = 0 : i64, tpu.core_type = #tpu.core_type<tc>, window_params = [{transform_indices = @transform_0, window_bounds = array<i64: 16, 1>}, {pipeline_mode = #tpu.pipeline_mode<synchronous>, transform_indices = @transform_1, window_bounds = array<i64: 8, 384>}, {transform_indices = @transform_2, window_bounds = array<i64: 16, 256>}, {transform_indices = @transform_3, window_bounds = array<i64: 16, 256>}, {pipeline_mode = #tpu.pipeline_mode<synchronous>, transform_indices = @transform_4, window_bounds = array<i64: 256, 768>}, {transform_indices = @transform_5, window_bounds = array<i64: 1, 8, 384>}]} {
    %c0 = arith.constant 0 : index
    %c0_0 = arith.constant 0 : index
    %0 = vector.load %arg5[%c0, %c0_0] : memref<256x768xbf16, #tpu.memory_space<vmem>>, vector<256x768xbf16>
    %c0_1 = arith.constant 0 : index
    %c0_2 = arith.constant 0 : index
    %1 = vector.load %arg2[%c0_1, %c0_2] : memref<8x384xi32, #tpu.memory_space<vmem>>, vector<1x384xi32>
    %c0_3 = arith.constant 0 : index
    %c0_4 = arith.constant 0 : index
    %2 = vector.load %arg3[%c0_3, %c0_4] : memref<16x256xbf16, #tpu.memory_space<vmem>>, vector<16x256xbf16>
    %c0_5 = arith.constant 0 : index
    %c0_6 = arith.constant 0 : index
    %3 = vector.load %arg4[%c0_5, %c0_6] : memref<16x256xbf16, #tpu.memory_space<vmem>>, vector<16x256xbf16>
    %4 = tpu.concatenate %2, %3 in 0 : vector<16x256xbf16>, vector<16x256xbf16> -> vector<32x256xbf16>
    %cst = arith.constant dense<0.000000e+00> : vector<32x768xf32>
    %5 = tpu.matmul %4, %0, %cst {dimension_numbers = #tpu.dot_dimension_numbers<[1], [0], [0], [1], [0, 0, 1, 1], [], []>} : vector<32x256xbf16>, vector<256x768xbf16>, vector<32x768xf32> -> vector<32x768xf32>
    %6 = vector.extract_strided_slice %5 {offsets = [0, 0], sizes = [16, 384], strides = [1, 1]} : vector<32x768xf32> to vector<16x384xf32>
    %7 = vector.extract_strided_slice %5 {offsets = [0, 384], sizes = [16, 384], strides = [1, 1]} : vector<32x768xf32> to vector<16x384xf32>
    %8 = vector.extract_strided_slice %5 {offsets = [16, 0], sizes = [16, 384], strides = [1, 1]} : vector<32x768xf32> to vector<16x384xf32>
    %9 = vector.extract_strided_slice %5 {offsets = [16, 384], sizes = [16, 384], strides = [1, 1]} : vector<32x768xf32> to vector<16x384xf32>
    %c0_7 = arith.constant 0 : index
    %c0_8 = arith.constant 0 : index
    %10 = vector.load %arg1[%c0_7, %c0_8] : memref<16x1xi32, #tpu.memory_space<vmem>>, vector<16x1xi32>
    %11 = vector.broadcast %1 : vector<1x384xi32> to vector<16x384xi32>
    %12 = vector.broadcast %10 : vector<16x1xi32> to vector<16x384xi32>
    %13 = arith.cmpi slt, %11, %12 : vector<16x384xi32>
    %14 = arith.mulf %6, %6 : vector<16x384xf32>
    %15 = arith.mulf %7, %7 : vector<16x384xf32>
    %16 = arith.addf %14, %15 : vector<16x384xf32>
    %cst_9 = arith.constant 1.000000e-07 : f32
    %17 = vector.broadcast %cst_9 : f32 to vector<16x384xf32>
    %18 = arith.maximumf %16, %17 : vector<16x384xf32>
    %cst_10 = arith.constant 1.000000e-07 : f32
    %19 = vector.broadcast %cst_10 : f32 to vector<16x384xf32>
    %20 = arith.select %13, %18, %19 : vector<16x384xi1>, vector<16x384xf32>
    %21 = arith.mulf %8, %8 : vector<16x384xf32>
    %22 = arith.mulf %9, %9 : vector<16x384xf32>
    %23 = arith.addf %21, %22 : vector<16x384xf32>
    %cst_11 = arith.constant 1.000000e-07 : f32
    %24 = vector.broadcast %cst_11 : f32 to vector<16x384xf32>
    %25 = arith.maximumf %23, %24 : vector<16x384xf32>
    %cst_12 = arith.constant 1.000000e-07 : f32
    %26 = vector.broadcast %cst_12 : f32 to vector<16x384xf32>
    %27 = arith.select %13, %25, %26 : vector<16x384xi1>, vector<16x384xf32>
    %cst_13 = arith.constant dense<0.000000e+00> : vector<384xf32>
    %28 = vector.multi_reduction <add>, %20, %cst_13 [0] : vector<16x384xf32> to vector<384xf32>
    %29 = vector.shape_cast %28 : vector<384xf32> to vector<1x384xf32>
    %cst_14 = arith.constant dense<0.000000e+00> : vector<384xf32>
    %30 = vector.multi_reduction <add>, %27, %cst_14 [0] : vector<16x384xf32> to vector<384xf32>
    %31 = vector.shape_cast %30 : vector<384xf32> to vector<1x384xf32>
    %32 = arith.mulf %20, %27 : vector<16x384xf32>
    %33 = math.sqrt %32 : vector<16x384xf32>
    %cst_15 = arith.constant dense<0.000000e+00> : vector<384xf32>
    %34 = vector.multi_reduction <add>, %33, %cst_15 [0] : vector<16x384xf32> to vector<384xf32>
    %35 = vector.shape_cast %34 : vector<384xf32> to vector<1x384xf32>
    %36 = math.log %27 : vector<16x384xf32>
    %37 = math.log %20 : vector<16x384xf32>
    %38 = arith.subf %36, %37 : vector<16x384xf32>
    %39 = math.absf %38 : vector<16x384xf32>
    %cst_16 = arith.constant dense<0.000000e+00> : vector<384xf32>
    %40 = vector.multi_reduction <add>, %39, %cst_16 [0] : vector<16x384xf32> to vector<384xf32>
    %41 = vector.shape_cast %40 : vector<384xf32> to vector<1x384xf32>
    %42 = tpu.iota {dimensions = array<i32: 0>} : vector<8x384xi32>
    %c0_i32 = arith.constant 0 : i32
    %43 = vector.broadcast %c0_i32 : i32 to vector<8x384xi32>
    %44 = arith.cmpi eq, %42, %43 : vector<8x384xi32>
    %cst_17 = arith.constant 0.000000e+00 : f32
    %45 = vector.shape_cast %29 : vector<1x384xf32> to vector<1x384xf32>
    %46 = vector.broadcast %45 : vector<1x384xf32> to vector<8x384xf32>
    %47 = vector.broadcast %cst_17 : f32 to vector<8x384xf32>
    %48 = arith.select %44, %46, %47 : vector<8x384xi1>, vector<8x384xf32>
    %c1_i32 = arith.constant 1 : i32
    %49 = vector.broadcast %c1_i32 : i32 to vector<8x384xi32>
    %50 = arith.cmpi eq, %42, %49 : vector<8x384xi32>
    %cst_18 = arith.constant 0.000000e+00 : f32
    %51 = vector.shape_cast %31 : vector<1x384xf32> to vector<1x384xf32>
    %52 = vector.broadcast %51 : vector<1x384xf32> to vector<8x384xf32>
    %53 = vector.broadcast %cst_18 : f32 to vector<8x384xf32>
    %54 = arith.select %50, %52, %53 : vector<8x384xi1>, vector<8x384xf32>
    %55 = arith.addf %48, %54 : vector<8x384xf32>
    %c2_i32 = arith.constant 2 : i32
    %56 = vector.broadcast %c2_i32 : i32 to vector<8x384xi32>
    %57 = arith.cmpi eq, %42, %56 : vector<8x384xi32>
    %cst_19 = arith.constant 0.000000e+00 : f32
    %58 = vector.shape_cast %35 : vector<1x384xf32> to vector<1x384xf32>
    %59 = vector.broadcast %58 : vector<1x384xf32> to vector<8x384xf32>
    %60 = vector.broadcast %cst_19 : f32 to vector<8x384xf32>
    %61 = arith.select %57, %59, %60 : vector<8x384xi1>, vector<8x384xf32>
    %62 = arith.addf %55, %61 : vector<8x384xf32>
    %c3_i32 = arith.constant 3 : i32
    %63 = vector.broadcast %c3_i32 : i32 to vector<8x384xi32>
    %64 = arith.cmpi eq, %42, %63 : vector<8x384xi32>
    %cst_20 = arith.constant 0.000000e+00 : f32
    %65 = vector.shape_cast %41 : vector<1x384xf32> to vector<1x384xf32>
    %66 = vector.broadcast %65 : vector<1x384xf32> to vector<8x384xf32>
    %67 = vector.broadcast %cst_20 : f32 to vector<8x384xf32>
    %68 = arith.select %64, %66, %67 : vector<8x384xi1>, vector<8x384xf32>
    %69 = arith.addf %62, %68 : vector<8x384xf32>
    %70 = vector.shape_cast %69 : vector<8x384xf32> to vector<1x8x384xf32>
    %c0_21 = arith.constant 0 : index
    %c0_22 = arith.constant 0 : index
    %c0_23 = arith.constant 0 : index
    %71 = vector.load %arg6[%c0_21, %c0_22, %c0_23] : memref<1x8x384xf32, #tpu.memory_space<vmem>>, vector<1x8x384xf32>
    tpu.vector_store %arg6[%c0_21, %c0_22, %c0_23], %70 {strides = array<i32>} : memref<1x8x384xf32, #tpu.memory_space<vmem>>, vector<1x8x384xf32>,
    return
  }
  func.func @transform_0(%arg0: i32) -> (i32, i32) {
    %c0_i32 = arith.constant 0 : i32
    %c0_i32_0 = arith.constant 0 : i32
    return %arg0, %c0_i32 : i32, i32
  }
  func.func @transform_1(%arg0: i32) -> (i32, i32) {
    %c0_i32 = arith.constant 0 : i32
    %c0_i32_0 = arith.constant 0 : i32
    %c0_i32_1 = arith.constant 0 : i32
    return %c0_i32, %c0_i32_0 : i32, i32
  }
  func.func @transform_2(%arg0: i32) -> (i32, i32) {
    %c0_i32 = arith.constant 0 : i32
    %c0_i32_0 = arith.constant 0 : i32
    return %arg0, %c0_i32 : i32, i32
  }
  func.func @transform_3(%arg0: i32) -> (i32, i32) {
    %c0_i32 = arith.constant 0 : i32
    %c0_i32_0 = arith.constant 0 : i32
    return %arg0, %c0_i32 : i32, i32
  }
  func.func @transform_4(%arg0: i32) -> (i32, i32) {
    %c0_i32 = arith.constant 0 : i32
    %c0_i32_0 = arith.constant 0 : i32
    %c0_i32_1 = arith.constant 0 : i32
    return %c0_i32, %c0_i32_0 : i32, i32
  }
  func.func @transform_5(%arg0: i32) -> (i32, i32, i32) {
    %c0_i32 = arith.constant 0 : i32
    %c0_i32_0 = arith.constant 0 : i32
    %c0_i32_1 = arith.constant 0 : i32
    return %arg0, %c0_i32, %c0_i32_0 : i32, i32, i32
  }
}

</mosaic_0001>

<bundles_post_ra>
// kernel: _lambda_.3
= control target key start
LH: loop header
LB: loop body
LE: loop exit
PB: predicated region body
PF: predicated region fallthrough
CT: control target
= control target key end

     0   :  { %10 = vsyncpa [#allocation3], 0  ;;  %s2279_s21 = smov [#allocation2]   ;;  %s2280_s23 = smov 512   ;;  %s2758_s0 = inlined_call_operand.vmem [shape: s32[16,1], index: 0, kind: input, shape index: {}]   ;;  %s2759_s1 = inlined_call_operand.vmem [shape: s32[8,512], index: 1, kind: input, shape index: {}]   ;;  %s2760_s2 = inlined_call_operand.vmem [shape: bf16[16,256], index: 2, kind: input, shape index: {}]   ;;  %s2761_s3 = inlined_call_operand.vmem [shape: bf16[16,256], index: 3, kind: input, shape index: {}]   ;;  %s2762_s4 = inlined_call_operand.hbm [shape: bf16[256,1024], index: 4, kind: input, shape index: {}]   ;;  %s2763_s5 = inlined_call_operand.vmem [shape: f32[1,8,512], index: 5, kind: output, shape index: {}]  }
   0x1   :  { %s23_s20 = sshll.u32 %s2762_s4, 4  ;;  %s25_s22 = sshll.u32 %s2279_s21, 4  ;;  %s24_s20 = int_to_ptr.hbm [resolvable:$true] %s23_s20  ;;  %s26_s22 = int_to_ptr.vmem [resolvable:$true] %s25_s22 }
   0x2   :  { %s2281_s24 = smov 32  }
   0x3   :  { %31 = dma.hbm_to_vmem [thread:$0]  %s24_s20, 16384, %s26_s22, [#allocation3], %s2280_s23, %s2280_s23, %s2281_s24  }
   0x4   :  { %2277 = dma.done.wait [#allocation3], 16384  }
   0x5   :  { %2278 = vsyncadd [#allocation3], 4294950912  ;;  %v1782_v0 = vld [vmem:[#allocation2 + $0x1c0] sm:$0xf]  ;;  %v2124_v5 = vld [vmem:[#allocation2 + $0x1c4] sm:$0xf] }
   0x6   :  { %v2128_v1 = vld [vmem:[#allocation2 + $0x1dc] sm:$0xf0]  ;;  %v1784_v6 = vld [vmem:[#allocation2 + $0x1e0] sm:$0xf0] }
   0x7   :  { %v2038_v2 = vld [vmem:[#allocation2 + $0x3c0] sm:$0xf]  ;;  %v1783_v3 = vor.u32 %v2128_v1, %v1782_v0  ;;  %v1787_v8 = vor.u32 %v2124_v5, %v1784_v6  ;;  %v2188_v9 = vld [vmem:[#allocation2 + $0x3c4] sm:$0xf] }
   0x8   :  { %v2192_v4 = vld [vmem:[#allocation2 + $0x3dc] sm:$0xf0]  ;;  %v2040_v10 = vld [vmem:[#allocation2 + $0x3e0] sm:$0xf0] }
   0x9   :  { %v2039_v7 = vor.u32 %v2192_v4, %v2038_v2  ;;  %v1750_v11 = vld [vmem:[#allocation2 + $0x180] sm:$0xf]  ;;  %829 = vmatpush.bf16.msra.mxu0 %v1783_v3  ;;  %v2043_v12 = vor.u32 %v2188_v9, %v2040_v10  ;;  %867 = vmatpush.bf16.msra.mxu2 %v1787_v8  ;;  %v2116_v18 = vld [vmem:[#allocation2 + $0x184] sm:$0xf] }
   0xa   :  { %v2120_v13 = vld [vmem:[#allocation2 + $0x19c] sm:$0xf0]  ;;  %v1752_v19 = vld [vmem:[#allocation2 + $0x1a0] sm:$0xf0] }
   0xb   :  { %v2006_v14 = vld [vmem:[#allocation2 + $0x380] sm:$0xf]  ;;  %848 = vmatpush.bf16.msra.mxu1 %v2039_v7  ;;  %v1751_v16 = vor.u32 %v2120_v13, %v1750_v11  ;;  %v2180_v20 = vld [vmem:[#allocation2 + $0x384] sm:$0xf]  ;;  %886 = vmatpush.bf16.msra.mxu3 %v2043_v12  ;;  %v1755_v21 = vor.u32 %v2116_v18, %v1752_v19 }
   0xc   :  { %v2184_v15 = vld [vmem:[#allocation2 + $0x39c] sm:$0xf0]  ;;  %v2008_v22 = vld [vmem:[#allocation2 + $0x3a0] sm:$0xf0] }
   0xd   :  { %v2007_v17 = vor.u32 %v2184_v15, %v2006_v14  ;;  %v1718_v23 = vld [vmem:[#allocation2 + $0x140] sm:$0xf]  ;;  %v2011_v25 = vor.u32 %v2180_v20, %v2008_v22  ;;  %v2108_v28 = vld [vmem:[#allocation2 + $0x144] sm:$0xf]  ;;  %830 = vmatpush.bf16.msra.mxu0 %v1751_v16  ;;  %868 = vmatpush.bf16.msra.mxu2 %v1755_v21 }
   0xe   :  { %v2112_v24 = vld [vmem:[#allocation2 + $0x15c] sm:$0xf0]  ;;  %v1720_v30 = vld [vmem:[#allocation2 + $0x160] sm:$0xf0] }
   0xf   :  { %v1974_v26 = vld [vmem:[#allocation2 + $0x340] sm:$0xf]  ;;  %v1719_v29 = vor.u32 %v2112_v24, %v1718_v23  ;;  %v2172_v31 = vld [vmem:[#allocation2 + $0x344] sm:$0xf]  ;;  %849 = vmatpush.bf16.msra.mxu1 %v2007_v17  ;;  %v1723_v34 = vor.u32 %v2108_v28, %v1720_v30  ;;  %887 = vmatpush.bf16.msra.mxu3 %v2011_v25  ;;  %v1792_v30 = vld [vmem:[#allocation2 + $0x1e8] sm:$0xf0] }
  0x10   :  { %v2176_v27 = vld [vmem:[#allocation2 + $0x35c] sm:$0xf0]  ;;  %v1976_v32 = vld [vmem:[#allocation2 + $0x360] sm:$0xf0] }
  0x11   :  { %v1975_v33 = vor.u32 %v2176_v27, %v1974_v26  ;;  %v1686_v35 = vld [vmem:[#allocation2 + $0x100] sm:$0xf]  ;;  %v1979_v38 = vor.u32 %v2172_v31, %v1976_v32  ;;  %v2100_v40 = vld [vmem:[#allocation2 + $0x104] sm:$0xf]  ;;  %831 = vmatpush.bf16.msra.mxu0 %v1719_v29  ;;  %869 = vmatpush.bf16.msra.mxu2 %v1723_v34  ;;  %v2125_v29 = vld [vmem:[#allocation2 + $0x1cc] sm:$0xf] }
  0x12   :  { %v2104_v36 = vld [vmem:[#allocation2 + $0x11c] sm:$0xf0]  ;;  %v1688_v41 = vld [vmem:[#allocation2 + $0x120] sm:$0xf0]  ;;  %v2197_v32 = vld [vmem:[%s2760_s2 + $0x4] sm:$0xf0] }
  0x13   :  { %v1942_v37 = vld [vmem:[#allocation2 + $0x300] sm:$0xf]  ;;  %v2164_v42 = vld [vmem:[#allocation2 + $0x304] sm:$0xf]  ;;  %v1687_v44 = vor.u32 %v2104_v36, %v1686_v35  ;;  %850 = vmatpush.bf16.msra.mxu1 %v1975_v33  ;;  %v1691_v46 = vor.u32 %v2100_v40, %v1688_v41  ;;  %888 = vmatpush.bf16.msra.mxu3 %v1979_v38  ;;  %v2189_v33 = vld [vmem:[#allocation2 + $0x3cc] sm:$0xf]  ;;  %v1795_v40 = vor.u32 %v2125_v29, %v1792_v30 }
  0x14   :  { %v2168_v39 = vld [vmem:[#allocation2 + $0x31c] sm:$0xf0]  ;;  %v1944_v43 = vld [vmem:[#allocation2 + $0x320] sm:$0xf0]  ;;  %v2048_v34 = vld [vmem:[#allocation2 + $0x3e8] sm:$0xf0] }
  0x15   :  { %v1943_v45 = vor.u32 %v2168_v39, %v1942_v37  ;;  %v1654_v47 = vld [vmem:[#allocation2 + $0xc0] sm:$0xf]  ;;  %v1947_v50 = vor.u32 %v2164_v42, %v1944_v43  ;;  %v2092_v52 = vld [vmem:[#allocation2 + $0xc4] sm:$0xf]  ;;  %832 = vmatpush.bf16.msra.mxu0 %v1687_v44  ;;  %870 = vmatpush.bf16.msra.mxu2 %v1691_v46  ;;  %v1544_v38 = vld [vmem:[%s2760_s2 + $0x8] sm:$0xf0] }
  0x16   :  { %v2096_v48 = vld [vmem:[#allocation2 + $0xdc] sm:$0xf0]  ;;  %v1656_v53 = vld [vmem:[#allocation2 + $0xe0] sm:$0xf0]  ;;  %v1790_v41 = vld [vmem:[#allocation2 + $0x1c8] sm:$0xf] }
  0x17   :  { %v1910_v49 = vld [vmem:[#allocation2 + $0x2c0] sm:$0xf]  ;;  %v2156_v54 = vld [vmem:[#allocation2 + $0x2c4] sm:$0xf]  ;;  %v1655_v56 = vor.u32 %v2096_v48, %v1654_v47  ;;  %851 = vmatpush.bf16.msra.mxu1 %v1943_v45  ;;  %v1659_v58 = vor.u32 %v2092_v52, %v1656_v53  ;;  %889 = vmatpush.bf16.msra.mxu3 %v1947_v50  ;;  %v2129_v42 = vld [vmem:[#allocation2 + $0x1e4] sm:$0xf0]  ;;  %v2051_v45 = vor.u32 %v2189_v33, %v2048_v34 }
  0x18   :  { %v2160_v51 = vld [vmem:[#allocation2 + $0x2dc] sm:$0xf0]  ;;  %v1912_v55 = vld [vmem:[#allocation2 + $0x2e0] sm:$0xf0]  ;;  %v2046_v43 = vld [vmem:[#allocation2 + $0x3c8] sm:$0xf]  ;;  %v1791_v52 = vor.u32 %v2129_v42, %v1790_v41 }
  0x19   :  { %v1911_v57 = vor.u32 %v2160_v51, %v1910_v49  ;;  %v1622_v59 = vld [vmem:[#allocation2 + $0x80] sm:$0xf]  ;;  %v1915_v62 = vor.u32 %v2156_v54, %v1912_v55  ;;  %v2084_v0 = vld [vmem:[#allocation2 + $0x84] sm:$0xf]  ;;  %833 = vmatpush.bf16.msra.mxu0 %v1655_v56  ;;  %871 = vmatpush.bf16.msra.mxu2 %v1659_v58  ;;  %v2193_v46 = vld [vmem:[#allocation2 + $0x3e4] sm:$0xf0] }
  0x1a   :  { %v2088_v60 = vld [vmem:[#allocation2 + $0x9c] sm:$0xf0]  ;;  %v1624_v1 = vld [vmem:[#allocation2 + $0xa0] sm:$0xf0]  ;;  %v2117_v47 = vld [vmem:[#allocation2 + $0x18c] sm:$0xf]  ;;  %v2047_v53 = vor.u32 %v2193_v46, %v2046_v43 }
  0x1b   :  { %v1878_v61 = vld [vmem:[#allocation2 + $0x280] sm:$0xf]  ;;  %v2148_v2 = vld [vmem:[#allocation2 + $0x284] sm:$0xf]  ;;  %v1623_v4 = vor.u32 %v2088_v60, %v1622_v59  ;;  %852 = vmatpush.bf16.msra.mxu1 %v1911_v57  ;;  %v1627_v6 = vor.u32 %v2084_v0, %v1624_v1  ;;  %890 = vmatpush.bf16.msra.mxu3 %v1915_v62  ;;  %v1760_v48 = vld [vmem:[#allocation2 + $0x1a8] sm:$0xf0] }
  0x1c   :  { %v2152_v63 = vld [vmem:[#allocation2 + $0x29c] sm:$0xf0]  ;;  %v1880_v3 = vld [vmem:[#allocation2 + $0x2a0] sm:$0xf0]  ;;  %v2181_v50 = vld [vmem:[#allocation2 + $0x38c] sm:$0xf]  ;;  %v1763_v54 = vor.u32 %v2117_v47, %v1760_v48 }
  0x1d   :  { %v1879_v5 = vor.u32 %v2152_v63, %v1878_v61  ;;  %v1590_v7 = vld [vmem:[#allocation2 + $0x40] sm:$0xf]  ;;  %v1883_v10 = vor.u32 %v2148_v2, %v1880_v3  ;;  %v2076_v12 = vld [vmem:[#allocation2 + $0x44] sm:$0xf]  ;;  %834 = vmatpush.bf16.msra.mxu0 %v1623_v4  ;;  %872 = vmatpush.bf16.msra.mxu2 %v1627_v6  ;;  %v2016_v51 = vld [vmem:[#allocation2 + $0x3a8] sm:$0xf0] }
  0x1e   :  { %v2080_v8 = vld [vmem:[#allocation2 + $0x5c] sm:$0xf0]  ;;  %v1592_v13 = vld [vmem:[#allocation2 + $0x60] sm:$0xf0]  ;;  %v1758_v55 = vld [vmem:[#allocation2 + $0x188] sm:$0xf]  ;;  %v2019_v58 = vor.u32 %v2181_v50, %v2016_v51 }
  0x1f   :  { %v1846_v9 = vld [vmem:[#allocation2 + $0x240] sm:$0xf]  ;;  %v2140_v14 = vld [vmem:[#allocation2 + $0x244] sm:$0xf]  ;;  %v1591_v16 = vor.u32 %v2080_v8, %v1590_v7  ;;  %853 = vmatpush.bf16.msra.mxu1 %v1879_v5  ;;  %v1595_v20 = vor.u32 %v2076_v12, %v1592_v13  ;;  %891 = vmatpush.bf16.msra.mxu3 %v1883_v10  ;;  %v2121_v56 = vld [vmem:[#allocation2 + $0x1a4] sm:$0xf0] }
  0x20   :  { %v2144_v11 = vld [vmem:[#allocation2 + $0x25c] sm:$0xf0]  ;;  %v1848_v15 = vld [vmem:[#allocation2 + $0x260] sm:$0xf0]  ;;  %v2014_v57 = vld [vmem:[#allocation2 + $0x388] sm:$0xf]  ;;  %v1759_v0 = vor.u32 %v2121_v56, %v1758_v55 }
  0x21   :  { %v1558_v17 = vld [vmem:[#allocation2] sm:$0xf]  ;;  %v1847_v19 = vor.u32 %v2144_v11, %v1846_v9  ;;  %v2068_v23 = vld [vmem:[#allocation2 + $0x4] sm:$0xf]  ;;  %v1851_v24 = vor.u32 %v2140_v14, %v1848_v15  ;;  %835 = vmatpush.bf16.msra.mxu0 %v1591_v16  ;;  %873 = vmatpush.bf16.msra.mxu2 %v1595_v20  ;;  %v2185_v59 = vld [vmem:[#allocation2 + $0x3a4] sm:$0xf0] }
  0x22   :  { %v2072_v18 = vld [vmem:[#allocation2 + $0x1c] sm:$0xf0]  ;;  %v1560_v25 = vld [vmem:[#allocation2 + $0x20] sm:$0xf0]  ;;  %v2109_v60 = vld [vmem:[#allocation2 + $0x14c] sm:$0xf]  ;;  %v2015_v1 = vor.u32 %v2185_v59, %v2014_v57 }
  0x23   :  { %v1814_v21 = vld [vmem:[#allocation2 + $0x200] sm:$0xf]  ;;  %v2132_v26 = vld [vmem:[#allocation2 + $0x204] sm:$0xf]  ;;  %v1559_v31 = vor.u32 %v2072_v18, %v1558_v17  ;;  %854 = vmatpush.bf16.msra.mxu1 %v1847_v19  ;;  %v1563_v36 = vor.u32 %v2068_v23, %v1560_v25  ;;  %892 = vmatpush.bf16.msra.mxu3 %v1851_v24  ;;  %v1728_v61 = vld [vmem:[#allocation2 + $0x168] sm:$0xf0] }
  0x24   :  { %v2136_v22 = vld [vmem:[#allocation2 + $0x21c] sm:$0xf0]  ;;  %v1816_v27 = vld [vmem:[#allocation2 + $0x220] sm:$0xf0]  ;;  %v2173_v62 = vld [vmem:[#allocation2 + $0x34c] sm:$0xf]  ;;  %v1731_v2 = vor.u32 %v2109_v60, %v1728_v61 }
  0x25   :  { %v1542_v28 = vld [vmem:[%s2760_s2] sm:$0xf]  ;;  %v1815_v35 = vor.u32 %v2136_v22, %v1814_v21  ;;  %v2196_v37 = vld [vmem:[%s2760_s2 + $0x4] sm:$0xf]  ;;  %v1819_v39 = vor.u32 %v2132_v26, %v1816_v27  ;;  %836 = vmatpush.bf16.msra.mxu0 %v1559_v31  ;;  %874 = vmatpush.bf16.msra.mxu2 %v1563_v36  ;;  %v1984_v63 = vld [vmem:[#allocation2 + $0x368] sm:$0xf0] }
  0x26   :  { %v2328_v44 = vor.u32 %v2197_v32, %v1542_v28  ;;  %v2330_v49 = vor.u32 %v2196_v37, %v1544_v38  ;;  %v1726_v3 = vld [vmem:[#allocation2 + $0x148] sm:$0xf]  ;;  %v1987_v6 = vor.u32 %v2173_v62, %v1984_v63  ;;  %v2101_v8 = vld [vmem:[#allocation2 + $0x10c] sm:$0xf]  ;;  %v1550_v20 = vld [vmem:[%s2761_s3] sm:$0xf] }
  0x27   :  { %855 = vmatpush.bf16.msra.mxu1 %v1815_v35  ;;  %893 = vmatpush.bf16.msra.mxu3 %v1819_v39  ;;  %v2113_v4 = vld [vmem:[#allocation2 + $0x164] sm:$0xf0]  ;;  %v1696_v9 = vld [vmem:[#allocation2 + $0x128] sm:$0xf0]  ;;  %v2198_v27 = vld [vmem:[%s2761_s3 + $0x4] sm:$0xf] }
  0x28   :  { %837 = vmatmul.bf16.vlgmr.msra.gmra.mxu0 %v2328_v44  ;;  %875 = vmatmul.bf16.vlgmr.msra.gmra.mxu2 %v2328_v44  ;;  %v1982_v5 = vld [vmem:[#allocation2 + $0x348] sm:$0xf]  ;;  %v2165_v10 = vld [vmem:[#allocation2 + $0x30c] sm:$0xf]  ;;  %v1727_v12 = vor.u32 %v2113_v4, %v1726_v3  ;;  %v1699_v15 = vor.u32 %v2101_v8, %v1696_v9  ;;  %v2126_v4 = vld [vmem:[#allocation2 + $0x1d4] sm:$0xf] }
  0x29   :  { %943 = vmatpush.bf16.msrb.mxu2 %v1795_v40  ;;  %905 = vmatpush.bf16.msrb.mxu0 %v1791_v52  ;;  %v2177_v7 = vld [vmem:[#allocation2 + $0x364] sm:$0xf0]  ;;  %v1952_v11 = vld [vmem:[#allocation2 + $0x328] sm:$0xf0]  ;;  %v2190_v8 = vld [vmem:[#allocation2 + $0x3d4] sm:$0xf] }
  0x2a   :  { %856 = vmatmul.bf16.vlgmr.msra.gmra.mxu1 %v2330_v49  ;;  %894 = vmatmul.bf16.vlgmr.msra.gmra.mxu3 %v2330_v49  ;;  %v1694_v13 = vld [vmem:[#allocation2 + $0x108] sm:$0xf]  ;;  %v1983_v14 = vor.u32 %v2177_v7, %v1982_v5  ;;  %v1955_v19 = vor.u32 %v2165_v10, %v1952_v11  ;;  %v2093_v21 = vld [vmem:[#allocation2 + $0xcc] sm:$0xf]  ;;  %v1800_v5 = vld [vmem:[#allocation2 + $0x1f0] sm:$0xf0] }
  0x2b   :  { %962 = vmatpush.bf16.msrb.mxu3 %v2051_v45  ;;  %924 = vmatpush.bf16.msrb.mxu1 %v2047_v53  ;;  %v2105_v16 = vld [vmem:[#allocation2 + $0x124] sm:$0xf0]  ;;  %v1664_v22 = vld [vmem:[#allocation2 + $0xe8] sm:$0xf0]  ;;  %v2056_v9 = vld [vmem:[#allocation2 + $0x3f0] sm:$0xf0] }
  0x2c   :  { %v1950_v17 = vld [vmem:[#allocation2 + $0x308] sm:$0xf]  ;;  %v2157_v24 = vld [vmem:[#allocation2 + $0x2cc] sm:$0xf]  ;;  %v1695_v26 = vor.u32 %v2105_v16, %v1694_v13  ;;  %v1667_v30 = vor.u32 %v2093_v21, %v1664_v22  ;;  %v1803_v16 = vor.u32 %v2126_v4, %v1800_v5  ;;  %v2194_v21 = vld [vmem:[#allocation2 + $0x3ec] sm:$0xf0] }
  0x2d   :  { %944 = vmatpush.bf16.msrb.mxu2 %v1763_v54  ;;  %906 = vmatpush.bf16.msrb.mxu0 %v1759_v0  ;;  %v2169_v18 = vld [vmem:[#allocation2 + $0x324] sm:$0xf0]  ;;  %v1920_v25 = vld [vmem:[#allocation2 + $0x2e8] sm:$0xf0]  ;;  %v2118_v22 = vld [vmem:[#allocation2 + $0x194] sm:$0xf] }
  0x2e   :  { %v2199_v23 = vld [vmem:[%s2761_s3 + $0x4] sm:$0xf0]  ;;  %v1552_v28 = vld [vmem:[%s2761_s3 + $0x8] sm:$0xf0]  ;;  %v1951_v29 = vor.u32 %v2169_v18, %v1950_v17  ;;  %v1923_v35 = vor.u32 %v2157_v24, %v1920_v25  ;;  %v1798_v17 = vld [vmem:[#allocation2 + $0x1d0] sm:$0xf] }
  0x2f   :  { %963 = vmatpush.bf16.msrb.mxu3 %v2019_v58  ;;  %925 = vmatpush.bf16.msrb.mxu1 %v2015_v1  ;;  %v1662_v31 = vld [vmem:[#allocation2 + $0xc8] sm:$0xf]  ;;  %v2348_v34 = vor.u32 %v2199_v23, %v1550_v20  ;;  %v2085_v37 = vld [vmem:[#allocation2 + $0x8c] sm:$0xf]  ;;  %v2350_v39 = vor.u32 %v2198_v27, %v1552_v28  ;;  %v2130_v18 = vld [vmem:[#allocation2 + $0x1ec] sm:$0xf0]  ;;  %v2059_v20 = vor.u32 %v2190_v8, %v2056_v9 }
  0x30   :  { %v2097_v32 = vld [vmem:[#allocation2 + $0xe4] sm:$0xf0]  ;;  %v1632_v38 = vld [vmem:[#allocation2 + $0xa8] sm:$0xf0]  ;;  %v1768_v23 = vld [vmem:[#allocation2 + $0x1b0] sm:$0xf0] }
  0x31   :  { %945 = vmatpush.bf16.msrb.mxu2 %v1731_v2  ;;  %907 = vmatpush.bf16.msrb.mxu0 %v1727_v12  ;;  %v1918_v33 = vld [vmem:[#allocation2 + $0x2c8] sm:$0xf]  ;;  %v2149_v40 = vld [vmem:[#allocation2 + $0x28c] sm:$0xf]  ;;  %v1663_v42 = vor.u32 %v2097_v32, %v1662_v31  ;;  %v1635_v45 = vor.u32 %v2085_v37, %v1632_v38  ;;  %v2182_v27 = vld [vmem:[#allocation2 + $0x394] sm:$0xf] }
  0x32   :  { %v2161_v36 = vld [vmem:[#allocation2 + $0x2e4] sm:$0xf0]  ;;  %v1888_v41 = vld [vmem:[#allocation2 + $0x2a8] sm:$0xf0]  ;;  %v2024_v28 = vld [vmem:[#allocation2 + $0x3b0] sm:$0xf0] }
  0x33   :  { %964 = vmatpush.bf16.msrb.mxu3 %v1987_v6  ;;  %926 = vmatpush.bf16.msrb.mxu1 %v1983_v14  ;;  %v1919_v43 = vor.u32 %v2161_v36, %v1918_v33  ;;  %v1630_v46 = vld [vmem:[#allocation2 + $0x88] sm:$0xf]  ;;  %v1891_v50 = vor.u32 %v2149_v40, %v1888_v41  ;;  %v2077_v52 = vld [vmem:[#allocation2 + $0x4c] sm:$0xf]  ;;  %v1766_v31 = vld [vmem:[#allocation2 + $0x190] sm:$0xf]  ;;  %v2027_v38 = vor.u32 %v2182_v27, %v2024_v28 }
  0x34   :  { %v2089_v47 = vld [vmem:[#allocation2 + $0xa4] sm:$0xf0]  ;;  %v1600_v53 = vld [vmem:[#allocation2 + $0x68] sm:$0xf0]  ;;  %v2122_v32 = vld [vmem:[#allocation2 + $0x1ac] sm:$0xf0] }
  0x35   :  { %946 = vmatpush.bf16.msrb.mxu2 %v1699_v15  ;;  %908 = vmatpush.bf16.msrb.mxu0 %v1695_v26  ;;  %v1886_v48 = vld [vmem:[#allocation2 + $0x288] sm:$0xf]  ;;  %v2141_v54 = vld [vmem:[#allocation2 + $0x24c] sm:$0xf]  ;;  %v1631_v56 = vor.u32 %v2089_v47, %v1630_v46  ;;  %v1603_v59 = vor.u32 %v2077_v52, %v1600_v53  ;;  %v1799_v26 = vor.u32 %v2130_v18, %v1798_v17  ;;  %v2022_v33 = vld [vmem:[#allocation2 + $0x390] sm:$0xf] }
  0x36   :  { %v2153_v51 = vld [vmem:[#allocation2 + $0x2a4] sm:$0xf0]  ;;  %v1856_v55 = vld [vmem:[#allocation2 + $0x268] sm:$0xf0]  ;;  %v2110_v36 = vld [vmem:[#allocation2 + $0x154] sm:$0xf]  ;;  %v1767_v40 = vor.u32 %v2122_v32, %v1766_v31 }
  0x37   :  { %965 = vmatpush.bf16.msrb.mxu3 %v1955_v19  ;;  %927 = vmatpush.bf16.msrb.mxu1 %v1951_v29  ;;  %v1598_v57 = vld [vmem:[#allocation2 + $0x48] sm:$0xf]  ;;  %v1887_v58 = vor.u32 %v2153_v51, %v1886_v48  ;;  %v1859_v63 = vor.u32 %v2141_v54, %v1856_v55  ;;  %v2069_v0 = vld [vmem:[#allocation2 + $0xc] sm:$0xf]  ;;  %v2054_v19 = vld [vmem:[#allocation2 + $0x3d0] sm:$0xf] }
  0x38   :  { %842 = vmatmul.bf16.gmra.mxu0 %v2348_v34  ;;  %880 = vmatmul.bf16.gmra.mxu2 %v2348_v34  ;;  %v2081_v60 = vld [vmem:[#allocation2 + $0x64] sm:$0xf0]  ;;  %v1568_v1 = vld [vmem:[#allocation2 + $0x28] sm:$0xf0]  ;;  %v2055_v29 = vor.u32 %v2194_v21, %v2054_v19  ;;  %v1736_v37 = vld [vmem:[#allocation2 + $0x170] sm:$0xf0] }
  0x39   :  { %947 = vmatpush.bf16.msrb.mxu2 %v1667_v30  ;;  %909 = vmatpush.bf16.msrb.mxu0 %v1663_v42  ;;  %v1854_v61 = vld [vmem:[#allocation2 + $0x248] sm:$0xf]  ;;  %v2133_v2 = vld [vmem:[#allocation2 + $0x20c] sm:$0xf]  ;;  %v1599_v6 = vor.u32 %v2081_v60, %v1598_v57  ;;  %v1571_v11 = vor.u32 %v2069_v0, %v1568_v1  ;;  %v1771_v30 = vor.u32 %v2118_v22, %v1768_v23  ;;  %v2174_v41 = vld [vmem:[#allocation2 + $0x354] sm:$0xf] }
  0x3a   :  { %861 = vmatmul.bf16.gmra.mxu1 %v2350_v39  ;;  %899 = vmatmul.bf16.gmra.mxu3 %v2350_v39  ;;  %v2145_v62 = vld [vmem:[#allocation2 + $0x264] sm:$0xf0]  ;;  %v1824_v3 = vld [vmem:[#allocation2 + $0x228] sm:$0xf0]  ;;  %v1992_v42 = vld [vmem:[#allocation2 + $0x370] sm:$0xf0] }
  0x3b   :  { %966 = vmatpush.bf16.msrb.mxu3 %v1923_v35  ;;  %928 = vmatpush.bf16.msrb.mxu1 %v1919_v43  ;;  %v1566_v7 = vld [vmem:[#allocation2 + $0x8] sm:$0xf]  ;;  %v1855_v10 = vor.u32 %v2145_v62, %v1854_v61  ;;  %v1827_v15 = vor.u32 %v2133_v2, %v1824_v3  ;;  %v2186_v35 = vld [vmem:[#allocation2 + $0x3ac] sm:$0xf0]  ;;  %v2102_v51 = vld [vmem:[#allocation2 + $0x114] sm:$0xf]  ;;  %v1995_v53 = vor.u32 %v2174_v41, %v1992_v42 }
  0x3c   :  { %v2073_v12 = vld [vmem:[#allocation2 + $0x24] sm:$0xf0]  ;;  %v2023_v43 = vor.u32 %v2186_v35, %v2022_v33  ;;  %v1734_v46 = vld [vmem:[#allocation2 + $0x150] sm:$0xf]  ;;  %v1704_v52 = vld [vmem:[#allocation2 + $0x130] sm:$0xf0] }
  0x3d   :  { %948 = vmatpush.bf16.msrb.mxu2 %v1635_v45  ;;  %910 = vmatpush.bf16.msrb.mxu0 %v1631_v56  ;;  %v1822_v13 = vld [vmem:[#allocation2 + $0x208] sm:$0xf]  ;;  %v1567_v24 = vor.u32 %v2073_v12, %v1566_v7  ;;  %v1739_v45 = vor.u32 %v2110_v36, %v1736_v37  ;;  %v2114_v47 = vld [vmem:[#allocation2 + $0x16c] sm:$0xf0]  ;;  %v2166_v55 = vld [vmem:[#allocation2 + $0x314] sm:$0xf] }
  0x3e   :  { %v2137_v14 = vld [vmem:[#allocation2 + $0x224] sm:$0xf0]  ;;  %v1990_v48 = vld [vmem:[#allocation2 + $0x350] sm:$0xf]  ;;  %v1735_v54 = vor.u32 %v2114_v47, %v1734_v46  ;;  %v1960_v56 = vld [vmem:[#allocation2 + $0x330] sm:$0xf0] }
  0x3f   :  { %967 = vmatpush.bf16.msrb.mxu3 %v1891_v50  ;;  %929 = vmatpush.bf16.msrb.mxu1 %v1887_v58  ;;  %v1823_v25 = vor.u32 %v2137_v14, %v1822_v13  ;;  %v2178_v50 = vld [vmem:[#allocation2 + $0x36c] sm:$0xf0]  ;;  %v1707_v58 = vor.u32 %v2102_v51, %v1704_v52  ;;  %v1672_v0 = vld [vmem:[#allocation2 + $0xf0] sm:$0xf0]  ;;  %v1963_v1 = vor.u32 %v2166_v55, %v1960_v56  ;;  %v1808_v41 = vld [vmem:[#allocation2 + $0x1f8] sm:$0xf0] }
  0x40   :  { %v1991_v57 = vor.u32 %v2178_v50, %v1990_v48  ;;  %v2106_v60 = vld [vmem:[#allocation2 + $0x12c] sm:$0xf0]  ;;  %v2158_v3 = vld [vmem:[#allocation2 + $0x2d4] sm:$0xf]  ;;  %v1133_v47 = vld [vmem:[%s2758_s0] sm:$0xff] }
  0x41   :  { %949 = vmatpush.bf16.msrb.mxu2 %v1603_v59  ;;  %911 = vmatpush.bf16.msrb.mxu0 %v1599_v6  ;;  %v1702_v59 = vld [vmem:[#allocation2 + $0x110] sm:$0xf]  ;;  %v1928_v4 = vld [vmem:[#allocation2 + $0x2f0] sm:$0xf0]  ;;  %v2191_v55 = vld [vmem:[#allocation2 + $0x3dc] sm:$0xf] }
  0x42   :  { %v1958_v61 = vld [vmem:[#allocation2 + $0x310] sm:$0xf]  ;;  %v1703_v2 = vor.u32 %v2106_v60, %v1702_v59  ;;  %v1640_v12 = vld [vmem:[#allocation2 + $0xb0] sm:$0xf0]  ;;  %v1931_v13 = vor.u32 %v2158_v3, %v1928_v4  ;;  %v2064_v56 = vld [vmem:[#allocation2 + $0x3f8] sm:$0xf0] }
  0x43   :  { %968 = vmatpush.bf16.msrb.mxu3 %v1859_v63  ;;  %930 = vmatpush.bf16.msrb.mxu1 %v1855_v10  ;;  %v2170_v62 = vld [vmem:[#allocation2 + $0x32c] sm:$0xf0]  ;;  %v2094_v63 = vld [vmem:[#allocation2 + $0xd4] sm:$0xf]  ;;  %v2131_v59 = vld [vmem:[#allocation2 + $0x1f4] sm:$0xf0]  ;;  %v2067_v3 = vor.u32 %v2191_v55, %v2064_v56 }
  0x44   :  { %v1959_v5 = vor.u32 %v2170_v62, %v1958_v61  ;;  %v1675_v6 = vor.u32 %v2094_v63, %v1672_v0  ;;  %v1670_v7 = vld [vmem:[#allocation2 + $0xd0] sm:$0xf]  ;;  %v2078_v23 = vld [vmem:[#allocation2 + $0x54] sm:$0xf]  ;;  %v2062_v60 = vld [vmem:[#allocation2 + $0x3d8] sm:$0xf] }
  0x45   :  { %950 = vmatpush.bf16.msrb.mxu2 %v1571_v11  ;;  %912 = vmatpush.bf16.msrb.mxu0 %v1567_v24  ;;  %v2098_v8 = vld [vmem:[#allocation2 + $0xec] sm:$0xf0]  ;;  %v2086_v11 = vld [vmem:[#allocation2 + $0x94] sm:$0xf]  ;;  %v2195_v61 = vld [vmem:[#allocation2 + $0x3f4] sm:$0xf0] }
  0x46   :  { %v1926_v9 = vld [vmem:[#allocation2 + $0x2d0] sm:$0xf]  ;;  %v1671_v14 = vor.u32 %v2098_v8, %v1670_v7  ;;  %v1643_v18 = vor.u32 %v2086_v11, %v1640_v12  ;;  %v1608_v24 = vld [vmem:[#allocation2 + $0x70] sm:$0xf0]  ;;  %v2119_v0 = vld [vmem:[#allocation2 + $0x19c] sm:$0xf] }
  0x47   :  { %969 = vmatpush.bf16.msrb.mxu3 %v1827_v15  ;;  %931 = vmatpush.bf16.msrb.mxu1 %v1823_v25  ;;  %v2162_v10 = vld [vmem:[#allocation2 + $0x2ec] sm:$0xf0]  ;;  %v2150_v15 = vld [vmem:[#allocation2 + $0x294] sm:$0xf]  ;;  %v2032_v7 = vld [vmem:[#allocation2 + $0x3b8] sm:$0xf0] }
  0x48   :  { %913 = vmatmul.bf16.vlgmr.msrb.gmra.mxu0 %v2328_v44  ;;  %951 = vmatmul.bf16.vlgmr.msrb.gmra.mxu2 %v2328_v44  ;;  %v1927_v17 = vor.u32 %v2162_v10, %v1926_v9  ;;  %v1638_v19 = vld [vmem:[#allocation2 + $0x90] sm:$0xf]  ;;  %v2142_v27 = vld [vmem:[#allocation2 + $0x254] sm:$0xf]  ;;  %v1774_v9 = vld [vmem:[#allocation2 + $0x198] sm:$0xf] }
  0x49   :  { %1019 = vmatpush.bf16.msra.mxu2 %v1803_v16  ;;  %981 = vmatpush.bf16.msra.mxu0 %v1799_v26  ;;  %v1896_v16 = vld [vmem:[#allocation2 + $0x2b0] sm:$0xf0]  ;;  %v1894_v21 = vld [vmem:[#allocation2 + $0x290] sm:$0xf]  ;;  %v2123_v10 = vld [vmem:[#allocation2 + $0x1b4] sm:$0xf0] }
  0x4a   :  { %932 = vmatmul.bf16.vlgmr.msrb.gmra.mxu1 %v2330_v49  ;;  %970 = vmatmul.bf16.vlgmr.msrb.gmra.mxu3 %v2330_v49  ;;  %v2154_v22 = vld [vmem:[#allocation2 + $0x2ac] sm:$0xf0]  ;;  %v1899_v25 = vor.u32 %v2150_v15, %v1896_v16  ;;  %v1864_v28 = vld [vmem:[#allocation2 + $0x270] sm:$0xf0]  ;;  %v1134_v11 = vld [vmem:[%s2758_s0 + $0x8] sm:$0xff] }
  0x4b   :  { %1038 = vmatpush.bf16.msra.mxu3 %v2059_v20  ;;  %1000 = vmatpush.bf16.msra.mxu1 %v2055_v29  ;;  %v2090_v20 = vld [vmem:[#allocation2 + $0xac] sm:$0xf0]  ;;  %v1895_v29 = vor.u32 %v2154_v22, %v1894_v21  ;;  %v2070_v36 = vld [vmem:[#allocation2 + $0x14] sm:$0xf]  ;;  %v1867_v42 = vor.u32 %v2142_v27, %v1864_v28  ;;  %v2111_v15 = vld [vmem:[#allocation2 + $0x15c] sm:$0xf] }
  0x4c   :  { %v1639_v26 = vor.u32 %v2090_v20, %v1638_v19  ;;  %v1606_v31 = vld [vmem:[#allocation2 + $0x50] sm:$0xf]  ;;  %v1576_v37 = vld [vmem:[#allocation2 + $0x30] sm:$0xf0]  ;;  %v1744_v16 = vld [vmem:[#allocation2 + $0x178] sm:$0xf0]  ;;  %v1775_v19 = vor.u32 %v2123_v10, %v1774_v9 }
  0x4d   :  { %1020 = vmatpush.bf16.msra.mxu2 %v1771_v30  ;;  %982 = vmatpush.bf16.msra.mxu0 %v1767_v40  ;;  %v1611_v30 = vor.u32 %v2078_v23, %v1608_v24  ;;  %v2082_v32 = vld [vmem:[#allocation2 + $0x6c] sm:$0xf0]  ;;  %v2127_v40 = vld [vmem:[#allocation2 + $0x1dc] sm:$0xf]  ;;  %v1579_v50 = vor.u32 %v2070_v36, %v1576_v37  ;;  %v1742_v21 = vld [vmem:[#allocation2 + $0x158] sm:$0xf]  ;;  %v1747_v23 = vor.u32 %v2111_v15, %v1744_v16 }
  0x4e   :  { %v1862_v33 = vld [vmem:[#allocation2 + $0x250] sm:$0xf]  ;;  %v2115_v22 = vld [vmem:[#allocation2 + $0x174] sm:$0xf0]  ;;  %v2103_v27 = vld [vmem:[#allocation2 + $0x11c] sm:$0xf] }
  0x4f   :  { %1039 = vmatpush.bf16.msra.mxu3 %v2027_v38  ;;  %1001 = vmatpush.bf16.msra.mxu1 %v2023_v43  ;;  %v2146_v35 = vld [vmem:[#allocation2 + $0x26c] sm:$0xf0]  ;;  %v2134_v38 = vld [vmem:[#allocation2 + $0x214] sm:$0xf]  ;;  %v1607_v43 = vor.u32 %v2082_v32, %v1606_v31  ;;  %v1712_v28 = vld [vmem:[#allocation2 + $0x138] sm:$0xf0]  ;;  %v1743_v31 = vor.u32 %v2115_v22, %v1742_v21 }
  0x50   :  { %v1574_v46 = vld [vmem:[#allocation2 + $0x10] sm:$0xf]  ;;  %v1863_v48 = vor.u32 %v2146_v35, %v1862_v33  ;;  %v1710_v33 = vld [vmem:[#allocation2 + $0x118] sm:$0xf]  ;;  %v1715_v36 = vor.u32 %v2103_v27, %v1712_v28  ;;  %v2087_v55 = vld [vmem:[#allocation2 + $0x9c] sm:$0xf] }
  0x51   :  { %1021 = vmatpush.bf16.msra.mxu2 %v1739_v45  ;;  %983 = vmatpush.bf16.msra.mxu0 %v1735_v54  ;;  %v1832_v45 = vld [vmem:[#allocation2 + $0x230] sm:$0xf0]  ;;  %v2074_v51 = vld [vmem:[#allocation2 + $0x2c] sm:$0xf0]  ;;  %v1811_v54 = vor.u32 %v2127_v40, %v1808_v41  ;;  %v2107_v35 = vld [vmem:[#allocation2 + $0x134] sm:$0xf0] }
  0x52   :  { %v1830_v52 = vld [vmem:[#allocation2 + $0x210] sm:$0xf]  ;;  %v1835_v62 = vor.u32 %v2134_v38, %v1832_v45  ;;  %v1575_v63 = vor.u32 %v2074_v51, %v1574_v46  ;;  %v1966_v38 = vld [vmem:[#allocation2 + $0x318] sm:$0xf]  ;;  %v2095_v41 = vld [vmem:[#allocation2 + $0xdc] sm:$0xf]  ;;  %v1711_v46 = vor.u32 %v2107_v35, %v1710_v33 }
  0x53   :  { %1040 = vmatpush.bf16.msra.mxu3 %v1995_v53  ;;  %1002 = vmatpush.bf16.msra.mxu1 %v1991_v57  ;;  %v2138_v53 = vld [vmem:[#allocation2 + $0x22c] sm:$0xf0]  ;;  %v1806_v57 = vld [vmem:[#allocation2 + $0x1d8] sm:$0xf]  ;;  %v1936_v45 = vld [vmem:[#allocation2 + $0x2f8] sm:$0xf0] }
  0x54   :  { %v1807_v4 = vor.u32 %v2131_v59, %v1806_v57  ;;  %v2171_v40 = vld [vmem:[#allocation2 + $0x334] sm:$0xf0]  ;;  %v1648_v56 = vld [vmem:[#allocation2 + $0xb8] sm:$0xf0] }
  0x55   :  { %1022 = vmatpush.bf16.msra.mxu2 %v1707_v58  ;;  %984 = vmatpush.bf16.msra.mxu0 %v1703_v2  ;;  %v2282_v58 = vmov 0   ;;  %v1831_v2 = vor.u32 %v2138_v53, %v1830_v52  ;;  %v1934_v53 = vld [vmem:[#allocation2 + $0x2d8] sm:$0xf]  ;;  %v2151_v57 = vld [vmem:[#allocation2 + $0x29c] sm:$0xf] }
  0x56   :  { %2204 = vset.pattern.permute.xlu0 %v2282_v58  ;;  %v1904_v58 = vld [vmem:[#allocation2 + $0x2b8] sm:$0xf0]  ;;  %v1614_v9 = vld [vmem:[#allocation2 + $0x58] sm:$0xf] }
  0x57   :  { %1041 = vmatpush.bf16.msra.mxu3 %v1963_v1  ;;  %1003 = vmatpush.bf16.msra.mxu1 %v1959_v5  ;;  %v1776_v1 = vld [vmem:[#allocation2 + $0x1b8] sm:$0xf0]  ;;  %v2063_v5 = vor.u32 %v2195_v61, %v2062_v60  ;;  %v1646_v61 = vld [vmem:[#allocation2 + $0x98] sm:$0xf] }
  0x58   :  { %918 = vmatmul.bf16.gmra.mxu0 %v2348_v34  ;;  %956 = vmatmul.bf16.gmra.mxu2 %v2348_v34  ;;  %v1779_v8 = vor.u32 %v2119_v0, %v1776_v1  ;;  %v1907_v0 = vor.u32 %v2151_v57, %v1904_v58  ;;  %v1902_v1 = vld [vmem:[#allocation2 + $0x298] sm:$0xf]  ;;  %v2071_v15 = vld [vmem:[#allocation2 + $0x1c] sm:$0xf] }
  0x59   :  { %1023 = vmatpush.bf16.msra.mxu2 %v1675_v6  ;;  %985 = vmatpush.bf16.msra.mxu0 %v1671_v14  ;;  %v2183_v6 = vld [vmem:[#allocation2 + $0x39c] sm:$0xf]  ;;  %v2187_v14 = vld [vmem:[#allocation2 + $0x3b4] sm:$0xf0] }
  0x5a   :  { %937 = vmatmul.bf16.gmra.mxu1 %v2350_v39  ;;  %975 = vmatmul.bf16.gmra.mxu3 %v2350_v39  ;;  %v2035_v12 = vor.u32 %v2183_v6, %v2032_v7  ;;  %v1872_v6 = vld [vmem:[#allocation2 + $0x278] sm:$0xf0]  ;;  %v2083_v10 = vld [vmem:[#allocation2 + $0x74] sm:$0xf0] }
  0x5b   :  { %1042 = vmatpush.bf16.msra.mxu3 %v1931_v13  ;;  %1004 = vmatpush.bf16.msra.mxu1 %v1927_v17  ;;  %v2030_v13 = vld [vmem:[#allocation2 + $0x398] sm:$0xf]  ;;  %v2175_v17 = vld [vmem:[#allocation2 + $0x35c] sm:$0xf] }
  0x5c   :  { %1140 = vperm.xlu0 %2204, %v1133_v47   ;;  %v2031_v20 = vor.u32 %v2187_v14, %v2030_v13  ;;  %v1967_v47 = vor.u32 %v2171_v40, %v1966_v38  ;;  %v1870_v13 = vld [vmem:[#allocation2 + $0x258] sm:$0xf]  ;;  %v1584_v16 = vld [vmem:[#allocation2 + $0x38] sm:$0xf0] }
  0x5d   :  { %1024 = vmatpush.bf16.msra.mxu2 %v1643_v18  ;;  %986 = vmatpush.bf16.msra.mxu0 %v1639_v26  ;;  %v2000_v18 = vld [vmem:[#allocation2 + $0x378] sm:$0xf0]  ;;  %v2179_v26 = vld [vmem:[#allocation2 + $0x374] sm:$0xf0]  ;;  %v1587_v22 = vor.u32 %v2071_v15, %v1584_v16 }
  0x5e   :  { %v2003_v24 = vor.u32 %v2175_v17, %v2000_v18  ;;  %v2147_v14 = vld [vmem:[#allocation2 + $0x274] sm:$0xf0]  ;;  %v2135_v17 = vld [vmem:[#allocation2 + $0x21c] sm:$0xf] }
  0x5f   :  { %1043 = vmatpush.bf16.msra.mxu3 %v1899_v25  ;;  %1005 = vmatpush.bf16.msra.mxu1 %v1895_v29  ;;  %v1998_v25 = vld [vmem:[#allocation2 + $0x358] sm:$0xf]  ;;  %v2167_v29 = vld [vmem:[#allocation2 + $0x31c] sm:$0xf] }
  0x60   :  { %v1999_v32 = vor.u32 %v2179_v26, %v1998_v25  ;;  %v1840_v18 = vld [vmem:[#allocation2 + $0x238] sm:$0xf0]  ;;  %v1582_v21 = vld [vmem:[#allocation2 + $0x18] sm:$0xf] }
  0x61   :  { %1025 = vmatpush.bf16.msra.mxu2 %v1611_v30  ;;  %987 = vmatpush.bf16.msra.mxu0 %v1607_v43  ;;  %v1968_v30 = vld [vmem:[#allocation2 + $0x338] sm:$0xf0]  ;;  %v1838_v25 = vld [vmem:[#allocation2 + $0x218] sm:$0xf] }
  0x62   :  { %v1971_v37 = vor.u32 %v2167_v29, %v1968_v30  ;;  %v2159_v43 = vld [vmem:[#allocation2 + $0x2dc] sm:$0xf]  ;;  %v2139_v26 = vld [vmem:[#allocation2 + $0x234] sm:$0xf0] }
  0x63   :  { %1044 = vmatpush.bf16.msra.mxu3 %v1867_v42  ;;  %1006 = vmatpush.bf16.msra.mxu1 %v1863_v48  ;;  %v1680_v42 = vld [vmem:[#allocation2 + $0xf8] sm:$0xf0]  ;;  %v1678_v48 = vld [vmem:[#allocation2 + $0xd8] sm:$0xf]  ;;  %v1939_v52 = vor.u32 %v2159_v43, %v1936_v45  ;;  %v1839_v28 = vor.u32 %v2139_v26, %v1838_v25 }
  0x64   :  { %1143 = vperm.xlu0 %2204, %v1134_v11   ;;  %v1683_v51 = vor.u32 %v2095_v41, %v1680_v42 }
  0x65   :  { %1026 = vmatpush.bf16.msra.mxu2 %v1579_v50  ;;  %988 = vmatpush.bf16.msra.mxu0 %v1575_v63  ;;  %v2099_v50 = vld [vmem:[#allocation2 + $0xf4] sm:$0xf0]  ;;  %v1651_v63 = vor.u32 %v2087_v55, %v1648_v56 }
  0x66   :  { %v1679_v59 = vor.u32 %v2099_v50, %v1678_v48 }
  0x67   :  { %1045 = vmatpush.bf16.msra.mxu3 %v1835_v62  ;;  %1007 = vmatpush.bf16.msra.mxu1 %v1831_v2  ;;  %v2091_v62 = vld [vmem:[#allocation2 + $0xb4] sm:$0xf0] }
  0x68   :  { %989 = vmatmul.bf16.vlgmr.msra.gmra.mxu0 %v2328_v44  ;;  %1027 = vmatmul.bf16.vlgmr.msra.gmra.mxu2 %v2328_v44  ;;  %v2155_v2 = vld [vmem:[#allocation2 + $0x2b4] sm:$0xf0]  ;;  %v1647_v7 = vor.u32 %v2091_v62, %v1646_v61 }
  0x69   :  { %1095 = vmatpush.bf16.msrb.mxu2 %v1811_v54  ;;  %1057 = vmatpush.bf16.msrb.mxu0 %v1807_v4  ;;  %v2163_v54 = vld [vmem:[#allocation2 + $0x2f4] sm:$0xf0]  ;;  %v1616_v4 = vld [vmem:[#allocation2 + $0x78] sm:$0xf0] }
  0x6a   :  { %1008 = vmatmul.bf16.vlgmr.msra.gmra.mxu1 %v2330_v49  ;;  %1046 = vmatmul.bf16.vlgmr.msra.gmra.mxu3 %v2330_v49  ;;  %v1935_v60 = vor.u32 %v2163_v54, %v1934_v53 }
  0x6b   :  { %1114 = vmatpush.bf16.msrb.mxu3 %v2067_v3  ;;  %1076 = vmatpush.bf16.msrb.mxu1 %v2063_v5  ;;  %v2079_v3 = vld [vmem:[#allocation2 + $0x5c] sm:$0xf] }
  0x6c   :  { %v2143_v5 = vld [vmem:[#allocation2 + $0x25c] sm:$0xf]  ;;  %v1619_v11 = vor.u32 %v2079_v3, %v1616_v4 }
  0x6d   :  { %1096 = vmatpush.bf16.msrb.mxu2 %v1779_v8  ;;  %1058 = vmatpush.bf16.msrb.mxu0 %v1775_v19  ;;  %v1903_v8 = vor.u32 %v2155_v2, %v1902_v1  ;;  %v1615_v19 = vor.u32 %v2083_v10, %v1614_v9 }
  0x6f   :  { %1115 = vmatpush.bf16.msrb.mxu3 %v2035_v12  ;;  %1077 = vmatpush.bf16.msrb.mxu1 %v2031_v20  ;;  %v1875_v12 = vor.u32 %v2143_v5, %v1872_v6  ;;  %v1871_v20 = vor.u32 %v2147_v14, %v1870_v13 }
  0x71   :  { %1097 = vmatpush.bf16.msrb.mxu2 %v1747_v23  ;;  %1059 = vmatpush.bf16.msrb.mxu0 %v1743_v31  ;;  %v1843_v23 = vor.u32 %v2135_v17, %v1840_v18 }
  0x73   :  { %1116 = vmatpush.bf16.msrb.mxu3 %v2003_v24  ;;  %1078 = vmatpush.bf16.msrb.mxu1 %v1999_v32  ;;  %v2075_v24 = vld [vmem:[#allocation2 + $0x34] sm:$0xf0] }
  0x74   :  { %v1583_v27 = vor.u32 %v2075_v24, %v1582_v21 }
  0x75   :  { %1098 = vmatpush.bf16.msrb.mxu2 %v1715_v36  ;;  %1060 = vmatpush.bf16.msrb.mxu0 %v1711_v46 }
  0x77   :  { %1117 = vmatpush.bf16.msrb.mxu3 %v1971_v37  ;;  %1079 = vmatpush.bf16.msrb.mxu1 %v1967_v47 }
  0x78   :  { %994 = vmatmul.bf16.gmra.mxu0 %v2348_v34  ;;  %1032 = vmatmul.bf16.gmra.mxu2 %v2348_v34 }
  0x79   :  { %1099 = vmatpush.bf16.msrb.mxu2 %v1683_v51  ;;  %1061 = vmatpush.bf16.msrb.mxu0 %v1679_v59 }
  0x7a   :  { %1013 = vmatmul.bf16.gmra.mxu1 %v2350_v39  ;;  %1051 = vmatmul.bf16.gmra.mxu3 %v2350_v39 }
  0x7b   :  { %1118 = vmatpush.bf16.msrb.mxu3 %v1939_v52  ;;  %1080 = vmatpush.bf16.msrb.mxu1 %v1935_v60 }
  0x7d   :  { %1100 = vmatpush.bf16.msrb.mxu2 %v1651_v63  ;;  %1062 = vmatpush.bf16.msrb.mxu0 %v1647_v7 }
  0x7f   :  { %1119 = vmatpush.bf16.msrb.mxu3 %v1907_v0  ;;  %1081 = vmatpush.bf16.msrb.mxu1 %v1903_v8 }
  0x81   :  { %1101 = vmatpush.bf16.msrb.mxu2 %v1619_v11  ;;  %1063 = vmatpush.bf16.msrb.mxu0 %v1615_v19 }
  0x83   :  { %1120 = vmatpush.bf16.msrb.mxu3 %v1875_v12  ;;  %1082 = vmatpush.bf16.msrb.mxu1 %v1871_v20 }
  0x85   :  { %1102 = vmatpush.bf16.msrb.mxu2 %v1587_v22  ;;  %1064 = vmatpush.bf16.msrb.mxu0 %v1583_v27 }
  0x87   :  { %1121 = vmatpush.bf16.msrb.mxu3 %v1843_v23  ;;  %1083 = vmatpush.bf16.msrb.mxu1 %v1839_v28  ;;  %v2417_v23 = vld [vmem:[%s2759_s1] ss:$8 sm:$0xf] }
  0x88   :  { %1065 = vmatmul.bf16.vlgmr.msrb.gmra.mxu0 %v2328_v44  ;;  %1103 = vmatmul.bf16.vlgmr.msrb.gmra.mxu2 %v2328_v44  ;;  %v1135_v27 = vperm.slane %v2417_v23, 0 }
  0x8a   :  { %1084 = vmatmul.bf16.vlgmr.msrb.gmra.mxu1 %v2330_v49  ;;  %1122 = vmatmul.bf16.vlgmr.msrb.gmra.mxu3 %v2330_v49 }
  0x98   :  { %1070 = vmatmul.bf16.gmra.mxu0 %v2348_v34  ;;  %1108 = vmatmul.bf16.gmra.mxu2 %v2348_v34 }
  0x9a   :  { %1089 = vmatmul.bf16.gmra.mxu1 %v2350_v39  ;;  %1127 = vmatmul.bf16.gmra.mxu3 %v2350_v39 }
  0xa5   :  { %v838_v29 = vpop.f32.mrf.mxu0 }
  0xa7   :  { %v857_v30 = vpop.f32.mrf.mxu1 }
  0xa8   :  { %v858_v31 = vadd.f32 %v857_v30, %v838_v29 }
  0xaa   :  { %v1153_v20 = vmul.f32 %v858_v31, %v858_v31 }
  0xab   :  { %v876_v32 = vpop.f32.mrf.mxu2 }
  0xad   :  { %v895_v33 = vpop.f32.mrf.mxu3  ;;  %v840_v35 = vpop.f32.mrf.mxu0 }
  0xae   :  { %v896_v36 = vadd.f32 %v895_v33, %v876_v32 }
  0xaf   :  { %v859_v44 = vpop.f32.mrf.mxu1 }
  0xb0   :  { %v860_v37 = vadd.f32 %v859_v44, %v840_v35  ;;  %v1154_v33 = vmul.f32 %v896_v36, %v896_v36 }
  0xb2   :  { %v1157_v28 = vmul.f32 %v860_v37, %v860_v37 }
  0xb3   :  { %v878_v38 = vpop.f32.mrf.mxu2 }
  0xb5   :  { %v897_v40 = vpop.f32.mrf.mxu3  ;;  %v843_v49 = vpop.f32.mrf.mxu0 }
  0xb6   :  { %v2386_v41 = vadd.f32 %v897_v40, %v878_v38 }
  0xb7   :  { %v862_v42 = vpop.f32.mrf.mxu1 }
  0xb8   :  { %v2388_v34 = vadd.f32 %v862_v42, %v843_v49  ;;  %v1158_v36 = vmul.f32 %v2386_v41, %v2386_v41 }
  0xbb   :  { %v881_v43 = vpop.f32.mrf.mxu2 }
  0xbd   :  { %v900_v45 = vpop.f32.mrf.mxu3  ;;  %v845_v39 = vpop.f32.mrf.mxu0 }
  0xbe   :  { %v2390_v46 = vadd.f32 %v900_v45, %v881_v43 }
  0xbf   :  { %v864_v47 = vpop.f32.mrf.mxu1 }
  0xc0   :  { %v2392_v48 = vadd.f32 %v864_v47, %v845_v39  ;;  %v1136_v39 = vperm.slane %v2417_v23, 1 }
  0xc3   :  { %v883_v50 = vpop.f32.mrf.mxu2 }
  0xc5   :  { %v902_v51 = vpop.f32.mrf.mxu3  ;;  %v914_v53 = vpop.f32.mrf.mxu0 }
  0xc6   :  { %v2394_v52 = vadd.f32 %v902_v51, %v883_v50 }
  0xc7   :  { %v933_v54 = vpop.f32.mrf.mxu1 }
  0xc8   :  { %v2396_v55 = vadd.f32 %v933_v54, %v914_v53 }
  0xcb   :  { %v952_v56 = vpop.f32.mrf.mxu2 }
  0xcd   :  { %v971_v57 = vpop.f32.mrf.mxu3  ;;  %v916_v59 = vpop.f32.mrf.mxu0 }
  0xce   :  { %v2398_v58 = vadd.f32 %v971_v57, %v952_v56  ;;  %v2412_v16 = vpop.permute.xlu0 %1140  ;;  %v1193_v57 = vmul.f32 %v2388_v34, %v2388_v34 }
  0xcf   :  { %v935_v60 = vpop.f32.mrf.mxu1  ;;  %vm2428_vm1 = vcmp.lt.s32.totalorder %v1135_v27, %v2412_v16  ;;  %vm2450_vm3 = vcmp.lt.s32.totalorder %v1136_v39, %v2412_v16 }
  0xd0   :  { %v2400_v61 = vadd.f32 %v935_v60, %v916_v59 }
  0xd3   :  { %v954_v62 = vpop.f32.mrf.mxu2 }
  0xd5   :  { %v973_v63 = vpop.f32.mrf.mxu3  ;;  %v919_v1 = vpop.f32.mrf.mxu0 }
  0xd6   :  { %v2402_v0 = vadd.f32 %v973_v63, %v954_v62  ;;  %v2420_v32 = vpop.permute.xlu0 %1143 }
  0xd7   :  { %v938_v2 = vpop.f32.mrf.mxu1  ;;  %vm2423_vm0 = vcmp.lt.s32.totalorder %v1135_v27, %v2420_v32  ;;  %vm2445_vm2 = vcmp.lt.s32.totalorder %v1136_v39, %v2420_v32 }
  0xd8   :  { %v2404_v3 = vadd.f32 %v938_v2, %v919_v1  ;;  %v1137_v1 = vperm.slane %v2417_v23, 2 }
  0xda   :  { %vm2552_vm9 = vcmp.lt.s32.totalorder %v1137_v1, %v2412_v16  ;;  %vm2559_vm10 = vcmp.lt.s32.totalorder %v1137_v1, %v2420_v32 }
  0xdb   :  { %v957_v4 = vpop.f32.mrf.mxu2 }
  0xdd   :  { %v976_v5 = vpop.f32.mrf.mxu3  ;;  %v921_v7 = vpop.f32.mrf.mxu0 }
  0xde   :  { %v2406_v6 = vadd.f32 %v976_v5, %v957_v4 }
  0xdf   :  { %v940_v8 = vpop.f32.mrf.mxu1 }
  0xe0   :  { %v2408_v9 = vadd.f32 %v940_v8, %v921_v7  ;;  %v2514_v40 = vmul.f32 %v2406_v6, %v2406_v6 }
  0xe3   :  { %v959_v10 = vpop.f32.mrf.mxu2 }
  0xe5   :  { %v978_v11 = vpop.f32.mrf.mxu3  ;;  %v990_v13 = vpop.f32.mrf.mxu0 }
  0xe6   :  { %v2410_v12 = vadd.f32 %v978_v11, %v959_v10 }
  0xe7   :  { %v1009_v14 = vpop.f32.mrf.mxu1 }
  0xe8   :  { %v1010_v15 = vadd.f32 %v1009_v14, %v990_v13 }
  0xea   :  { %v1161_v17 = vmul.f32 %v1010_v15, %v1010_v15 }
  0xeb   :  { %v1028_v18 = vpop.f32.mrf.mxu2 }
  0xec   :  { %v1169_v25 = vadd.f32 %v1161_v17, %v1153_v20 }
  0xed   :  { %v1047_v19 = vpop.f32.mrf.mxu3  ;;  %v992_v22 = vpop.f32.mrf.mxu0 }
  0xee   :  { %v1048_v21 = vadd.f32 %v1047_v19, %v1028_v18  ;;  %v1177_v35 = vmax.f32 %v1169_v25, 1e-07  ;;  %v1194_v18 = vmul.f32 %v2390_v46, %v2390_v46  ;;  %v1197_v25 = vmul.f32 %v2392_v48, %v2392_v48 }
  0xef   :  { %v1011_v24 = vpop.f32.mrf.mxu1  ;;  %v2474_v46 = vmul.f32 %v2396_v55, %v2396_v55  ;;  %v2482_v48 = vmul.f32 %v2400_v61, %v2400_v61  ;;  %v2486_v55 = vmul.f32 %v2402_v0, %v2402_v0  ;;  %v2495_v61 = vmul.f32 %v2404_v3, %v2404_v3 }
  0xf0   :  { %v1012_v26 = vadd.f32 %v1011_v24, %v992_v22  ;;  %v1162_v29 = vmul.f32 %v1048_v21, %v1048_v21  ;;  %v1185_v54 = vsel %vm2428_vm1, %v1177_v35, 1e-07 }
  0xf1   :  { %2205 = vlog2.f32 %v1185_v54 }
  0xf2   :  { %v1165_v30 = vmul.f32 %v1012_v26, %v1012_v26  ;;  %v1170_v37 = vadd.f32 %v1162_v29, %v1154_v33  ;;  %v1198_v29 = vmul.f32 %v2394_v52, %v2394_v52  ;;  %v1497_v52 = vlaneseq }
  0xf3   :  { %v1030_v44 = vpop.f32.mrf.mxu2 }
  0xf4   :  { %v1173_v31 = vadd.f32 %v1165_v30, %v1157_v28  ;;  %v1178_v59 = vmax.f32 %v1170_v37, 1e-07 }
  0xf5   :  { %v1049_v38 = vpop.f32.mrf.mxu3  ;;  %v995_v45 = vpop.f32.mrf.mxu0 }
  0xf6   :  { %v1181_v42 = vmax.f32 %v1173_v31, 1e-07  ;;  %v1050_v43 = vadd.f32 %v1049_v38, %v1030_v44  ;;  %v1186_v13 = vsel %vm2450_vm3, %v1178_v59, 1e-07  ;;  %v2478_v31 = vmul.f32 %v2398_v58, %v2398_v58 }
  0xf7   :  { %v1014_v47 = vpop.f32.mrf.mxu1  ;;  %v2206_v35 = vpop.eup %2205 }
  0xf8   :  { %v1166_v50 = vmul.f32 %v1050_v43, %v1050_v43  ;;  %v2437_v51 = vsel %vm2423_vm0, %v1181_v42, 1e-07  ;;  %v1015_v53 = vadd.f32 %v1014_v47, %v995_v45 }
  0xf9   :  { %v1233_v56 = vadd.f32 %v2437_v51, %v1185_v54 }
  0xfa   :  { %v1174_v60 = vadd.f32 %v1166_v50, %v1158_v36  ;;  %v1201_v41 = vmul.f32 %v1015_v53, %v1015_v53  ;;  %v1438_v36 = vmul.f32 0.6931472, %v2206_v35  ;;  %v2502_v53 = vshrl.u32 %v1497_v52, 7 }
  0xfb   :  { %v1234_v63 = vrot.slane %v1233_v56, 4  ;;  %v1033_v5 = vpop.f32.mrf.mxu2 }
  0xfc   :  { %v1182_v2 = vmax.f32 %v1174_v60, 1e-07  ;;  %v1209_v4 = vadd.f32 %v1201_v41, %v1193_v57  ;;  %vm1499_vm4 = vcmp.eq.s32.totalorder %v2502_v53, 0  ;;  %vm1504_vm5 = vcmp.eq.s32.totalorder %v2502_v53, 1 }
  0xfd   :  { %v1235_v7 = vadd.f32 %v1234_v63, %v1233_v56  ;;  %v1052_v8 = vpop.f32.mrf.mxu3  ;;  %v997_v14 = vpop.f32.mrf.mxu0 }
  0xfe   :  { %v2456_v34 = vsel %vm2445_vm2, %v1182_v2, 1e-07  ;;  %v1217_v10 = vmax.f32 %v1209_v4, 1e-07  ;;  %v1053_v11 = vadd.f32 %v1052_v8, %v1033_v5 }
  0xff   :  { %v1240_v15 = vadd.f32 %v2456_v34, %v1186_v13  ;;  %v1016_v17 = vpop.f32.mrf.mxu1  ;;  %v1236_v22 = vrot.slane %v1235_v7, 2 }
 0x100   :  { %v1225_v19 = vsel %vm2428_vm1, %v1217_v10, 1e-07  ;;  %v1202_v20 = vmul.f32 %v1053_v11, %v1053_v11  ;;  %v1017_v21 = vadd.f32 %v1016_v17, %v997_v14 }
 0x101   :  { %v2465_v24 = vmul.f32 %v1225_v19, %v1185_v54  ;;  %2207 = vlog2.f32 %v1225_v19  ;;  %v1241_v27 = vrot.slane %v1240_v15, 4  ;;  %v1237_v44 = vadd.f32 %v1236_v22, %v1235_v7 }
 0x102   :  { %v1210_v26 = vadd.f32 %v1202_v20, %v1194_v18  ;;  %v1205_v28 = vmul.f32 %v1017_v21, %v1017_v21  ;;  %v1138_v7 = vperm.slane %v2417_v23, 3 }
 0x103   :  { %2209 = vrsqrt.f32 %v2465_v24  ;;  %v1035_v38 = vpop.f32.mrf.mxu2  ;;  %v1242_v58 = vadd.f32 %v1241_v27, %v1240_v15  ;;  %v1238_v50 = vrot.slane %v1237_v44, 1  ;;  %v1307_v52 = vand.u32 2147483648, %v2465_v24 }
 0x104   :  { %v1218_v30 = vmax.f32 %v1210_v26, 1e-07  ;;  %2211 = vlog2.f32 %v1186_v13  ;;  %v1213_v33 = vadd.f32 %v1205_v28, %v1197_v25  ;;  %vm1304_vm6 = vcmp.eq.f32.partialorder %v2465_v24, inf }
 0x105   :  { %v1054_v49 = vpop.f32.mrf.mxu3  ;;  %2213 = vlog2.f32 %v2437_v51  ;;  %v1243_v59 = vrot.slane %v1242_v58, 2  ;;  %v1066_v41 = vpop.f32.mrf.mxu0  ;;  %vm1306_vm7 = vcmp.eq.f32.partialorder %v2465_v24, 0.0  ;;  %vm2586_vm13 = vcmp.lt.s32.totalorder %v1138_v7, %v2412_v16 }
 0x106   :  { %v2491_v37 = vsel %vm2450_vm3, %v1218_v30, 1e-07  ;;  %v1221_v45 = vmax.f32 %v1213_v33, 1e-07  ;;  %v1055_v39 = vadd.f32 %v1054_v49, %v1035_v38  ;;  %vm2594_vm14 = vcmp.lt.s32.totalorder %v1138_v7, %v2420_v32 }
 0x107   :  { %v2208_v42 = vpop.eup %2207  ;;  %v2498_v43 = vmul.f32 %v2491_v37, %v1186_v13  ;;  %2215 = vlog2.f32 %v2491_v37  ;;  %v1085_v63 = vpop.f32.mrf.mxu1  ;;  %v1239_v13 = vadd.f32 %v1238_v50, %v1237_v44  ;;  %v1244_v17 = vadd.f32 %v1243_v59, %v1242_v58 }
 0x108   :  { %2217 = vlog2.f32 %v2456_v34  ;;  %v1422_v0 = vmul.f32 0.6931472, %v2208_v42  ;;  %v1229_v3 = vsel %vm2423_vm0, %v1221_v45, 1e-07  ;;  %v1206_v4 = vmul.f32 %v1055_v39, %v1055_v39 }
 0x109   :  { %v2210_v47 = vpop.eup %2209  ;;  %2219 = vrsqrt.f32 %v2498_v43  ;;  %v1261_v60 = vadd.f32 %v1229_v3, %v1225_v19  ;;  %v2510_v2 = vmul.f32 %v1229_v3, %v2437_v51  ;;  %v1086_v22 = vadd.f32 %v1085_v63, %v1066_v41 }
 0x10a   :  { %v2212_v54 = vpop.eup %2211  ;;  %v1298_v56 = vmul.f32 %v2210_v47, %v2465_v24  ;;  %v1453_v57 = vsub.f32 %v1422_v0, %v1438_v36  ;;  %2221 = vlog2.f32 %v1229_v3  ;;  %v1214_v21 = vadd.f32 %v1206_v4, %v1198_v29 }
 0x10b   :  { %v2214_v5 = vpop.eup %2213  ;;  %v1262_v10 = vrot.slane %v1261_v60, 4  ;;  %v2518_v14 = vmul.f32 0.6931472, %v2212_v54  ;;  %2223 = vrsqrt.f32 %v2510_v2  ;;  %v1104_v30 = vpop.f32.mrf.mxu2  ;;  %v1500_v38 = vsel %vm1499_vm4, %v1239_v13, 0.0 }
 0x10c   :  { %v1299_v8 = vmul.f32 %v2210_v47, %v1298_v56  ;;  %v1446_v20 = vmul.f32 0.6931472, %v2214_v5  ;;  %v1222_v29 = vmax.f32 %v1214_v21, 1e-07  ;;  %v1245_v49 = vrot.slane %v1244_v17, 1 }
 0x10d   :  { %v2216_v11 = vpop.eup %2215  ;;  %v1263_v19 = vadd.f32 %v1262_v10, %v1261_v60  ;;  %v1123_v33 = vpop.f32.mrf.mxu3  ;;  %v1319_v42 = vand.u32 2147483648, %v2498_v43  ;;  %v1461_v39 = vand.u32 2147483647, %v1453_v57  ;;  %v1163_v60 = vmul.f32 %v1086_v22, %v1086_v22 }
 0x10e   :  { %v2218_v51 = vpop.eup %2217  ;;  %v1300_v15 = vmul.f32 0.5, %v1299_v8  ;;  %v2521_v18 = vmul.f32 0.6931472, %v2216_v11  ;;  %v1230_v3 = vsel %vm2445_vm2, %v1222_v29, 1e-07  ;;  %v1068_v41 = vpop.f32.mrf.mxu0  ;;  %v1124_v10 = vadd.f32 %v1123_v33, %v1104_v30 }
 0x10f   :  { %v2523_v6 = vpop.eup %2219  ;;  %v1264_v28 = vrot.slane %v1263_v19, 2  ;;  %v2530_v44 = vmul.f32 0.6931472, %v2218_v51  ;;  %v1087_v63 = vpop.f32.mrf.mxu1  ;;  %v1268_v5 = vadd.f32 %v1230_v3, %v2491_v37  ;;  %v2543_v8 = vmul.f32 %v1230_v3, %v2456_v34 }
 0x110   :  { %v1301_v25 = vsub.f32 1.5, %v1300_v15  ;;  %v1310_v26 = vmul.f32 %v2523_v6, %v2498_v43  ;;  %v1454_v27 = vsub.f32 %v2521_v18, %v2518_v14  ;;  %v2222_v35 = vpop.eup %2221  ;;  %2225 = vlog2.f32 %v1230_v3 }
 0x111   :  { %v1265_v45 = vadd.f32 %v1264_v28, %v1263_v19  ;;  %v2224_v0 = vpop.eup %2223  ;;  %v1430_v50 = vmul.f32 0.6931472, %v2222_v35  ;;  %vm1352_vm8 = vcmp.eq.f32.partialorder %v2510_v2, inf  ;;  %v1269_v51 = vrot.slane %v1268_v5, 4 }
 0x112   :  { %v1311_v58 = vmul.f32 %v2523_v6, %v1310_v26  ;;  %v1302_v36 = vmul.f32 %v2210_v47, %v1301_v25  ;;  %v1346_v59 = vmul.f32 %v2224_v0, %v2510_v2  ;;  %v1246_v47 = vadd.f32 %v1245_v49, %v1244_v17 }
 0x113   :  { %v1266_v56 = vrot.slane %v1265_v45, 1  ;;  %v1457_v4 = vsub.f32 %v1430_v50, %v1446_v20  ;;  %2227 = vrsqrt.f32 %v2543_v8  ;;  %v1088_v20 = vadd.f32 %v1087_v63, %v1068_v41  ;;  %v1106_v33 = vpop.f32.mrf.mxu2 }
 0x114   :  { %v1312_v54 = vmul.f32 0.5, %v1311_v58  ;;  %v1347_v62 = vmul.f32 %v2224_v0, %v1346_v59  ;;  %v1303_v11 = vmul.f32 %v1302_v36, %v2465_v24  ;;  %v1270_v25 = vadd.f32 %v1269_v51, %v1268_v5 }
 0x115   :  { %v1267_v57 = vadd.f32 %v1266_v56, %v1265_v45  ;;  %v1465_v13 = vand.u32 2147483647, %v1457_v4  ;;  %v1171_v26 = vadd.f32 %v1163_v60, %v2474_v46  ;;  %vm1354_vm11 = vcmp.eq.f32.partialorder %v2510_v2, 0.0  ;;  %v1125_v35 = vpop.f32.mrf.mxu3 }
 0x116   :  { %v1313_v15 = vsub.f32 1.5, %v1312_v54  ;;  %v1348_v17 = vmul.f32 0.5, %v1347_v62  ;;  %v1355_v1 = vand.u32 2147483648, %v2510_v2  ;;  %v1164_v30 = vmul.f32 %v1124_v10, %v1124_v10  ;;  %v2226_v29 = vpop.eup %2225  ;;  %v1071_v14 = vpop.f32.mrf.mxu0 }
 0x117   :  { %v1505_v19 = vsel %vm1504_vm5, %v1267_v57, 0.0  ;;  %v1469_v21 = vadd.f32 %v1465_v13, %v1461_v39  ;;  %v1501_v49 = vsel %vm1499_vm4, %v1246_v47, 0.0  ;;  %v1271_v45 = vrot.slane %v1270_v25, 2  ;;  %v1090_v18 = vpop.f32.mrf.mxu1 }
 0x118   :  { %v2565_v22 = vadd.f32 %v1505_v19, %v1500_v38  ;;  %v1349_v28 = vsub.f32 1.5, %v1348_v17  ;;  %v1305_v38 = vsel %vm1304_vm6, %v2465_v24, %v1303_v11  ;;  %v1314_v46 = vmul.f32 %v2523_v6, %v1313_v15 }
 0x119   :  { %v1470_v58 = vrot.slane %v1469_v21, 4  ;;  %vm1316_vm12 = vcmp.eq.f32.partialorder %v2498_v43, inf  ;;  %v1432_v39 = vmul.f32 0.6931472, %v2226_v29  ;;  %v1167_v50 = vmul.f32 %v1088_v20, %v1088_v20  ;;  %v2228_v3 = vpop.eup %2227 }
 0x11a   :  { %v1350_v36 = vmul.f32 %v2224_v0, %v1349_v28  ;;  %v1462_v54 = vand.u32 2147483647, %v1454_v27  ;;  %v1272_v59 = vadd.f32 %v1271_v45, %v1270_v25  ;;  %v1179_v60 = vmax.f32 %v1171_v26, 1e-07 }
 0x11b   :  { %v1471_v56 = vadd.f32 %v1470_v58, %v1469_v21  ;;  %v1358_v63 = vmul.f32 %v2228_v3, %v2543_v8  ;;  %v1458_v4 = vsub.f32 %v1432_v39, %v2530_v44  ;;  %v1172_v0 = vadd.f32 %v1164_v30, %v2478_v31  ;;  %v1109_v26 = vpop.f32.mrf.mxu2 }
 0x11c   :  { %v1351_v41 = vmul.f32 %v1350_v36, %v2510_v2  ;;  %v1308_v44 = vsel %vm1306_vm7, %v1307_v52, %v1305_v38  ;;  %v1273_v16 = vrot.slane %v1272_v59, 1  ;;  %vm1318_vm15 = vcmp.eq.f32.partialorder %v2498_v43, 0.0 }
 0x11d   :  { %v1175_v5 = vadd.f32 %v1167_v50, %v2482_v48  ;;  %v1126_v31 = vadd.f32 %v1125_v35, %v1106_v33  ;;  %v1315_v47 = vmul.f32 %v1314_v46, %v2498_v43  ;;  %v1359_v32 = vmul.f32 %v2228_v3, %v1358_v63  ;;  %v1128_v28 = vpop.f32.mrf.mxu3 }
 0x11e   :  { %v1353_v23 = vsel %vm1352_vm8, %v2510_v2, %v1351_v41  ;;  %v1466_v7 = vand.u32 2147483647, %v1458_v4  ;;  %v1472_v62 = vrot.slane %v1471_v56, 2  ;;  %v1274_v24 = vadd.f32 %v1273_v16, %v1272_v59  ;;  %v1073_v59 = vpop.f32.mrf.mxu0 }
 0x11f   :  { %v1356_v57 = vsel %vm1354_vm11, %v1355_v1, %v1353_v23  ;;  %vm1364_vm0 = vcmp.eq.f32.partialorder %v2543_v8, inf  ;;  %v1183_v52 = vmax.f32 %v1175_v5, 1e-07  ;;  %v1360_v11 = vmul.f32 0.5, %v1359_v32 }
 0x120   :  { %v1393_v10 = vadd.f32 %v1356_v57, %v1308_v44  ;;  %v1476_v48 = vadd.f32 %v1466_v7, %v1462_v54  ;;  %v1187_v13 = vsel %vm2552_vm9, %v1179_v60, 1e-07  ;;  %v1506_v51 = vsel %vm1504_vm5, %v1274_v24, 0.0 }
 0x121   :  { %v2617_v15 = vsel %vm2559_vm10, %v1183_v52, 1e-07  ;;  %v1168_v2 = vmul.f32 %v1126_v31, %v1126_v31  ;;  %v1091_v17 = vadd.f32 %v1090_v18, %v1071_v14  ;;  %v1361_v20 = vsub.f32 1.5, %v1360_v11 }
 0x122   :  { %v1394_v19 = vrot.slane %v1393_v10, 4  ;;  %v1477_v21 = vrot.slane %v1476_v48, 4  ;;  %v2619_v25 = vadd.f32 %v1506_v51, %v1501_v49  ;;  %v1473_v1 = vadd.f32 %v1472_v62, %v1471_v56 }
 0x123   :  { %v1317_v30 = vsel %vm1316_vm12, %v2498_v43, %v1315_v47  ;;  %v1180_v33 = vmax.f32 %v1172_v0, 1e-07  ;;  %v1247_v35 = vadd.f32 %v2617_v15, %v1187_v13  ;;  %v1362_v38 = vmul.f32 %v2228_v3, %v1361_v20  ;;  %v1092_v3 = vpop.f32.mrf.mxu1 }
 0x124   :  { %v1395_v29 = vadd.f32 %v1394_v19, %v1393_v10  ;;  %vm1366_vm1 = vcmp.eq.f32.partialorder %v2543_v8, 0.0  ;;  %v1176_v58 = vadd.f32 %v1168_v2, %v2486_v55  ;;  %v1367_v45 = vand.u32 2147483648, %v2543_v8  ;;  %v1111_v19 = vpop.f32.mrf.mxu2 }
 0x125   :  { %v1478_v49 = vadd.f32 %v1477_v21, %v1476_v48  ;;  %v1203_v46 = vmul.f32 %v1091_v17, %v1091_v17  ;;  %v1129_v36 = vadd.f32 %v1128_v28, %v1109_v26  ;;  %v1320_v50 = vsel %vm1318_vm15, %v1319_v42, %v1317_v30  ;;  %v1130_v20 = vpop.f32.mrf.mxu3 }
 0x126   :  { %v1396_v39 = vrot.slane %v1395_v29, 2  ;;  %v1363_v54 = vmul.f32 %v1362_v38, %v2543_v8  ;;  %v1184_v56 = vmax.f32 %v1176_v58, 1e-07  ;;  %v1474_v60 = vrot.slane %v1473_v1, 1 }
 0x127   :  { %v1188_v55 = vsel %vm2586_vm13, %v1180_v33, 1e-07  ;;  %v1211_v41 = vadd.f32 %v1203_v46, %v2495_v61  ;;  %v1204_v63 = vmul.f32 %v1129_v36, %v1129_v36  ;;  %v1248_v14 = vrot.slane %v1247_v35, 4 }
 0x128   :  { %v1397_v4 = vadd.f32 %v1396_v39, %v1395_v29  ;;  %v1365_v0 = vsel %vm1364_vm0, %v2543_v8, %v1363_v54  ;;  %v2641_v43 = vsel %vm2594_vm14, %v1184_v56, 1e-07  ;;  %v1479_v18 = vrot.slane %v1478_v49, 2 }
 0x129   :  { %v1368_v42 = vsel %vm1366_vm1, %v1367_v45, %v1365_v0  ;;  %v1254_v44 = vadd.f32 %v2641_v43, %v1188_v55  ;;  %v1093_v16 = vadd.f32 %v1092_v3, %v1073_v59  ;;  %vm1513_vm2 = vcmp.eq.s32.totalorder %v2502_v53, 2 }
 0x12a   :  { %v1398_v5 = vrot.slane %v1397_v4, 1  ;;  %v1400_v61 = vadd.f32 %v1368_v42, %v1320_v50  ;;  %vm1522_vm3 = vcmp.eq.s32.totalorder %v2502_v53, 3  ;;  %v1219_v31 = vmax.f32 %v1211_v41, 1e-07 }
 0x12b   :  { %v1212_v47 = vadd.f32 %v1204_v63, %v2514_v40  ;;  %v1475_v32 = vadd.f32 %v1474_v60, %v1473_v1  ;;  %2229 = vlog2.f32 %v1187_v13  ;;  %v1480_v57 = vadd.f32 %v1479_v18, %v1478_v49 }
 0x12c   :  { %v1399_v23 = vadd.f32 %v1398_v5, %v1397_v4  ;;  %v1401_v7 = vrot.slane %v1400_v61, 4  ;;  %v1249_v8 = vadd.f32 %v1248_v14, %v1247_v35  ;;  %v1227_v62 = vsel %vm2552_vm9, %v1219_v31, 1e-07 }
 0x12d   :  { %v1207_v24 = vmul.f32 %v1093_v16, %v1093_v16  ;;  %v2653_v11 = vmul.f32 %v1227_v62, %v1187_v13  ;;  %v1220_v48 = vmax.f32 %v1212_v47, 1e-07  ;;  %v1255_v40 = vrot.slane %v1254_v44, 4 }
 0x12e   :  { %v1514_v52 = vsel %vm1513_vm2, %v1399_v23, 0.0  ;;  %v1402_v10 = vadd.f32 %v1401_v7, %v1400_v61  ;;  %2231 = vlog2.f32 %v1227_v62  ;;  %v1199_v2 = vmul.f32 %v2408_v9, %v2408_v9 }
 0x12f   :  { %v1518_v51 = vadd.f32 %v1514_v52, %v2565_v22  ;;  %v1523_v17 = vsel %vm1522_vm3, %v1475_v32, 0.0  ;;  %2233 = vrsqrt.f32 %v2653_v11  ;;  %v1481_v26 = vrot.slane %v1480_v57, 1 }
 0x130   :  { %v1403_v34 = vrot.slane %v1402_v10, 2  ;;  %2235 = vlog2.f32 %v1188_v55  ;;  %v1250_v13 = vrot.slane %v1249_v8, 2  ;;  %v1228_v22 = vsel %vm2586_vm13, %v1220_v48, 1e-07 }
 0x131   :  { %v1527_v21 = vadd.f32 %v1523_v17, %v1518_v51  ;;  %v2230_v28 = vpop.eup %2229  ;;  %v1215_v30 = vadd.f32 %v1207_v24, %v1199_v2  ;;  %v1256_v9 = vadd.f32 %v1255_v40, %v1254_v44  ;;  %v2666_v33 = vmul.f32 %v1228_v22, %v1188_v55 }
 0x132   :  { %v1404_v1 = vadd.f32 %v1403_v34, %v1402_v10  ;;  %2237 = vlog2.f32 %v1228_v22  ;;  %v1131_v35 = vadd.f32 %v1130_v20, %v1111_v19  ;;  %v1200_v29 = vmul.f32 %v2410_v12, %v2410_v12 }
 0x133   :  { %1531 = vst [vmem:[%s2763_s5] sm:$0xff] %v1527_v21  ;;  %2239 = vlog2.f32 %v2617_v15  ;;  %v1223_v58 = vmax.f32 %v1215_v30, 1e-07  ;;  %v1482_v6 = vadd.f32 %v1481_v26, %v1480_v57  ;;  %v1442_v49 = vmul.f32 0.6931472, %v2230_v28 }
 0x134   :  { %v1405_v38 = vrot.slane %v1404_v1, 1  ;;  %v2232_v45 = vpop.eup %2231  ;;  %v1251_v46 = vadd.f32 %v1250_v13, %v1249_v8  ;;  %2241 = vrsqrt.f32 %v2666_v33  ;;  %v1208_v56 = vmul.f32 %v1131_v35, %v1131_v35 }
 0x135   :  { %v2234_v36 = vpop.eup %2233  ;;  %v1426_v50 = vmul.f32 0.6931472, %v2232_v45  ;;  %v1231_v54 = vsel %vm2559_vm10, %v1223_v58, 1e-07  ;;  %v1257_v3 = vrot.slane %v1256_v9, 2  ;;  %v1524_v44 = vsel %vm1522_vm3, %v1482_v6, 0.0 }
 0x136   :  { %v1406_v39 = vadd.f32 %v1405_v38, %v1404_v1  ;;  %v2236_v59 = vpop.eup %2235  ;;  %v1322_v12 = vmul.f32 %v2234_v36, %v2653_v11  ;;  %v1275_v60 = vadd.f32 %v1231_v54, %v1227_v62  ;;  %v2676_v55 = vmul.f32 %v1231_v54, %v2617_v15 }
 0x137   :  { %v1455_v63 = vsub.f32 %v1426_v50, %v1442_v49  ;;  %2243 = vlog2.f32 %v1231_v54  ;;  %v1216_v4 = vadd.f32 %v1208_v56, %v1200_v29  ;;  %v2684_v16 = vmul.f32 0.6931472, %v2236_v59 }
 0x138   :  { %v1515_v41 = vsel %vm1513_vm2, %v1406_v39, 0.0  ;;  %v2238_v0 = vpop.eup %2237  ;;  %v1323_v37 = vmul.f32 %v2234_v36, %v1322_v12  ;;  %v1276_v42 = vrot.slane %v1275_v60, 4  ;;  %2245 = vrsqrt.f32 %v2676_v55 }
 0x139   :  { %v1519_v14 = vadd.f32 %v1515_v41, %v2619_v25  ;;  %v2240_v18 = vpop.eup %2239  ;;  %v2686_v15 = vmul.f32 0.6931472, %v2238_v0  ;;  %v1252_v23 = vrot.slane %v1251_v46, 1  ;;  %v1224_v7 = vmax.f32 %v1216_v4, 1e-07 }
 0x13a   :  { %v2688_v5 = vpop.eup %2241  ;;  %v1324_v31 = vmul.f32 0.5, %v1323_v37  ;;  %v1277_v47 = vadd.f32 %v1276_v42, %v1275_v60  ;;  %v1258_v57 = vadd.f32 %v1257_v3, %v1256_v9  ;;  %2247 = vlog2.f32 %v2641_v43 }
 0x13b   :  { %v1528_v61 = vadd.f32 %v1524_v44, %v1519_v14  ;;  %v1334_v25 = vmul.f32 %v2688_v5, %v2666_v33  ;;  %v1456_v32 = vsub.f32 %v2686_v15, %v2684_v16  ;;  %v1450_v24 = vmul.f32 0.6931472, %v2240_v18 }
 0x13c   :  { %v1278_v8 = vrot.slane %v1277_v47, 2  ;;  %v1325_v52 = vsub.f32 1.5, %v1324_v31  ;;  %v1232_v10 = vsel %vm2594_vm14, %v1224_v7, 1e-07  ;;  %v1253_v34 = vadd.f32 %v1252_v23, %v1251_v46 }
 0x13d   :  { %1532 = vst [vmem:[%s2763_s5 + $0x8] sm:$0xff] %v1528_v61  ;;  %v2244_v62 = vpop.eup %2243  ;;  %v1335_v51 = vmul.f32 %v2688_v5, %v1334_v25  ;;  %v1282_v17 = vadd.f32 %v1232_v10, %v1228_v22  ;;  %v2703_v20 = vmul.f32 %v1232_v10, %v2641_v43  ;;  %2249 = vlog2.f32 %v1232_v10 }
 0x13e   :  { %v2246_v48 = vpop.eup %2245  ;;  %v1279_v40 = vadd.f32 %v1278_v8, %v1277_v47  ;;  %v1434_v2 = vmul.f32 0.6931472, %v2244_v62  ;;  %v1259_v21 = vrot.slane %v1258_v57, 1  ;;  %v1326_v1 = vmul.f32 %v2234_v36, %v1325_v52 }
 0x13f   :  { %v1370_v19 = vmul.f32 %v2246_v48, %v2676_v55  ;;  %v1283_v28 = vrot.slane %v1282_v17, 4  ;;  %v1463_v27 = vand.u32 2147483647, %v1455_v63  ;;  %2251 = vrsqrt.f32 %v2703_v20 }
 0x140   :  { %v1280_v26 = vrot.slane %v1279_v40, 1  ;;  %v1459_v13 = vsub.f32 %v1434_v2, %v1450_v24  ;;  %v2248_v9 = vpop.eup %2247  ;;  %v1336_v35 = vmul.f32 0.5, %v1335_v51  ;;  %v1502_v58 = vsel %vm1499_vm4, %v1253_v34, 0.0 }
 0x141   :  { %v1371_v30 = vmul.f32 %v2246_v48, %v1370_v19  ;;  %v1284_v38 = vadd.f32 %v1283_v28, %v1282_v17  ;;  %v1260_v45 = vadd.f32 %v1259_v21, %v1258_v57  ;;  %v1452_v39 = vmul.f32 0.6931472, %v2248_v9 }
 0x142   :  { %v1281_v29 = vadd.f32 %v1280_v26, %v1279_v40  ;;  %v1467_v22 = vand.u32 2147483647, %v1459_v13  ;;  %v1327_v50 = vmul.f32 %v1326_v1, %v2653_v11  ;;  %v1337_v59 = vsub.f32 1.5, %v1336_v35 }
 0x143   :  { %v1372_v43 = vmul.f32 0.5, %v1371_v30  ;;  %v1285_v46 = vrot.slane %v1284_v38, 2  ;;  %v2250_v36 = vpop.eup %2249  ;;  %vm1328_vm6 = vcmp.eq.f32.partialorder %v2653_v11, inf  ;;  %v1331_v63 = vand.u32 2147483648, %v2653_v11 }
 0x144   :  { %v1483_v6 = vadd.f32 %v1467_v22, %v1463_v27  ;;  %v1507_v49 = vsel %vm1504_vm5, %v1281_v29, 0.0  ;;  %v1436_v60 = vmul.f32 0.6931472, %v2250_v36  ;;  %vm1330_vm7 = vcmp.eq.f32.partialorder %v2653_v11, 0.0 }
 0x145   :  { %v1373_v54 = vsub.f32 1.5, %v1372_v43  ;;  %v2711_v56 = vadd.f32 %v1507_v49, %v1502_v58  ;;  %v1286_v12 = vadd.f32 %v1285_v46, %v1284_v38  ;;  %v2252_v41 = vpop.eup %2251  ;;  %v1503_v0 = vsel %vm1499_vm4, %v1260_v45, 0.0 }
 0x146   :  { %v1484_v3 = vrot.slane %v1483_v6, 4  ;;  %vm1376_vm8 = vcmp.eq.f32.partialorder %v2676_v55, inf  ;;  %v1382_v37 = vmul.f32 %v2252_v41, %v2703_v20  ;;  %v1329_v42 = vsel %vm1328_vm6, %v2653_v11, %v1327_v50 }
 0x147   :  { %v1374_v4 = vmul.f32 %v2246_v48, %v1373_v54  ;;  %v1287_v14 = vrot.slane %v1286_v12, 1  ;;  %v1460_v61 = vsub.f32 %v1436_v60, %v1452_v39  ;;  %v1338_v31 = vmul.f32 %v2688_v5, %v1337_v59 }
 0x148   :  { %v1485_v44 = vadd.f32 %v1484_v3, %v1483_v6  ;;  %v1379_v47 = vand.u32 2147483648, %v2676_v55  ;;  %v1383_v25 = vmul.f32 %v2252_v41, %v1382_v37  ;;  %v1464_v7 = vand.u32 2147483647, %v1456_v32 }
 0x149   :  { %v1375_v18 = vmul.f32 %v1374_v4, %v2676_v55  ;;  %v1288_v23 = vadd.f32 %v1287_v14, %v1286_v12  ;;  %vm1378_vm4 = vcmp.eq.f32.partialorder %v2676_v55, 0.0  ;;  %v1468_v8 = vand.u32 2147483647, %v1460_v61 }
 0x14a   :  { %v1332_v62 = vsel %vm1330_vm7, %v1331_v63, %v1329_v42  ;;  %v1384_v52 = vmul.f32 0.5, %v1383_v25  ;;  %v1486_v48 = vrot.slane %v1485_v44, 2  ;;  %v1339_v16 = vmul.f32 %v1338_v31, %v2666_v33 }
 0x14b   :  { %v1377_v57 = vsel %vm1376_vm8, %v2676_v55, %v1375_v18  ;;  %v1508_v5 = vsel %vm1504_vm5, %v1288_v23, 0.0  ;;  %v1490_v51 = vadd.f32 %v1468_v8, %v1464_v7  ;;  %vm1340_vm9 = vcmp.eq.f32.partialorder %v2666_v33, inf }
 0x14c   :  { %v1380_v24 = vsel %vm1378_vm4, %v1379_v47, %v1377_v57  ;;  %v1512_v40 = vadd.f32 %v1508_v5, %v1503_v0  ;;  %v1385_v15 = vsub.f32 1.5, %v1384_v52  ;;  %v1487_v11 = vadd.f32 %v1486_v48, %v1485_v44 }
 0x14d   :  { %v1407_v10 = vadd.f32 %v1380_v24, %v1332_v62  ;;  %v1491_v2 = vrot.slane %v1490_v51, 4  ;;  %v1341_v34 = vsel %vm1340_vm9, %v2666_v33, %v1339_v16  ;;  %v1343_v26 = vand.u32 2147483648, %v2666_v33 }
 0x14e   :  { %v1386_v17 = vmul.f32 %v2252_v41, %v1385_v15  ;;  %vm1388_vm5 = vcmp.eq.f32.partialorder %v2703_v20, inf  ;;  %v1391_v28 = vand.u32 2147483648, %v2703_v20  ;;  %vm1342_vm10 = vcmp.eq.f32.partialorder %v2666_v33, 0.0 }
 0x14f   :  { %v1408_v32 = vrot.slane %v1407_v10, 4  ;;  %v1492_v21 = vadd.f32 %v1491_v2, %v1490_v51  ;;  %vm1390_vm11 = vcmp.eq.f32.partialorder %v2703_v20, 0.0  ;;  %v1488_v30 = vrot.slane %v1487_v11, 1 }
 0x150   :  { %v1387_v19 = vmul.f32 %v1386_v17, %v2703_v20  ;;  %v1344_v9 = vsel %vm1342_vm10, %v1343_v26, %v1341_v34 }
 0x151   :  { %v1409_v55 = vadd.f32 %v1408_v32, %v1407_v10  ;;  %v1493_v22 = vrot.slane %v1492_v21, 2  ;;  %v1489_v45 = vadd.f32 %v1488_v30, %v1487_v11 }
 0x152   :  { %v1389_v1 = vsel %vm1388_vm5, %v2703_v20, %v1387_v19 }
 0x153   :  { %v1410_v13 = vrot.slane %v1409_v55, 2  ;;  %v1392_v35 = vsel %vm1390_vm11, %v1391_v28, %v1389_v1  ;;  %v1494_v49 = vadd.f32 %v1493_v22, %v1492_v21  ;;  %v1525_v20 = vsel %vm1522_vm3, %v1489_v45, 0.0 }
 0x154   :  { %v1414_v29 = vadd.f32 %v1392_v35, %v1344_v9 }
 0x155   :  { %v1411_v27 = vadd.f32 %v1410_v13, %v1409_v55  ;;  %v1495_v54 = vrot.slane %v1494_v49, 1 }
 0x156   :  { %v1415_v58 = vrot.slane %v1414_v29, 4 }
 0x157   :  { %v1412_v38 = vrot.slane %v1411_v27, 1  ;;  %v1496_v12 = vadd.f32 %v1495_v54, %v1494_v49 }
 0x158   :  { %v1416_v6 = vadd.f32 %v1415_v58, %v1414_v29 }
 0x159   :  { %v1413_v43 = vadd.f32 %v1412_v38, %v1411_v27 }
 0x15a   :  { %v1417_v36 = vrot.slane %v1416_v6, 2 }
 0x15b   :  { %v1516_v46 = vsel %vm1513_vm2, %v1413_v43, 0.0 }
 0x15c   :  { %v1520_v33 = vadd.f32 %v1516_v46, %v2711_v56  ;;  %v1418_v50 = vadd.f32 %v1417_v36, %v1416_v6  ;;  %v1526_v56 = vsel %vm1522_vm3, %v1496_v12, 0.0 }
 0x15e   :  { %v1529_v39 = vadd.f32 %v1525_v20, %v1520_v33  ;;  %v1419_v59 = vrot.slane %v1418_v50, 1 }
 0x160   :  { %1533 = vst [vmem:[%s2763_s5 + $0x10] sm:$0xff] %v1529_v39  ;;  %v1420_v3 = vadd.f32 %v1419_v59, %v1418_v50 }
 0x162   :  { %v1517_v60 = vsel %vm1513_vm2, %v1420_v3, 0.0 }
 0x163   :  { %v1521_v41 = vadd.f32 %v1517_v60, %v1512_v40 }
 0x165   :  { %v1530_v63 = vadd.f32 %v1526_v56, %v1521_v41 }
 0x167   :  { %1534 = vst [vmem:[%s2763_s5 + $0x18] sm:$0xff] %v1530_v63 }
 0x168   :  { %1539 = vsyncpa [#allocation3], 1 }

// kernel: _lambda_.4
= control target key start
LH: loop header
LB: loop body
LE: loop exit
PB: predicated region body
PF: predicated region fallthrough
CT: control target
= control target key end

     0   :  { %10 = vsyncpa [#allocation3], 0  ;;  %s1742_s21 = smov [#allocation2]   ;;  %s1743_s23 = smov 384   ;;  %s2075_s0 = inlined_call_operand.vmem [shape: s32[16,1], index: 0, kind: input, shape index: {}]   ;;  %s2076_s1 = inlined_call_operand.vmem [shape: s32[8,384], index: 1, kind: input, shape index: {}]   ;;  %s2077_s2 = inlined_call_operand.vmem [shape: bf16[16,256], index: 2, kind: input, shape index: {}]   ;;  %s2078_s3 = inlined_call_operand.vmem [shape: bf16[16,256], index: 3, kind: input, shape index: {}]   ;;  %s2079_s4 = inlined_call_operand.hbm [shape: bf16[256,768], index: 4, kind: input, shape index: {}]   ;;  %s2080_s5 = inlined_call_operand.vmem [shape: f32[1,8,384], index: 5, kind: output, shape index: {}]  }
   0x1   :  { %s23_s20 = sshll.u32 %s2079_s4, 4  ;;  %s25_s22 = sshll.u32 %s1742_s21, 4  ;;  %s24_s20 = int_to_ptr.hbm [resolvable:$true] %s23_s20  ;;  %s26_s22 = int_to_ptr.vmem [resolvable:$true] %s25_s22 }
   0x2   :  { %s1744_s24 = smov 24  }
   0x3   :  { %31 = dma.hbm_to_vmem [thread:$0]  %s24_s20, 12288, %s26_s22, [#allocation3], %s1743_s23, %s1743_s23, %s1744_s24  }
   0x4   :  { %1740 = dma.done.wait [#allocation3], 12288  }
   0x5   :  { %1741 = vsyncadd [#allocation3], 4294955008  ;;  %v1361_v0 = vld [vmem:[#allocation2 + $0x150] sm:$0xf]  ;;  %v1620_v1 = vld [vmem:[#allocation2 + $0x164] sm:$0xf0] }
   0x6   :  { %v1553_v2 = vld [vmem:[#allocation2 + $0x2d0] sm:$0xf]  ;;  %v1362_v3 = vor.u32 %v1620_v1, %v1361_v0  ;;  %v1668_v4 = vld [vmem:[#allocation2 + $0x2e4] sm:$0xf0]  ;;  %v1617_v5 = vld [vmem:[#allocation2 + $0x154] sm:$0xf] }
   0x7   :  { %v1363_v6 = vld [vmem:[#allocation2 + $0x168] sm:$0xf0]  ;;  %v1554_v7 = vor.u32 %v1668_v4, %v1553_v2  ;;  %v1665_v9 = vld [vmem:[#allocation2 + $0x2d4] sm:$0xf]  ;;  %v1337_v11 = vld [vmem:[#allocation2 + $0x120] sm:$0xf] }
   0x8   :  { %v1366_v8 = vor.u32 %v1617_v5, %v1363_v6  ;;  %v1555_v10 = vld [vmem:[#allocation2 + $0x2e8] sm:$0xf0]  ;;  %637 = vmatpush.bf16.msra.mxu0 %v1362_v3  ;;  %v1614_v13 = vld [vmem:[#allocation2 + $0x134] sm:$0xf0]  ;;  %v1529_v14 = vld [vmem:[#allocation2 + $0x2a0] sm:$0xf] }
   0x9   :  { %v1558_v12 = vor.u32 %v1665_v9, %v1555_v10  ;;  %v1662_v15 = vld [vmem:[#allocation2 + $0x2b4] sm:$0xf0]  ;;  %656 = vmatpush.bf16.msra.mxu1 %v1554_v7  ;;  %v1338_v16 = vor.u32 %v1614_v13, %v1337_v11  ;;  %v1611_v18 = vld [vmem:[#allocation2 + $0x124] sm:$0xf]  ;;  %v1339_v19 = vld [vmem:[#allocation2 + $0x138] sm:$0xf0] }
   0xa   :  { %675 = vmatpush.bf16.msra.mxu2 %v1366_v8  ;;  %v1530_v17 = vor.u32 %v1662_v15, %v1529_v14  ;;  %v1659_v20 = vld [vmem:[#allocation2 + $0x2a4] sm:$0xf]  ;;  %v1342_v21 = vor.u32 %v1611_v18, %v1339_v19  ;;  %v1531_v22 = vld [vmem:[#allocation2 + $0x2b8] sm:$0xf0]  ;;  %v1313_v23 = vld [vmem:[#allocation2 + $0xf0] sm:$0xf] }
   0xb   :  { %694 = vmatpush.bf16.msra.mxu3 %v1558_v12  ;;  %v1608_v24 = vld [vmem:[#allocation2 + $0x104] sm:$0xf0]  ;;  %v1534_v25 = vor.u32 %v1659_v20, %v1531_v22  ;;  %v1505_v26 = vld [vmem:[#allocation2 + $0x270] sm:$0xf]  ;;  %v1605_v28 = vld [vmem:[#allocation2 + $0xf4] sm:$0xf] }
   0xc   :  { %v1656_v27 = vld [vmem:[#allocation2 + $0x284] sm:$0xf0]  ;;  %638 = vmatpush.bf16.msra.mxu0 %v1338_v16  ;;  %v1314_v29 = vor.u32 %v1608_v24, %v1313_v23  ;;  %v1315_v30 = vld [vmem:[#allocation2 + $0x108] sm:$0xf0]  ;;  %v1653_v31 = vld [vmem:[#allocation2 + $0x274] sm:$0xf] }
   0xd   :  { %v1507_v32 = vld [vmem:[#allocation2 + $0x288] sm:$0xf0]  ;;  %657 = vmatpush.bf16.msra.mxu1 %v1530_v17  ;;  %v1506_v33 = vor.u32 %v1656_v27, %v1505_v26  ;;  %v1318_v34 = vor.u32 %v1605_v28, %v1315_v30  ;;  %v1289_v35 = vld [vmem:[#allocation2 + $0xc0] sm:$0xf]  ;;  %v1602_v36 = vld [vmem:[#allocation2 + $0xd4] sm:$0xf0] }
   0xe   :  { %676 = vmatpush.bf16.msra.mxu2 %v1342_v21  ;;  %v1481_v37 = vld [vmem:[#allocation2 + $0x240] sm:$0xf]  ;;  %v1510_v38 = vor.u32 %v1653_v31, %v1507_v32  ;;  %v1650_v39 = vld [vmem:[#allocation2 + $0x254] sm:$0xf0]  ;;  %v1599_v40 = vld [vmem:[#allocation2 + $0xc4] sm:$0xf]  ;;  %v1290_v44 = vor.u32 %v1602_v36, %v1289_v35 }
   0xf   :  { %695 = vmatpush.bf16.msra.mxu3 %v1534_v25  ;;  %v1291_v41 = vld [vmem:[#allocation2 + $0xd8] sm:$0xf0]  ;;  %v1647_v42 = vld [vmem:[#allocation2 + $0x244] sm:$0xf]  ;;  %v1482_v45 = vor.u32 %v1650_v39, %v1481_v37  ;;  %v1265_v47 = vld [vmem:[#allocation2 + $0x90] sm:$0xf] }
  0x10   :  { %v1483_v43 = vld [vmem:[#allocation2 + $0x258] sm:$0xf0]  ;;  %639 = vmatpush.bf16.msra.mxu0 %v1314_v29  ;;  %v1294_v46 = vor.u32 %v1599_v40, %v1291_v41  ;;  %v1596_v48 = vld [vmem:[#allocation2 + $0xa4] sm:$0xf0]  ;;  %v1457_v49 = vld [vmem:[#allocation2 + $0x210] sm:$0xf] }
  0x11   :  { %658 = vmatpush.bf16.msra.mxu1 %v1506_v33  ;;  %v1486_v50 = vor.u32 %v1647_v42, %v1483_v43  ;;  %v1644_v51 = vld [vmem:[#allocation2 + $0x224] sm:$0xf0]  ;;  %v1593_v52 = vld [vmem:[#allocation2 + $0x94] sm:$0xf]  ;;  %v1267_v53 = vld [vmem:[#allocation2 + $0xa8] sm:$0xf0]  ;;  %v1266_v56 = vor.u32 %v1596_v48, %v1265_v47 }
  0x12   :  { %677 = vmatpush.bf16.msra.mxu2 %v1318_v34  ;;  %v1641_v54 = vld [vmem:[#allocation2 + $0x214] sm:$0xf]  ;;  %v1459_v55 = vld [vmem:[#allocation2 + $0x228] sm:$0xf0]  ;;  %v1458_v57 = vor.u32 %v1644_v51, %v1457_v49  ;;  %v1270_v58 = vor.u32 %v1593_v52, %v1267_v53  ;;  %v1241_v59 = vld [vmem:[#allocation2 + $0x60] sm:$0xf] }
  0x13   :  { %696 = vmatpush.bf16.msra.mxu3 %v1510_v38  ;;  %v1590_v60 = vld [vmem:[#allocation2 + $0x74] sm:$0xf0]  ;;  %v1433_v61 = vld [vmem:[#allocation2 + $0x1e0] sm:$0xf]  ;;  %v1462_v62 = vor.u32 %v1641_v54, %v1459_v55  ;;  %v1587_v0 = vld [vmem:[#allocation2 + $0x64] sm:$0xf] }
  0x14   :  { %640 = vmatpush.bf16.msra.mxu0 %v1290_v44  ;;  %v1638_v63 = vld [vmem:[#allocation2 + $0x1f4] sm:$0xf0]  ;;  %v1243_v1 = vld [vmem:[#allocation2 + $0x78] sm:$0xf0]  ;;  %v1635_v2 = vld [vmem:[#allocation2 + $0x1e4] sm:$0xf]  ;;  %v1242_v4 = vor.u32 %v1590_v60, %v1241_v59 }
  0x15   :  { %659 = vmatpush.bf16.msra.mxu1 %v1482_v45  ;;  %v1435_v3 = vld [vmem:[#allocation2 + $0x1f8] sm:$0xf0]  ;;  %v1434_v5 = vor.u32 %v1638_v63, %v1433_v61  ;;  %v1246_v6 = vor.u32 %v1587_v0, %v1243_v1  ;;  %v1217_v7 = vld [vmem:[#allocation2 + $0x30] sm:$0xf]  ;;  %v1584_v8 = vld [vmem:[#allocation2 + $0x44] sm:$0xf0] }
  0x16   :  { %678 = vmatpush.bf16.msra.mxu2 %v1294_v46  ;;  %v1409_v9 = vld [vmem:[#allocation2 + $0x1b0] sm:$0xf]  ;;  %v1438_v10 = vor.u32 %v1635_v2, %v1435_v3  ;;  %v1632_v11 = vld [vmem:[#allocation2 + $0x1c4] sm:$0xf0]  ;;  %v1581_v12 = vld [vmem:[#allocation2 + $0x34] sm:$0xf]  ;;  %v1218_v16 = vor.u32 %v1584_v8, %v1217_v7 }
  0x17   :  { %697 = vmatpush.bf16.msra.mxu3 %v1486_v50  ;;  %v1219_v13 = vld [vmem:[#allocation2 + $0x48] sm:$0xf0]  ;;  %v1629_v14 = vld [vmem:[#allocation2 + $0x1b4] sm:$0xf]  ;;  %v1193_v17 = vld [vmem:[#allocation2] sm:$0xf]  ;;  %v1410_v19 = vor.u32 %v1632_v11, %v1409_v9 }
  0x18   :  { %641 = vmatpush.bf16.msra.mxu0 %v1266_v56  ;;  %v1411_v15 = vld [vmem:[#allocation2 + $0x1c8] sm:$0xf0]  ;;  %v1578_v18 = vld [vmem:[#allocation2 + $0x14] sm:$0xf0]  ;;  %v1222_v20 = vor.u32 %v1581_v12, %v1219_v13  ;;  %v1385_v21 = vld [vmem:[#allocation2 + $0x180] sm:$0xf] }
  0x19   :  { %660 = vmatpush.bf16.msra.mxu1 %v1458_v57  ;;  %v1626_v22 = vld [vmem:[#allocation2 + $0x194] sm:$0xf0]  ;;  %v1575_v23 = vld [vmem:[#allocation2 + $0x4] sm:$0xf]  ;;  %v1414_v24 = vor.u32 %v1629_v14, %v1411_v15  ;;  %v1195_v25 = vld [vmem:[#allocation2 + $0x18] sm:$0xf0]  ;;  %v1194_v31 = vor.u32 %v1578_v18, %v1193_v17 }
  0x1a   :  { %679 = vmatpush.bf16.msra.mxu2 %v1270_v58  ;;  %v1623_v26 = vld [vmem:[#allocation2 + $0x184] sm:$0xf]  ;;  %v1387_v27 = vld [vmem:[#allocation2 + $0x198] sm:$0xf0]  ;;  %v1177_v28 = vld [vmem:[%s2077_s2] sm:$0xf]  ;;  %v1386_v35 = vor.u32 %v1626_v22, %v1385_v21  ;;  %v1198_v36 = vor.u32 %v1575_v23, %v1195_v25 }
  0x1b   :  { %698 = vmatpush.bf16.msra.mxu3 %v1462_v62  ;;  %v1618_v29 = vld [vmem:[#allocation2 + $0x15c] sm:$0xf]  ;;  %v1371_v30 = vld [vmem:[#allocation2 + $0x170] sm:$0xf0]  ;;  %v1672_v32 = vld [vmem:[%s2077_s2 + $0x4] sm:$0xf0]  ;;  %v1390_v39 = vor.u32 %v1623_v26, %v1387_v27 }
  0x1c   :  { %642 = vmatpush.bf16.msra.mxu0 %v1242_v4  ;;  %v1666_v33 = vld [vmem:[#allocation2 + $0x2dc] sm:$0xf]  ;;  %v1563_v34 = vld [vmem:[#allocation2 + $0x2f0] sm:$0xf0]  ;;  %v1671_v37 = vld [vmem:[%s2077_s2 + $0x4] sm:$0xf]  ;;  %v1374_v40 = vor.u32 %v1618_v29, %v1371_v30  ;;  %v1791_v44 = vor.u32 %v1672_v32, %v1177_v28 }
  0x1d   :  { %661 = vmatpush.bf16.msra.mxu1 %v1434_v5  ;;  %v1179_v38 = vld [vmem:[%s2077_s2 + $0x8] sm:$0xf0]  ;;  %v1369_v41 = vld [vmem:[#allocation2 + $0x158] sm:$0xf]  ;;  %v1621_v42 = vld [vmem:[#allocation2 + $0x16c] sm:$0xf0]  ;;  %v1566_v45 = vor.u32 %v1666_v33, %v1563_v34 }
  0x1e   :  { %680 = vmatpush.bf16.msra.mxu2 %v1246_v6  ;;  %v1561_v43 = vld [vmem:[#allocation2 + $0x2d8] sm:$0xf]  ;;  %v1669_v46 = vld [vmem:[#allocation2 + $0x2ec] sm:$0xf0]  ;;  %v1612_v47 = vld [vmem:[#allocation2 + $0x12c] sm:$0xf]  ;;  %v1793_v49 = vor.u32 %v1671_v37, %v1179_v38  ;;  %v1370_v52 = vor.u32 %v1621_v42, %v1369_v41 }
  0x1f   :  { %699 = vmatpush.bf16.msra.mxu3 %v1438_v10  ;;  %v1347_v48 = vld [vmem:[#allocation2 + $0x140] sm:$0xf0]  ;;  %v1660_v50 = vld [vmem:[#allocation2 + $0x2ac] sm:$0xf]  ;;  %v1562_v53 = vor.u32 %v1669_v46, %v1561_v43  ;;  %v1345_v55 = vld [vmem:[#allocation2 + $0x128] sm:$0xf] }
  0x20   :  { %643 = vmatpush.bf16.msra.mxu0 %v1218_v16  ;;  %v1539_v51 = vld [vmem:[#allocation2 + $0x2c0] sm:$0xf0]  ;;  %v1350_v54 = vor.u32 %v1612_v47, %v1347_v48  ;;  %v1615_v56 = vld [vmem:[#allocation2 + $0x13c] sm:$0xf0]  ;;  %v1537_v57 = vld [vmem:[#allocation2 + $0x2a8] sm:$0xf] }
  0x21   :  { %662 = vmatpush.bf16.msra.mxu1 %v1410_v19  ;;  %v1542_v58 = vor.u32 %v1660_v50, %v1539_v51  ;;  %v1663_v59 = vld [vmem:[#allocation2 + $0x2bc] sm:$0xf0]  ;;  %v1606_v60 = vld [vmem:[#allocation2 + $0xfc] sm:$0xf]  ;;  %v1323_v61 = vld [vmem:[#allocation2 + $0x110] sm:$0xf0]  ;;  %v1346_v0 = vor.u32 %v1615_v56, %v1345_v55 }
  0x22   :  { %681 = vmatpush.bf16.msra.mxu2 %v1222_v20  ;;  %v1654_v62 = vld [vmem:[#allocation2 + $0x27c] sm:$0xf]  ;;  %v1515_v63 = vld [vmem:[#allocation2 + $0x290] sm:$0xf0]  ;;  %v1538_v1 = vor.u32 %v1663_v59, %v1537_v57  ;;  %v1326_v2 = vor.u32 %v1606_v60, %v1323_v61  ;;  %v1321_v3 = vld [vmem:[#allocation2 + $0xf8] sm:$0xf] }
  0x23   :  { %700 = vmatpush.bf16.msra.mxu3 %v1414_v24  ;;  %v1609_v4 = vld [vmem:[#allocation2 + $0x10c] sm:$0xf0]  ;;  %v1513_v5 = vld [vmem:[#allocation2 + $0x278] sm:$0xf]  ;;  %v1518_v6 = vor.u32 %v1654_v62, %v1515_v63  ;;  %v1600_v8 = vld [vmem:[#allocation2 + $0xcc] sm:$0xf] }
  0x24   :  { %644 = vmatpush.bf16.msra.mxu0 %v1194_v31  ;;  %v1657_v7 = vld [vmem:[#allocation2 + $0x28c] sm:$0xf0]  ;;  %v1299_v9 = vld [vmem:[#allocation2 + $0xe0] sm:$0xf0]  ;;  %v1648_v10 = vld [vmem:[#allocation2 + $0x24c] sm:$0xf]  ;;  %v1322_v12 = vor.u32 %v1609_v4, %v1321_v3 }
  0x25   :  { %663 = vmatpush.bf16.msra.mxu1 %v1386_v35  ;;  %v1491_v11 = vld [vmem:[#allocation2 + $0x260] sm:$0xf0]  ;;  %v1297_v13 = vld [vmem:[#allocation2 + $0xc8] sm:$0xf]  ;;  %v1514_v14 = vor.u32 %v1657_v7, %v1513_v5  ;;  %v1302_v15 = vor.u32 %v1600_v8, %v1299_v9  ;;  %v1603_v16 = vld [vmem:[#allocation2 + $0xdc] sm:$0xf0] }
  0x26   :  { %682 = vmatpush.bf16.msra.mxu2 %v1198_v36  ;;  %v1489_v17 = vld [vmem:[#allocation2 + $0x248] sm:$0xf]  ;;  %v1651_v18 = vld [vmem:[#allocation2 + $0x25c] sm:$0xf0]  ;;  %v1494_v19 = vor.u32 %v1648_v10, %v1491_v11  ;;  %v1594_v21 = vld [vmem:[#allocation2 + $0x9c] sm:$0xf]  ;;  %v1298_v26 = vor.u32 %v1603_v16, %v1297_v13 }
  0x27   :  { %701 = vmatpush.bf16.msra.mxu3 %v1390_v39  ;;  %645 = vmatmul.bf16.vlgmr.msra.gmra.mxu0 %v1791_v44  ;;  %v1185_v20 = vld [vmem:[%s2078_s3] sm:$0xf]  ;;  %v1275_v22 = vld [vmem:[#allocation2 + $0xb0] sm:$0xf0]  ;;  %v1674_v23 = vld [vmem:[%s2078_s3 + $0x4] sm:$0xf0]  ;;  %v1490_v29 = vor.u32 %v1651_v18, %v1489_v17 }
  0x28   :  { %664 = vmatmul.bf16.vlgmr.msra.gmra.mxu1 %v1793_v49  ;;  %713 = vmatpush.bf16.msrb.mxu0 %v1370_v52  ;;  %v1642_v24 = vld [vmem:[#allocation2 + $0x21c] sm:$0xf]  ;;  %v1467_v25 = vld [vmem:[#allocation2 + $0x230] sm:$0xf0]  ;;  %v1673_v27 = vld [vmem:[%s2078_s3 + $0x4] sm:$0xf]  ;;  %v1278_v30 = vor.u32 %v1594_v21, %v1275_v22  ;;  %v1811_v34 = vor.u32 %v1674_v23, %v1185_v20 }
  0x29   :  { %683 = vmatmul.bf16.vlgmr.msra.gmra.mxu2 %v1791_v44  ;;  %732 = vmatpush.bf16.msrb.mxu1 %v1562_v53  ;;  %v1187_v28 = vld [vmem:[%s2078_s3 + $0x8] sm:$0xf0]  ;;  %v1273_v31 = vld [vmem:[#allocation2 + $0x98] sm:$0xf]  ;;  %v1597_v32 = vld [vmem:[#allocation2 + $0xac] sm:$0xf0]  ;;  %v1470_v35 = vor.u32 %v1642_v24, %v1467_v25 }
  0x2a   :  { %751 = vmatpush.bf16.msrb.mxu2 %v1374_v40  ;;  %702 = vmatmul.bf16.vlgmr.msra.gmra.mxu3 %v1793_v49  ;;  %v1465_v33 = vld [vmem:[#allocation2 + $0x218] sm:$0xf]  ;;  %v1645_v36 = vld [vmem:[#allocation2 + $0x22c] sm:$0xf0]  ;;  %v1588_v37 = vld [vmem:[#allocation2 + $0x6c] sm:$0xf]  ;;  %v1813_v39 = vor.u32 %v1673_v27, %v1187_v28  ;;  %v1274_v42 = vor.u32 %v1597_v32, %v1273_v31 }
  0x2b   :  { %770 = vmatpush.bf16.msrb.mxu3 %v1566_v45  ;;  %v1251_v38 = vld [vmem:[#allocation2 + $0x80] sm:$0xf0]  ;;  %v1636_v40 = vld [vmem:[#allocation2 + $0x1ec] sm:$0xf]  ;;  %v1466_v43 = vor.u32 %v1645_v36, %v1465_v33  ;;  %v1249_v46 = vld [vmem:[#allocation2 + $0x68] sm:$0xf] }
  0x2c   :  { %714 = vmatpush.bf16.msrb.mxu0 %v1346_v0  ;;  %v1443_v41 = vld [vmem:[#allocation2 + $0x200] sm:$0xf0]  ;;  %v1254_v45 = vor.u32 %v1588_v37, %v1251_v38  ;;  %v1591_v47 = vld [vmem:[#allocation2 + $0x7c] sm:$0xf0]  ;;  %v1441_v48 = vld [vmem:[#allocation2 + $0x1e8] sm:$0xf] }
  0x2d   :  { %733 = vmatpush.bf16.msrb.mxu1 %v1538_v1  ;;  %v1446_v50 = vor.u32 %v1636_v40, %v1443_v41  ;;  %v1639_v51 = vld [vmem:[#allocation2 + $0x1fc] sm:$0xf0]  ;;  %v1582_v52 = vld [vmem:[#allocation2 + $0x3c] sm:$0xf]  ;;  %v1227_v53 = vld [vmem:[#allocation2 + $0x50] sm:$0xf0]  ;;  %v1250_v56 = vor.u32 %v1591_v47, %v1249_v46 }
  0x2e   :  { %752 = vmatpush.bf16.msrb.mxu2 %v1350_v54  ;;  %v1630_v54 = vld [vmem:[#allocation2 + $0x1bc] sm:$0xf]  ;;  %v1419_v55 = vld [vmem:[#allocation2 + $0x1d0] sm:$0xf0]  ;;  %v1225_v57 = vld [vmem:[#allocation2 + $0x38] sm:$0xf]  ;;  %v1230_v59 = vor.u32 %v1582_v52, %v1227_v53 }
  0x2f   :  { %771 = vmatpush.bf16.msrb.mxu3 %v1542_v58  ;;  %v1442_v58 = vor.u32 %v1639_v51, %v1441_v48  ;;  %v1585_v60 = vld [vmem:[#allocation2 + $0x4c] sm:$0xf0]  ;;  %v1417_v61 = vld [vmem:[#allocation2 + $0x1b8] sm:$0xf]  ;;  %v1422_v63 = vor.u32 %v1630_v54, %v1419_v55  ;;  %v1576_v0 = vld [vmem:[#allocation2 + $0xc] sm:$0xf] }
  0x30   :  { %715 = vmatpush.bf16.msrb.mxu0 %v1322_v12  ;;  %v1633_v62 = vld [vmem:[#allocation2 + $0x1cc] sm:$0xf0]  ;;  %v1203_v1 = vld [vmem:[#allocation2 + $0x20] sm:$0xf0]  ;;  %v1379_v5 = vld [vmem:[#allocation2 + $0x178] sm:$0xf0] }
  0x31   :  { %734 = vmatpush.bf16.msrb.mxu1 %v1514_v14  ;;  %v1395_v3 = vld [vmem:[#allocation2 + $0x1a0] sm:$0xf0]  ;;  %v1201_v7 = vld [vmem:[#allocation2 + $0x8] sm:$0xf]  ;;  %v1571_v9 = vld [vmem:[#allocation2 + $0x2f8] sm:$0xf0]  ;;  %v1418_v10 = vor.u32 %v1633_v62, %v1417_v61  ;;  %v1206_v11 = vor.u32 %v1576_v0, %v1203_v1 }
  0x32   :  { %753 = vmatpush.bf16.msrb.mxu2 %v1326_v2  ;;  %v1624_v2 = vld [vmem:[#allocation2 + $0x18c] sm:$0xf]  ;;  %v1619_v4 = vld [vmem:[#allocation2 + $0x164] sm:$0xf]  ;;  %v1579_v12 = vld [vmem:[#allocation2 + $0x1c] sm:$0xf0] }
  0x33   :  { %772 = vmatpush.bf16.msrb.mxu3 %v1518_v6  ;;  %v1226_v6 = vor.u32 %v1585_v60, %v1225_v57  ;;  %v1667_v8 = vld [vmem:[#allocation2 + $0x2e4] sm:$0xf]  ;;  %v1393_v13 = vld [vmem:[#allocation2 + $0x188] sm:$0xf]  ;;  %v1627_v14 = vld [vmem:[#allocation2 + $0x19c] sm:$0xf0]  ;;  %v1382_v16 = vor.u32 %v1619_v4, %v1379_v5  ;;  %v1202_v24 = vor.u32 %v1579_v12, %v1201_v7 }
  0x34   :  { %716 = vmatpush.bf16.msrb.mxu0 %v1298_v26  ;;  %v1377_v17 = vld [vmem:[#allocation2 + $0x160] sm:$0xf]  ;;  %v1622_v18 = vld [vmem:[#allocation2 + $0x174] sm:$0xf0]  ;;  %v1574_v20 = vor.u32 %v1667_v8, %v1571_v9  ;;  %v1613_v22 = vld [vmem:[#allocation2 + $0x134] sm:$0xf]  ;;  %v1394_v25 = vor.u32 %v1627_v14, %v1393_v13 }
  0x35   :  { %735 = vmatpush.bf16.msrb.mxu1 %v1490_v29  ;;  %v1670_v21 = vld [vmem:[#allocation2 + $0x2f4] sm:$0xf0]  ;;  %v1355_v23 = vld [vmem:[#allocation2 + $0x148] sm:$0xf0]  ;;  %v1378_v26 = vor.u32 %v1622_v18, %v1377_v17  ;;  %v1661_v27 = vld [vmem:[#allocation2 + $0x2b4] sm:$0xf] }
  0x36   :  { %754 = vmatpush.bf16.msrb.mxu2 %v1302_v15  ;;  %v1398_v15 = vor.u32 %v1624_v2, %v1395_v3  ;;  %v1547_v28 = vld [vmem:[#allocation2 + $0x2c8] sm:$0xf0]  ;;  %v865_v29 = vld [vmem:[%s2075_s0] sm:$0xff]  ;;  %v1358_v31 = vor.u32 %v1613_v22, %v1355_v23  ;;  %v1353_v32 = vld [vmem:[#allocation2 + $0x130] sm:$0xf]  ;;  %v1745_v40 = vmov 0  }
  0x37   :  { %773 = vmatpush.bf16.msrb.mxu3 %v1494_v19  ;;  %650 = vmatmul.bf16.gmra.mxu0 %v1811_v34  ;;  %v1569_v19 = vld [vmem:[#allocation2 + $0x2e0] sm:$0xf]  ;;  %v1616_v33 = vld [vmem:[#allocation2 + $0x144] sm:$0xf0]  ;;  %v1607_v37 = vld [vmem:[#allocation2 + $0x104] sm:$0xf]  ;;  %v1550_v41 = vor.u32 %v1661_v27, %v1547_v28 }
  0x38   :  { %669 = vmatmul.bf16.gmra.mxu1 %v1813_v39  ;;  %717 = vmatpush.bf16.msrb.mxu0 %v1274_v42  ;;  %v1664_v36 = vld [vmem:[#allocation2 + $0x2c4] sm:$0xf0]  ;;  %v1331_v38 = vld [vmem:[#allocation2 + $0x118] sm:$0xf0]  ;;  %v1354_v42 = vor.u32 %v1616_v33, %v1353_v32  ;;  %v1329_v48 = vld [vmem:[#allocation2 + $0x100] sm:$0xf] }
  0x39   :  { %688 = vmatmul.bf16.gmra.mxu2 %v1811_v34  ;;  %736 = vmatpush.bf16.msrb.mxu1 %v1466_v43  ;;  %v1655_v43 = vld [vmem:[#allocation2 + $0x284] sm:$0xf]  ;;  %v1334_v47 = vor.u32 %v1607_v37, %v1331_v38  ;;  %v1521_v51 = vld [vmem:[#allocation2 + $0x280] sm:$0xf]  ;;  %v1658_v52 = vld [vmem:[#allocation2 + $0x294] sm:$0xf0] }
  0x3a   :  { %755 = vmatpush.bf16.msrb.mxu2 %v1278_v30  ;;  %707 = vmatmul.bf16.gmra.mxu3 %v1813_v39  ;;  %v1570_v30 = vor.u32 %v1670_v21, %v1569_v19  ;;  %v1601_v53 = vld [vmem:[#allocation2 + $0xd4] sm:$0xf]  ;;  %v1307_v54 = vld [vmem:[#allocation2 + $0xe8] sm:$0xf0]  ;;  %v1522_v60 = vor.u32 %v1658_v52, %v1521_v51  ;;  %v1305_v62 = vld [vmem:[#allocation2 + $0xd0] sm:$0xf] }
  0x3b   :  { %774 = vmatpush.bf16.msrb.mxu3 %v1470_v35  ;;  %v1545_v35 = vld [vmem:[#allocation2 + $0x2b0] sm:$0xf]  ;;  %1679 = vset.pattern.permute.xlu0 %v1745_v40  ;;  %v1649_v57 = vld [vmem:[#allocation2 + $0x254] sm:$0xf]  ;;  %v1310_v61 = vor.u32 %v1601_v53, %v1307_v54  ;;  %v1652_v1 = vld [vmem:[#allocation2 + $0x264] sm:$0xf0] }
  0x3c   :  { %718 = vmatpush.bf16.msrb.mxu0 %v1250_v56  ;;  %871 = vperm.xlu0 %1679, %v865_v29   ;;  %v1546_v46 = vor.u32 %v1664_v36, %v1545_v35  ;;  %v1497_v0 = vld [vmem:[#allocation2 + $0x250] sm:$0xf]  ;;  %v1595_v2 = vld [vmem:[#allocation2 + $0xa4] sm:$0xf]  ;;  %v1283_v3 = vld [vmem:[#allocation2 + $0xb8] sm:$0xf0] }
  0x3d   :  { %737 = vmatpush.bf16.msrb.mxu1 %v1442_v58  ;;  %v1499_v58 = vld [vmem:[#allocation2 + $0x268] sm:$0xf0]  ;;  %v1475_v7 = vld [vmem:[#allocation2 + $0x238] sm:$0xf0]  ;;  %v1498_v8 = vor.u32 %v1652_v1, %v1497_v0  ;;  %v1286_v9 = vor.u32 %v1595_v2, %v1283_v3  ;;  %v1473_v12 = vld [vmem:[#allocation2 + $0x220] sm:$0xf] }
  0x3e   :  { %756 = vmatpush.bf16.msrb.mxu2 %v1254_v45  ;;  %v1523_v45 = vld [vmem:[#allocation2 + $0x298] sm:$0xf0]  ;;  %v1502_v4 = vor.u32 %v1649_v57, %v1499_v58  ;;  %v1646_v13 = vld [vmem:[#allocation2 + $0x234] sm:$0xf0]  ;;  %v1589_v14 = vld [vmem:[#allocation2 + $0x74] sm:$0xf] }
  0x3f   :  { %775 = vmatpush.bf16.msrb.mxu3 %v1446_v50  ;;  %v1610_v50 = vld [vmem:[#allocation2 + $0x114] sm:$0xf0]  ;;  %v1526_v55 = vor.u32 %v1655_v43, %v1523_v45  ;;  %v1637_v18 = vld [vmem:[#allocation2 + $0x1f4] sm:$0xf]  ;;  %v1451_v19 = vld [vmem:[#allocation2 + $0x208] sm:$0xf0] }
  0x40   :  { %719 = vmatpush.bf16.msrb.mxu0 %v1226_v6  ;;  %v1330_v56 = vor.u32 %v1610_v50, %v1329_v48  ;;  %v1643_v6 = vld [vmem:[#allocation2 + $0x224] sm:$0xf]  ;;  %v1257_v22 = vld [vmem:[#allocation2 + $0x70] sm:$0xf]  ;;  %v1592_v23 = vld [vmem:[#allocation2 + $0x84] sm:$0xf0]  ;;  %v1454_v28 = vor.u32 %v1637_v18, %v1451_v19 }
  0x41   :  { %738 = vmatpush.bf16.msrb.mxu1 %v1418_v10  ;;  %v1281_v10 = vld [vmem:[#allocation2 + $0xa0] sm:$0xf]  ;;  %v1235_v27 = vld [vmem:[#allocation2 + $0x58] sm:$0xf0]  ;;  %v1258_v29 = vor.u32 %v1592_v23, %v1257_v22  ;;  %v1586_v36 = vld [vmem:[#allocation2 + $0x54] sm:$0xf0] }
  0x42   :  { %757 = vmatpush.bf16.msrb.mxu2 %v1230_v59  ;;  %v866_v59 = vld [vmem:[%s2075_s0 + $0x8] sm:$0xff]  ;;  %v1233_v35 = vld [vmem:[#allocation2 + $0x40] sm:$0xf]  ;;  %v1634_v38 = vld [vmem:[#allocation2 + $0x1d4] sm:$0xf0] }
  0x43   :  { %776 = vmatpush.bf16.msrb.mxu3 %v1422_v63  ;;  %v1604_v63 = vld [vmem:[#allocation2 + $0xe4] sm:$0xf0]  ;;  %v1425_v37 = vld [vmem:[#allocation2 + $0x1c0] sm:$0xf]  ;;  %v1577_v40 = vld [vmem:[#allocation2 + $0x14] sm:$0xf]  ;;  %v1234_v43 = vor.u32 %v1586_v36, %v1233_v35 }
  0x44   :  { %720 = vmatpush.bf16.msrb.mxu0 %v1202_v24  ;;  %874 = vperm.xlu0 %1679, %v866_v59   ;;  %v1306_v5 = vor.u32 %v1604_v63, %v1305_v62  ;;  %v1449_v24 = vld [vmem:[#allocation2 + $0x1f0] sm:$0xf]  ;;  %v1625_v45 = vld [vmem:[#allocation2 + $0x194] sm:$0xf]  ;;  %v1403_v48 = vld [vmem:[#allocation2 + $0x1a8] sm:$0xf0] }
  0x45   :  { %739 = vmatpush.bf16.msrb.mxu1 %v1394_v25  ;;  %v1640_v25 = vld [vmem:[#allocation2 + $0x204] sm:$0xf0]  ;;  %v1209_v50 = vld [vmem:[#allocation2 + $0x10] sm:$0xf]  ;;  %v1406_v54 = vor.u32 %v1625_v45, %v1403_v48 }
  0x46   :  { %758 = vmatpush.bf16.msrb.mxu2 %v1206_v11  ;;  %v1598_v11 = vld [vmem:[#allocation2 + $0xb4] sm:$0xf0]  ;;  %v1450_v32 = vor.u32 %v1640_v25, %v1449_v24  ;;  %v1580_v51 = vld [vmem:[#allocation2 + $0x24] sm:$0xf0]  ;;  %v1401_v52 = vld [vmem:[#allocation2 + $0x190] sm:$0xf] }
  0x47   :  { %777 = vmatpush.bf16.msrb.mxu3 %v1398_v15  ;;  %721 = vmatmul.bf16.vlgmr.msrb.gmra.mxu0 %v1791_v44  ;;  %v1259_v15 = vld [vmem:[#allocation2 + $0x88] sm:$0xf0]  ;;  %v1282_v17 = vor.u32 %v1598_v11, %v1281_v10  ;;  %v1628_v53 = vld [vmem:[#allocation2 + $0x1a4] sm:$0xf0] }
  0x48   :  { %789 = vmatpush.bf16.msra.mxu0 %v1378_v26  ;;  %740 = vmatmul.bf16.vlgmr.msrb.gmra.mxu1 %v1793_v49  ;;  %v1262_v21 = vor.u32 %v1589_v14, %v1259_v15  ;;  %v1583_v26 = vld [vmem:[#allocation2 + $0x44] sm:$0xf] }
  0x49   :  { %808 = vmatpush.bf16.msra.mxu1 %v1570_v30  ;;  %759 = vmatmul.bf16.vlgmr.msrb.gmra.mxu2 %v1791_v44  ;;  %v1631_v30 = vld [vmem:[#allocation2 + $0x1c4] sm:$0xf]  ;;  %v1238_v33 = vor.u32 %v1583_v26, %v1235_v27 }
  0x4a   :  { %827 = vmatpush.bf16.msra.mxu2 %v1382_v16  ;;  %778 = vmatmul.bf16.vlgmr.msrb.gmra.mxu3 %v1793_v49  ;;  %v1478_v16 = vor.u32 %v1643_v6, %v1475_v7 }
  0x4b   :  { %846 = vmatpush.bf16.msra.mxu3 %v1574_v20  ;;  %v1474_v20 = vor.u32 %v1646_v13, %v1473_v12 }
  0x4c   :  { %790 = vmatpush.bf16.msra.mxu0 %v1354_v42 }
  0x4d   :  { %809 = vmatpush.bf16.msra.mxu1 %v1546_v46  ;;  %v1426_v46 = vor.u32 %v1634_v38, %v1425_v37 }
  0x4e   :  { %828 = vmatpush.bf16.msra.mxu2 %v1358_v31  ;;  %v1427_v31 = vld [vmem:[#allocation2 + $0x1d8] sm:$0xf0] }
  0x4f   :  { %847 = vmatpush.bf16.msra.mxu3 %v1550_v41  ;;  %v1211_v41 = vld [vmem:[#allocation2 + $0x28] sm:$0xf0]  ;;  %v1430_v42 = vor.u32 %v1631_v30, %v1427_v31 }
  0x50   :  { %791 = vmatpush.bf16.msra.mxu0 %v1330_v56  ;;  %v1402_v56 = vor.u32 %v1628_v53, %v1401_v52 }
  0x51   :  { %810 = vmatpush.bf16.msra.mxu1 %v1522_v60 }
  0x52   :  { %829 = vmatpush.bf16.msra.mxu2 %v1334_v47  ;;  %v1214_v47 = vor.u32 %v1577_v40, %v1211_v41 }
  0x53   :  { %848 = vmatpush.bf16.msra.mxu3 %v1526_v55  ;;  %v1210_v55 = vor.u32 %v1580_v51, %v1209_v50 }
  0x54   :  { %792 = vmatpush.bf16.msra.mxu0 %v1306_v5 }
  0x55   :  { %811 = vmatpush.bf16.msra.mxu1 %v1498_v8 }
  0x56   :  { %830 = vmatpush.bf16.msra.mxu2 %v1310_v61 }
  0x57   :  { %849 = vmatpush.bf16.msra.mxu3 %v1502_v4  ;;  %726 = vmatmul.bf16.gmra.mxu0 %v1811_v34 }
  0x58   :  { %793 = vmatpush.bf16.msra.mxu0 %v1282_v17  ;;  %745 = vmatmul.bf16.gmra.mxu1 %v1813_v39 }
  0x59   :  { %812 = vmatpush.bf16.msra.mxu1 %v1474_v20  ;;  %764 = vmatmul.bf16.gmra.mxu2 %v1811_v34 }
  0x5a   :  { %831 = vmatpush.bf16.msra.mxu2 %v1286_v9  ;;  %783 = vmatmul.bf16.gmra.mxu3 %v1813_v39 }
  0x5b   :  { %850 = vmatpush.bf16.msra.mxu3 %v1478_v16 }
  0x5c   :  { %794 = vmatpush.bf16.msra.mxu0 %v1258_v29 }
  0x5d   :  { %813 = vmatpush.bf16.msra.mxu1 %v1450_v32 }
  0x5e   :  { %832 = vmatpush.bf16.msra.mxu2 %v1262_v21 }
  0x5f   :  { %851 = vmatpush.bf16.msra.mxu3 %v1454_v28  ;;  %v1864_v28 = vld [vmem:[%s2076_s1] ss:$8 sm:$0x7] }
  0x60   :  { %795 = vmatpush.bf16.msra.mxu0 %v1234_v43  ;;  %v867_v37 = vperm.slane %v1864_v28, 0 }
  0x61   :  { %814 = vmatpush.bf16.msra.mxu1 %v1426_v46 }
  0x62   :  { %833 = vmatpush.bf16.msra.mxu2 %v1238_v33 }
  0x63   :  { %852 = vmatpush.bf16.msra.mxu3 %v1430_v42 }
  0x64   :  { %796 = vmatpush.bf16.msra.mxu0 %v1210_v55 }
  0x65   :  { %815 = vmatpush.bf16.msra.mxu1 %v1402_v56 }
  0x66   :  { %834 = vmatpush.bf16.msra.mxu2 %v1214_v47 }
  0x67   :  { %853 = vmatpush.bf16.msra.mxu3 %v1406_v54  ;;  %797 = vmatmul.bf16.vlgmr.msra.gmra.mxu0 %v1791_v44 }
  0x68   :  { %816 = vmatmul.bf16.vlgmr.msra.gmra.mxu1 %v1793_v49 }
  0x69   :  { %835 = vmatmul.bf16.vlgmr.msra.gmra.mxu2 %v1791_v44 }
  0x6a   :  { %854 = vmatmul.bf16.vlgmr.msra.gmra.mxu3 %v1793_v49 }
  0x77   :  { %802 = vmatmul.bf16.gmra.mxu0 %v1811_v34 }
  0x78   :  { %821 = vmatmul.bf16.gmra.mxu1 %v1813_v39 }
  0x79   :  { %840 = vmatmul.bf16.gmra.mxu2 %v1811_v34 }
  0x7a   :  { %859 = vmatmul.bf16.gmra.mxu3 %v1813_v39 }
  0xa4   :  { %v646_v57 = vpop.f32.mrf.mxu0 }
  0xa5   :  { %v665_v58 = vpop.f32.mrf.mxu1 }
  0xa6   :  { %v666_v21 = vadd.f32 %v665_v58, %v646_v57 }
  0xa8   :  { %v882_v26 = vmul.f32 %v666_v21, %v666_v21 }
  0xac   :  { %v684_v59 = vpop.f32.mrf.mxu2  ;;  %v648_v61 = vpop.f32.mrf.mxu0 }
  0xad   :  { %v703_v60 = vpop.f32.mrf.mxu3  ;;  %v667_v44 = vpop.f32.mrf.mxu1 }
  0xae   :  { %v1841_v62 = vadd.f32 %v703_v60, %v684_v59  ;;  %v1859_v22 = vpop.permute.xlu0 %871  ;;  %v668_v25 = vadd.f32 %v667_v44, %v648_v61 }
  0xaf   :  { %vm876_vm0 = vcmp.lt.s32.totalorder %v867_v37, %v1859_v22 }
  0xb0   :  { %v885_v36 = vmul.f32 %v668_v25, %v668_v25 }
  0xb4   :  { %v686_v63 = vpop.f32.mrf.mxu2  ;;  %v651_v1 = vpop.f32.mrf.mxu0 }
  0xb5   :  { %v705_v0 = vpop.f32.mrf.mxu3  ;;  %v670_v2 = vpop.f32.mrf.mxu1 }
  0xb6   :  { %v1843_v49 = vadd.f32 %v705_v0, %v686_v63  ;;  %v671_v27 = vadd.f32 %v670_v2, %v651_v1  ;;  %v1872_v46 = vpop.permute.xlu0 %874 }
  0xb7   :  { %vm1875_vm1 = vcmp.lt.s32.totalorder %v867_v37, %v1872_v46 }
  0xb8   :  { %v912_v40 = vmul.f32 %v671_v27, %v671_v27  ;;  %v869_v27 = vperm.slane %v1864_v28, 2 }
  0xba   :  { %vm1931_vm4 = vcmp.lt.s32.totalorder %v869_v27, %v1859_v22  ;;  %vm1972_vm11 = vcmp.lt.s32.totalorder %v869_v27, %v1872_v46 }
  0xbc   :  { %v689_v3 = vpop.f32.mrf.mxu2  ;;  %v653_v4 = vpop.f32.mrf.mxu0 }
  0xbd   :  { %v708_v34 = vpop.f32.mrf.mxu3  ;;  %v672_v39 = vpop.f32.mrf.mxu1 }
  0xbe   :  { %v1845_v5 = vadd.f32 %v708_v34, %v689_v3  ;;  %v673_v47 = vadd.f32 %v672_v39, %v653_v4 }
  0xc0   :  { %v915_v60 = vmul.f32 %v673_v47, %v673_v47 }
  0xc4   :  { %v691_v6 = vpop.f32.mrf.mxu2  ;;  %v722_v9 = vpop.f32.mrf.mxu0 }
  0xc5   :  { %v710_v7 = vpop.f32.mrf.mxu3  ;;  %v741_v10 = vpop.f32.mrf.mxu1 }
  0xc6   :  { %v1847_v8 = vadd.f32 %v710_v7, %v691_v6  ;;  %v1849_v11 = vadd.f32 %v741_v10, %v722_v9  ;;  %v868_v9 = vperm.slane %v1864_v28, 1 }
  0xc8   :  { %vm1899_vm2 = vcmp.lt.s32.totalorder %v868_v9, %v1859_v22  ;;  %vm1908_vm3 = vcmp.lt.s32.totalorder %v868_v9, %v1872_v46 }
  0xcc   :  { %v760_v12 = vpop.f32.mrf.mxu2  ;;  %v1851_v14 = vpop.f32.mrf.mxu0 }
  0xcd   :  { %v779_v13 = vpop.f32.mrf.mxu3  ;;  %v1853_v15 = vpop.f32.mrf.mxu1 }
  0xce   :  { %v780_v18 = vadd.f32 %v779_v13, %v760_v12 }
  0xd0   :  { %v888_v24 = vmul.f32 %v780_v18, %v780_v18 }
  0xd2   :  { %v894_v32 = vadd.f32 %v888_v24, %v882_v26  ;;  %v886_v26 = vmul.f32 %v1843_v49, %v1843_v49 }
  0xd4   :  { %v762_v16 = vpop.f32.mrf.mxu2  ;;  %v1855_v19 = vpop.f32.mrf.mxu0  ;;  %v900_v43 = vmax.f32 %v894_v32, 1e-07  ;;  %v916_v32 = vmul.f32 %v1847_v8, %v1847_v8 }
  0xd5   :  { %v781_v17 = vpop.f32.mrf.mxu3  ;;  %v1857_v20 = vpop.f32.mrf.mxu1 }
  0xd6   :  { %v782_v23 = vadd.f32 %v781_v17, %v762_v16  ;;  %v906_v53 = vsel %vm876_vm0, %v900_v43, 1e-07  ;;  %v1140_v16 = vlaneseq }
  0xd8   :  { %v891_v30 = vmul.f32 %v782_v23, %v782_v23  ;;  %v883_v23 = vmul.f32 %v1841_v62, %v1841_v62  ;;  %v1903_v37 = vshrl.u32 %v1140_v16, 7 }
  0xda   :  { %v897_v42 = vadd.f32 %v891_v30, %v885_v36  ;;  %vm1142_vm9 = vcmp.eq.s32.totalorder %v1903_v37, 0  ;;  %vm1146_vm10 = vcmp.eq.s32.totalorder %v1903_v37, 1  ;;  %vm1160_vm12 = vcmp.eq.s32.totalorder %v1903_v37, 3 }
  0xdb   :  { %vm1153_vm13 = vcmp.eq.s32.totalorder %v1903_v37, 2 }
  0xdc   :  { %v765_v29 = vpop.f32.mrf.mxu2  ;;  %v1866_v35 = vpop.f32.mrf.mxu0  ;;  %v903_v51 = vmax.f32 %v897_v42, 1e-07 }
  0xdd   :  { %v784_v31 = vpop.f32.mrf.mxu3  ;;  %v1869_v38 = vpop.f32.mrf.mxu1 }
  0xde   :  { %v785_v33 = vadd.f32 %v784_v31, %v765_v29  ;;  %v909_v44 = vsel %vm1875_vm1, %v903_v51, 1e-07  ;;  %v913_v31 = vmul.f32 %v1845_v5, %v1845_v5 }
  0xdf   :  { %v942_v3 = vadd.f32 %v909_v44, %v906_v53 }
  0xe0   :  { %v918_v41 = vmul.f32 %v785_v33, %v785_v33 }
  0xe1   :  { %v943_v24 = vrot.slane %v942_v3, 4 }
  0xe2   :  { %v924_v45 = vadd.f32 %v918_v41, %v912_v40 }
  0xe3   :  { %v944_v5 = vadd.f32 %v943_v24, %v942_v3  ;;  %v749_v24 = vadd.f32 %v1869_v38, %v1866_v35 }
  0xe4   :  { %v930_v48 = vmax.f32 %v924_v45, 1e-07  ;;  %v767_v50 = vpop.f32.mrf.mxu2  ;;  %v798_v57 = vpop.f32.mrf.mxu0 }
  0xe5   :  { %v786_v52 = vpop.f32.mrf.mxu3  ;;  %v817_v59 = vpop.f32.mrf.mxu1 }
  0xe6   :  { %v936_v55 = vsel %vm876_vm0, %v930_v48, 1e-07  ;;  %v787_v56 = vadd.f32 %v786_v52, %v767_v50  ;;  %v818_v0 = vadd.f32 %v817_v59, %v798_v57  ;;  %v747_v57 = vadd.f32 %v1857_v20, %v1855_v19 }
  0xe7   :  { %v1879_v58 = vmul.f32 %v936_v55, %v906_v53  ;;  %1680 = vlog2.f32 %v936_v55 }
  0xe8   :  { %v921_v61 = vmul.f32 %v787_v56, %v787_v56  ;;  %v889_v12 = vmul.f32 %v818_v0, %v818_v0  ;;  %v884_v56 = vmul.f32 %v1849_v11, %v1849_v11  ;;  %v914_v19 = vmul.f32 %v747_v57, %v747_v57 }
  0xe9   :  { %1682 = vrsqrt.f32 %v1879_v58  ;;  %vm997_vm5 = vcmp.eq.f32.partialorder %v1879_v58, inf  ;;  %vm999_vm6 = vcmp.eq.f32.partialorder %v1879_v58, 0.0 }
  0xea   :  { %v927_v63 = vadd.f32 %v921_v61, %v915_v60  ;;  %1684 = vlog2.f32 %v906_v53  ;;  %v895_v62 = vadd.f32 %v889_v12, %v883_v23 }
  0xeb   :  { %1686 = vlog2.f32 %v909_v44 }
  0xec   :  { %v933_v1 = vmax.f32 %v927_v63, 1e-07  ;;  %v836_v2 = vpop.f32.mrf.mxu2  ;;  %v800_v6 = vpop.f32.mrf.mxu0  ;;  %v901_v59 = vmax.f32 %v895_v62, 1e-07 }
  0xed   :  { %v855_v34 = vpop.f32.mrf.mxu3  ;;  %v1681_v4 = vpop.eup %1680 }
  0xee   :  { %v939_v39 = vsel %vm1875_vm1, %v933_v1, 1e-07  ;;  %v819_v13 = vpop.f32.mrf.mxu1  ;;  %v1084_v30 = vmul.f32 0.6931472, %v1681_v4  ;;  %v856_v53 = vadd.f32 %v855_v34, %v836_v2  ;;  %v945_v2 = vrot.slane %v944_v5, 2 }
  0xef   :  { %v1683_v7 = vpop.eup %1682  ;;  %v1887_v10 = vmul.f32 %v939_v39, %v909_v44  ;;  %1688 = vlog2.f32 %v939_v39  ;;  %v963_v18 = vadd.f32 %v939_v39, %v936_v55  ;;  %v820_v33 = vadd.f32 %v819_v13, %v800_v6 }
  0xf0   :  { %v991_v17 = vmul.f32 %v1683_v7, %v1879_v58  ;;  %v1685_v21 = vpop.eup %1684  ;;  %v1918_v44 = vadd.f32 %v1853_v15, %v1851_v14  ;;  %v890_v9 = vmul.f32 %v856_v53, %v856_v53  ;;  %v907_v20 = vsel %vm1899_vm2, %v901_v59, 1e-07 }
  0xf1   :  { %1690 = vrsqrt.f32 %v1887_v10  ;;  %v1687_v25 = vpop.eup %1686  ;;  %v1096_v36 = vmul.f32 0.6931472, %v1685_v21  ;;  %v964_v41 = vrot.slane %v963_v18, 4  ;;  %v892_v47 = vmul.f32 %v820_v33, %v820_v33 }
  0xf2   :  { %v992_v29 = vmul.f32 %v1683_v7, %v991_v17  ;;  %v1102_v45 = vmul.f32 0.6931472, %v1687_v25  ;;  %v946_v21 = vadd.f32 %v945_v2, %v944_v5  ;;  %v896_v62 = vadd.f32 %v890_v9, %v884_v56 }
  0xf3   :  { %v1107_v51 = vsub.f32 %v1084_v30, %v1096_v36  ;;  %v898_v60 = vadd.f32 %v892_v47, %v886_v26  ;;  %v965_v63 = vadd.f32 %v964_v41, %v963_v18  ;;  %v1000_v26 = vand.u32 2147483648, %v1879_v58 }
  0xf4   :  { %v993_v40 = vmul.f32 0.5, %v992_v29  ;;  %v1905_v49 = vpop.f32.mrf.mxu2  ;;  %v803_v54 = vpop.f32.mrf.mxu0  ;;  %vm1033_vm7 = vcmp.eq.f32.partialorder %v1887_v10, inf  ;;  %1692 = vlog2.f32 %v907_v20  ;;  %vm1035_vm8 = vcmp.eq.f32.partialorder %v1887_v10, 0.0 }
  0xf5   :  { %v1689_v42 = vpop.eup %1688  ;;  %v857_v48 = vpop.f32.mrf.mxu3  ;;  %v904_v34 = vmax.f32 %v898_v60, 1e-07  ;;  %v1113_v39 = vand.u32 2147483647, %v1107_v51  ;;  %v966_v12 = vrot.slane %v965_v63, 2  ;;  %v1036_v51 = vand.u32 2147483648, %v1887_v10 }
  0xf6   :  { %v994_v50 = vsub.f32 1.5, %v993_v40  ;;  %v1090_v52 = vmul.f32 0.6931472, %v1689_v42  ;;  %v822_v61 = vpop.f32.mrf.mxu1  ;;  %v858_v53 = vadd.f32 %v857_v48, %v1905_v49  ;;  %v947_v49 = vrot.slane %v946_v21, 1 }
  0xf7   :  { %v1691_v55 = vpop.eup %1690  ;;  %v823_v4 = vadd.f32 %v822_v61, %v803_v54  ;;  %v1925_v14 = vsel %vm1908_vm3, %v904_v34, 1e-07  ;;  %v967_v41 = vadd.f32 %v966_v12, %v965_v63  ;;  %v887_v2 = vmul.f32 %v1918_v44, %v1918_v44 }
  0xf8   :  { %v1027_v0 = vmul.f32 %v1691_v55, %v1887_v10  ;;  %v1110_v1 = vsub.f32 %v1090_v52, %v1102_v45  ;;  %v995_v3 = vmul.f32 %v1683_v7, %v994_v50  ;;  %v949_v7 = vadd.f32 %v1925_v14, %v907_v20 }
  0xf9   :  { %v919_v15 = vmul.f32 %v823_v4, %v823_v4  ;;  %v968_v56 = vrot.slane %v967_v41, 1  ;;  %v893_v8 = vmul.f32 %v858_v53, %v858_v53 }
  0xfa   :  { %v1028_v11 = vmul.f32 %v1691_v55, %v1027_v0  ;;  %v1116_v6 = vand.u32 2147483647, %v1110_v1  ;;  %v996_v23 = vmul.f32 %v995_v3, %v1879_v58  ;;  %v950_v52 = vrot.slane %v949_v7, 4  ;;  %v1693_v1 = vpop.eup %1692 }
  0xfb   :  { %v925_v22 = vadd.f32 %v919_v15, %v913_v31  ;;  %v902_v31 = vmax.f32 %v896_v62, 1e-07  ;;  %v917_v3 = vmul.f32 %v749_v24, %v749_v24  ;;  %v969_v44 = vadd.f32 %v968_v56, %v967_v41 }
  0xfc   :  { %v1029_v13 = vmul.f32 0.5, %v1028_v11  ;;  %v1119_v16 = vadd.f32 %v1116_v6, %v1113_v39  ;;  %v841_v17 = vpop.f32.mrf.mxu2  ;;  %v805_v33 = vpop.f32.mrf.mxu0  ;;  %v998_v35 = vsel %vm997_vm5, %v1879_v58, %v996_v23  ;;  %v948_v15 = vadd.f32 %v947_v49, %v946_v21 }
  0xfd   :  { %v860_v25 = vpop.f32.mrf.mxu3  ;;  %v931_v38 = vmax.f32 %v925_v22, 1e-07  ;;  %v1001_v57 = vsel %vm999_vm6, %v1000_v26, %v998_v35  ;;  %v1967_v4 = vsel %vm1931_vm4, %v902_v31, 1e-07  ;;  %v899_v18 = vadd.f32 %v893_v8, %v887_v2 }
  0xfe   :  { %v1030_v29 = vsub.f32 1.5, %v1029_v13  ;;  %v1120_v30 = vrot.slane %v1119_v16, 4  ;;  %v861_v36 = vadd.f32 %v860_v25, %v841_v17  ;;  %v824_v40 = vpop.f32.mrf.mxu1  ;;  %v1981_v13 = vmul.f32 0.6931472, %v1693_v1 }
  0xff   :  { %v825_v47 = vadd.f32 %v824_v40, %v805_v33  ;;  %v937_v54 = vsel %vm1899_vm2, %v931_v38, 1e-07  ;;  %v1147_v25 = vsel %vm1146_vm10, %v969_v44, 0.0  ;;  %v1143_v43 = vsel %vm1142_vm9, %v948_v15, 0.0 }
 0x100   :  { %v1031_v42 = vmul.f32 %v1691_v55, %v1030_v29  ;;  %v1121_v5 = vadd.f32 %v1120_v30, %v1119_v16  ;;  %v920_v45 = vmul.f32 %v861_v36, %v861_v36  ;;  %v1956_v63 = vmul.f32 %v937_v54, %v907_v20 }
 0x101   :  { %1694 = vlog2.f32 %v937_v54  ;;  %v922_v0 = vmul.f32 %v825_v47, %v825_v47 }
 0x102   :  { %v1032_v50 = vmul.f32 %v1031_v42, %v1887_v10  ;;  %v926_v55 = vadd.f32 %v920_v45, %v914_v19  ;;  %v1122_v60 = vrot.slane %v1121_v5, 2  ;;  %1696 = vrsqrt.f32 %v1956_v63 }
 0x103   :  { %v928_v20 = vadd.f32 %v922_v0, %v916_v32  ;;  %1698 = vlog2.f32 %v1925_v14  ;;  %vm1009_vm14 = vcmp.eq.f32.partialorder %v1956_v63, inf  ;;  %vm1011_vm15 = vcmp.eq.f32.partialorder %v1956_v63, 0.0 }
 0x104   :  { %v1034_v59 = vsel %vm1033_vm7, %v1887_v10, %v1032_v50  ;;  %v932_v58 = vmax.f32 %v926_v55, 1e-07  ;;  %v951_v10 = vadd.f32 %v950_v52, %v949_v7  ;;  %v843_v39 = vpop.f32.mrf.mxu2  ;;  %v1123_v9 = vadd.f32 %v1122_v60, %v1121_v5 }
 0x105   :  { %v1037_v61 = vsel %vm1035_vm8, %v1036_v51, %v1034_v59  ;;  %v862_v11 = vpop.f32.mrf.mxu3  ;;  %v934_v16 = vmax.f32 %v928_v20, 1e-07  ;;  %v905_v5 = vmax.f32 %v899_v18, 1e-07  ;;  %v1150_v52 = vadd.f32 %v1147_v25, %v1143_v43 }
 0x106   :  { %v1062_v48 = vadd.f32 %v1037_v61, %v1001_v57  ;;  %v1978_v19 = vsel %vm1931_vm4, %v932_v58, 1e-07  ;;  %v952_v27 = vrot.slane %v951_v10, 2  ;;  %v863_v7 = vadd.f32 %v862_v11, %v843_v39 }
 0x107   :  { %v1985_v28 = vmul.f32 %v1978_v19, %v1967_v4  ;;  %v1695_v46 = vpop.eup %1694  ;;  %v1124_v24 = vrot.slane %v1123_v9, 1  ;;  %v940_v26 = vsel %vm1908_vm3, %v934_v16, 1e-07  ;;  %v911_v59 = vsel %vm1972_vm11, %v905_v5, 1e-07 }
 0x108   :  { %v1063_v34 = vrot.slane %v1062_v48, 4  ;;  %v1086_v23 = vmul.f32 0.6931472, %v1695_v46  ;;  %v1697_v21 = vpop.eup %1696  ;;  %v923_v29 = vmul.f32 %v863_v7, %v863_v7  ;;  %v970_v22 = vadd.f32 %v940_v26, %v937_v54 }
 0x109   :  { %1700 = vrsqrt.f32 %v1985_v28  ;;  %v1003_v62 = vmul.f32 %v1697_v21, %v1956_v63  ;;  %v953_v36 = vadd.f32 %v952_v27, %v951_v10  ;;  %v1996_v40 = vmul.f32 %v940_v26, %v1925_v14  ;;  %v1699_v45 = vpop.eup %1698 }
 0x10a   :  { %v1064_v12 = vadd.f32 %v1063_v34, %v1062_v48  ;;  %v1108_v33 = vsub.f32 %v1086_v23, %v1981_v13  ;;  %1702 = vlog2.f32 %v940_v26  ;;  %v929_v41 = vadd.f32 %v923_v29, %v917_v3 }
 0x10b   :  { %v1004_v35 = vmul.f32 %v1697_v21, %v1003_v62  ;;  %v971_v38 = vrot.slane %v970_v22, 4  ;;  %v1125_v47 = vadd.f32 %v1124_v24, %v1123_v9  ;;  %1704 = vrsqrt.f32 %v1996_v40 }
 0x10c   :  { %v1065_v17 = vrot.slane %v1064_v12, 2  ;;  %1706 = vlog2.f32 %v1967_v4  ;;  %v954_v53 = vrot.slane %v953_v36, 1  ;;  %v935_v55 = vmax.f32 %v929_v41, 1e-07 }
 0x10d   :  { %v1005_v14 = vmul.f32 0.5, %v1004_v35  ;;  %v972_v31 = vadd.f32 %v971_v38, %v970_v22  ;;  %v1104_v57 = vmul.f32 0.6931472, %v1699_v45  ;;  %v1161_v1 = vsel %vm1160_vm12, %v1125_v47, 0.0 }
 0x10e   :  { %v1066_v30 = vadd.f32 %v1065_v17, %v1064_v12  ;;  %v941_v49 = vsel %vm1972_vm11, %v935_v55, 1e-07  ;;  %1708 = vlog2.f32 %v1978_v19  ;;  %v955_v34 = vadd.f32 %v954_v53, %v953_v36 }
 0x10f   :  { %v2002_v50 = vpop.eup %1700  ;;  %v973_v60 = vrot.slane %v972_v31, 2  ;;  %v1006_v48 = vsub.f32 1.5, %v1005_v14  ;;  %v2017_v8 = vmul.f32 %v941_v49, %v911_v59  ;;  %1710 = vlog2.f32 %v911_v59 }
 0x110   :  { %v1067_v42 = vrot.slane %v1066_v30, 1  ;;  %v1015_v54 = vmul.f32 %v2002_v50, %v1985_v28  ;;  %v1703_v61 = vpop.eup %1702  ;;  %v1114_v6 = vand.u32 2147483647, %v1108_v33  ;;  %v1144_v27 = vsel %vm1142_vm9, %v955_v34, 0.0 }
 0x111   :  { %v974_v58 = vadd.f32 %v973_v60, %v972_v31  ;;  %v1092_v2 = vmul.f32 0.6931472, %v1703_v61  ;;  %v1705_v10 = vpop.eup %1704  ;;  %1712 = vrsqrt.f32 %v2017_v8  ;;  %v1007_v15 = vmul.f32 %v1697_v21, %v1006_v48 }
 0x112   :  { %v1068_v51 = vadd.f32 %v1067_v42, %v1066_v30  ;;  %v1016_v32 = vmul.f32 %v2002_v50, %v1015_v54  ;;  %v1707_v39 = vpop.eup %1706  ;;  %v1039_v44 = vmul.f32 %v1705_v10, %v1996_v40  ;;  %v956_v16 = vadd.f32 %v911_v59, %v1967_v4 }
 0x113   :  { %v975_v11 = vrot.slane %v974_v58, 1  ;;  %v1111_v9 = vsub.f32 %v1092_v2, %v1104_v57  ;;  %v977_v24 = vadd.f32 %v941_v49, %v1978_v19  ;;  %1714 = vlog2.f32 %v941_v49 }
 0x114   :  { %v1154_v56 = vsel %vm1153_vm13, %v1068_v51, 0.0  ;;  %v1017_v20 = vmul.f32 0.5, %v1016_v32  ;;  %v1040_v13 = vmul.f32 %v1705_v10, %v1039_v44  ;;  %v1709_v7 = vpop.eup %1708  ;;  %v1008_v29 = vmul.f32 %v1007_v15, %v1956_v63 }
 0x115   :  { %v1157_v0 = vadd.f32 %v1154_v56, %v1150_v52  ;;  %v976_v12 = vadd.f32 %v975_v11, %v974_v58  ;;  %v1117_v46 = vand.u32 2147483647, %v1111_v9  ;;  %v1711_v21 = vpop.eup %1710  ;;  %v1100_v22 = vmul.f32 0.6931472, %v1707_v39 }
 0x116   :  { %v1041_v17 = vmul.f32 0.5, %v1040_v13  ;;  %v1018_v25 = vsub.f32 1.5, %v1017_v20  ;;  %v957_v4 = vrot.slane %v956_v16, 4  ;;  %v1088_v36 = vmul.f32 0.6931472, %v1709_v7 }
 0x117   :  { %v1164_v3 = vadd.f32 %v1161_v1, %v1157_v0  ;;  %v1126_v18 = vadd.f32 %v1117_v46, %v1114_v6  ;;  %v1148_v23 = vsel %vm1146_vm10, %v976_v12, 0.0  ;;  %v1713_v33 = vpop.eup %1712  ;;  %v978_v42 = vrot.slane %v977_v24, 4 }
 0x118   :  { %v2030_v26 = vadd.f32 %v1148_v23, %v1144_v27  ;;  %v1042_v30 = vsub.f32 1.5, %v1041_v17  ;;  %v1051_v5 = vmul.f32 %v1713_v33, %v2017_v8  ;;  %v1106_v19 = vmul.f32 0.6931472, %v1711_v21 }
 0x119   :  { %1167 = vst [vmem:[%s2080_s5] sm:$0xff] %v1164_v3  ;;  %v1127_v62 = vrot.slane %v1126_v18, 4  ;;  %v1012_v35 = vand.u32 2147483648, %v1956_v63  ;;  %v1019_v38 = vmul.f32 %v2002_v50, %v1018_v25  ;;  %v1010_v45 = vsel %vm1009_vm14, %v1956_v63, %v1008_v29  ;;  %v1715_v14 = vpop.eup %1714 }
 0x11a   :  { %v1043_v41 = vmul.f32 %v1705_v10, %v1042_v30  ;;  %v1052_v51 = vmul.f32 %v1713_v33, %v1051_v5  ;;  %v1109_v31 = vsub.f32 %v1088_v36, %v1100_v22  ;;  %vm1045_vm0 = vcmp.eq.f32.partialorder %v1996_v40, inf }
 0x11b   :  { %v1128_v47 = vadd.f32 %v1127_v62, %v1126_v18  ;;  %vm1047_vm1 = vcmp.eq.f32.partialorder %v1996_v40, 0.0  ;;  %v1048_v52 = vand.u32 2147483648, %v1996_v40  ;;  %v979_v54 = vadd.f32 %v978_v42, %v977_v24 }
 0x11c   :  { %v1044_v43 = vmul.f32 %v1043_v41, %v1996_v40  ;;  %v1053_v50 = vmul.f32 0.5, %v1052_v51  ;;  %v1094_v55 = vmul.f32 0.6931472, %v1715_v14  ;;  %v958_v56 = vadd.f32 %v957_v4, %v956_v16 }
 0x11d   :  { %v1020_v57 = vmul.f32 %v1019_v38, %v1985_v28  ;;  %v1013_v59 = vsel %vm1011_vm15, %v1012_v35, %v1010_v45  ;;  %v1129_v0 = vrot.slane %v1128_v47, 2  ;;  %vm1021_vm2 = vcmp.eq.f32.partialorder %v1985_v28, inf }
 0x11e   :  { %v1046_v53 = vsel %vm1045_vm0, %v1996_v40, %v1044_v43  ;;  %v1054_v1 = vsub.f32 1.5, %v1053_v50  ;;  %v1112_v32 = vsub.f32 %v1094_v55, %v1106_v19  ;;  %v1115_v49 = vand.u32 2147483647, %v1109_v31 }
 0x11f   :  { %v1049_v60 = vsel %vm1047_vm1, %v1048_v52, %v1046_v53  ;;  %v980_v58 = vrot.slane %v979_v54, 2  ;;  %v959_v10 = vrot.slane %v958_v56, 2  ;;  %v1024_v3 = vand.u32 2147483648, %v1985_v28 }
 0x120   :  { %v1069_v61 = vadd.f32 %v1049_v60, %v1013_v59  ;;  %v1055_v40 = vmul.f32 %v1713_v33, %v1054_v1  ;;  %v1118_v2 = vand.u32 2147483647, %v1112_v32  ;;  %v1022_v34 = vsel %vm1021_vm2, %v1985_v28, %v1020_v57 }
 0x121   :  { %v1130_v63 = vadd.f32 %v1129_v0, %v1128_v47  ;;  %vm1023_vm3 = vcmp.eq.f32.partialorder %v1985_v28, 0.0  ;;  %vm1057_vm4 = vcmp.eq.f32.partialorder %v2017_v8, inf  ;;  %vm1059_vm5 = vcmp.eq.f32.partialorder %v2017_v8, 0.0 }
 0x122   :  { %v1070_v48 = vrot.slane %v1069_v61, 4  ;;  %v1056_v11 = vmul.f32 %v1055_v40, %v2017_v8  ;;  %v1133_v44 = vadd.f32 %v1118_v2, %v1115_v49  ;;  %v1060_v9 = vand.u32 2147483648, %v2017_v8 }
 0x123   :  { %v981_v20 = vadd.f32 %v980_v58, %v979_v54  ;;  %v960_v13 = vadd.f32 %v959_v10, %v958_v56  ;;  %v1025_v46 = vsel %vm1023_vm3, %v1024_v3, %v1022_v34  ;;  %v1131_v7 = vrot.slane %v1130_v63, 1 }
 0x124   :  { %v1071_v39 = vadd.f32 %v1070_v48, %v1069_v61  ;;  %v1058_v15 = vsel %vm1057_vm4, %v2017_v8, %v1056_v11  ;;  %v1134_v12 = vrot.slane %v1133_v44, 4 }
 0x125   :  { %v1061_v27 = vsel %vm1059_vm5, %v1060_v9, %v1058_v15  ;;  %v982_v28 = vrot.slane %v981_v20, 1  ;;  %v961_v21 = vrot.slane %v960_v13, 1  ;;  %v1132_v30 = vadd.f32 %v1131_v7, %v1130_v63 }
 0x126   :  { %v1072_v6 = vrot.slane %v1071_v39, 2  ;;  %v1076_v17 = vadd.f32 %v1061_v27, %v1025_v46  ;;  %v1135_v18 = vadd.f32 %v1134_v12, %v1133_v44 }
 0x127   :  { %v983_v22 = vadd.f32 %v982_v28, %v981_v20  ;;  %v962_v41 = vadd.f32 %v961_v21, %v960_v13  ;;  %v1162_v42 = vsel %vm1160_vm12, %v1132_v30, 0.0 }
 0x128   :  { %v1073_v16 = vadd.f32 %v1072_v6, %v1071_v39  ;;  %v1077_v24 = vrot.slane %v1076_v17, 4  ;;  %v1136_v25 = vrot.slane %v1135_v18, 2 }
 0x129   :  { %v1149_v45 = vsel %vm1146_vm10, %v983_v22, 0.0  ;;  %v1145_v43 = vsel %vm1142_vm9, %v962_v41, 0.0 }
 0x12a   :  { %v1074_v23 = vrot.slane %v1073_v16, 1  ;;  %v1078_v62 = vadd.f32 %v1077_v24, %v1076_v17  ;;  %v1137_v33 = vadd.f32 %v1136_v25, %v1135_v18  ;;  %v1152_v51 = vadd.f32 %v1149_v45, %v1145_v43 }
 0x12c   :  { %v1075_v29 = vadd.f32 %v1074_v23, %v1073_v16  ;;  %v1079_v4 = vrot.slane %v1078_v62, 2  ;;  %v1138_v19 = vrot.slane %v1137_v33, 1 }
 0x12e   :  { %v1155_v8 = vsel %vm1153_vm13, %v1075_v29, 0.0  ;;  %v1080_v5 = vadd.f32 %v1079_v4, %v1078_v62 }
 0x12f   :  { %v1158_v36 = vadd.f32 %v1155_v8, %v2030_v26  ;;  %v1139_v26 = vadd.f32 %v1138_v19, %v1137_v33 }
 0x130   :  { %v1081_v38 = vrot.slane %v1080_v5, 1 }
 0x131   :  { %v1165_v35 = vadd.f32 %v1162_v42, %v1158_v36  ;;  %v1163_v52 = vsel %vm1160_vm12, %v1139_v26, 0.0 }
 0x132   :  { %v1082_v47 = vadd.f32 %v1081_v38, %v1080_v5 }
 0x133   :  { %1168 = vst [vmem:[%s2080_s5 + $0x8] sm:$0xff] %v1165_v35 }
 0x134   :  { %v1156_v14 = vsel %vm1153_vm13, %v1082_v47, 0.0 }
 0x135   :  { %v1159_v31 = vadd.f32 %v1156_v14, %v1152_v51 }
 0x137   :  { %v1166_v53 = vadd.f32 %v1163_v52, %v1159_v31 }
 0x139   :  { %1169 = vst [vmem:[%s2080_s5 + $0x10] sm:$0xff] %v1166_v53 }
 0x13a   :  { %1174 = vsyncpa [#allocation3], 1 }

</bundles_post_ra>
